<compile_context>
chip_gen: v7x
topology: tpu7x:2x2x1
jax: 0.10.0
libtpu: 0.0.40
codegen_flags: <defaults>
</compile_context>

<pallas_src>
import functools
import math

import jax
import jax.numpy as jnp
from jax.experimental import pallas as pl
from jax.experimental.pallas import tpu as pltpu

FILTER_SIZES = (2, 4, 6, 8, 10, 12, 16, 20)


# ----------------------------------------------------------------------------
# Fused bidirectional GRU step.
# PyTorch gate order r, z, n;  n = tanh(W_in x + b_in + r * (W_hn h + b_hn)).
# Packed gate-major column layout: [r_f | r_b | z_f | z_b | n_f | n_b], each H wide.
# bi already contains b_ih (+ b_hh folded in for the r/z gates); bhn is the
# hidden-side n-gate bias only.
# ----------------------------------------------------------------------------
def _bigru_step(x_f, x_b, wi, wh, bi, bhn, h):
    # x_f/x_b: (B, D) inputs at time t (fwd) / T-1-t (bwd);  h: (B, 2H) = [h_f|h_b]
    h2 = h.shape[-1]                                                   # 2H
    xp = jnp.concatenate([x_f, x_b], axis=-1)                          # (B, 2D)
    gi = jnp.dot(xp, wi, preferred_element_type=jnp.float32) + bi      # (B, 6H)
    gh = jnp.dot(h, wh, preferred_element_type=jnp.float32)            # (B, 6H)
    r = jax.nn.sigmoid(gi[:, :h2] + gh[:, :h2])
    z = jax.nn.sigmoid(gi[:, h2:2 * h2] + gh[:, h2:2 * h2])
    n = jnp.tanh(gi[:, 2 * h2:] + r * (gh[:, 2 * h2:] + bhn))
    return (1.0 - z) * n + z * h                                       # (B, 2H)


# Word-level variant: whole (T,B,D) input resident; h and the time-sum are loop
# carries (fuses torch.sum(word_output, dim=1)); single output store at the end.
def _bigru_sum_kernel(x_ref, wi_ref, wh_ref, bi_ref, bhn_ref, o_ref):
    T, B, _ = x_ref.shape
    H2 = wh_ref.shape[0]
    wi = wi_ref[...]
    wh = wh_ref[...]
    bi = bi_ref[...]
    bhn = bhn_ref[...]

    def step(t, carry):
        h, acc = carry
        h_new = _bigru_step(x_ref[t], x_ref[T - 1 - t], wi, wh, bi, bhn, h)
        return h_new, acc + h_new                   # acc = sum_t [h_f(t) | h_b(t)]

    zeros = jnp.zeros((B, H2), jnp.float32)
    _, acc = jax.lax.fori_loop(0, T, step, (zeros, zeros), unroll=True)
    o_ref[...] = acc


# Sentence-level variant: emits one lane-dense (B, 2H) row per step at index t.
# The backward half is therefore produced in reverse time order; it is flipped
# afterwards in XLA (cheap, 5 KB array).
def _bigru_seq_kernel(x_ref, wi_ref, wh_ref, bi_ref, bhn_ref, o_ref):
    T, B, _ = x_ref.shape
    H2 = wh_ref.shape[0]
    wi = wi_ref[...]
    wh = wh_ref[...]
    bi = bi_ref[...]
    bhn = bhn_ref[...]

    def step(t, h):
        h_new = _bigru_step(x_ref[t], x_ref[T - 1 - t], wi, wh, bi, bhn, h)
        o_ref[t] = h_new                            # [h_f(t) | h_b(T-1-t)]
        return h_new

    jax.lax.fori_loop(0, T, step, jnp.zeros((B, H2), jnp.float32), unroll=True)


def _bigru_pallas(x_tm, wi, wh, bi, bhn, *, return_sequence):
    # x_tm: (T, B, D) time-major input.  wi: (2D, 6H), wh: (2H, 6H),
    # bi: (1, 6H), bhn: (1, 2H).
    T, B, D = x_tm.shape
    H2, G = wh.shape
    in_specs = [
        pl.BlockSpec((T, B, D), lambda i: (0, 0, 0)),   # whole input resident
        pl.BlockSpec((2 * D, G), lambda i: (0, 0)),
        pl.BlockSpec((H2, G), lambda i: (0, 0)),
        pl.BlockSpec((1, G), lambda i: (0, 0)),
        pl.BlockSpec((1, H2), lambda i: (0, 0)),
    ]
    if return_sequence:
        kernel = _bigru_seq_kernel
        out_shape = jax.ShapeDtypeStruct((T, B, H2), jnp.float32)
        out_specs = pl.BlockSpec((T, B, H2), lambda i: (0, 0, 0))
    else:
        kernel = _bigru_sum_kernel
        out_shape = jax.ShapeDtypeStruct((B, H2), jnp.float32)
        out_specs = pl.BlockSpec((B, H2), lambda i: (0, 0))
    return pl.pallas_call(
        kernel,
        out_shape=out_shape,
        grid=(1,),
        in_specs=in_specs,
        out_specs=out_specs,
        compiler_params=pltpu.CompilerParams(dimension_semantics=("arbitrary",)),
    )(x_tm, wi, wh, bi, bhn)


# Pack per-direction PyTorch GRU params into the block-diagonal gate-major layout,
# folding b_ih + b_hh for the r/z gates into a single pre-summed bias.
def combine_bigru_params(params_fwd, params_bwd):
    w_ih_f, w_hh_f, b_ih_f, b_hh_f = params_fwd
    w_ih_b, w_hh_b, b_ih_b, b_hh_b = params_bwd
    H = w_hh_f.shape[1]

    def comb_w(w_f, w_b):                           # (3H, K) each -> (2K, 6H)
        K = w_f.shape[1]
        z = jnp.zeros((K, H), jnp.float32)
        cols = []
        for g in range(3):                          # gate order r, z, n
            cols.append(jnp.concatenate([w_f[g * H:(g + 1) * H].T, z], axis=0))
            cols.append(jnp.concatenate([z, w_b[g * H:(g + 1) * H].T], axis=0))
        return jnp.concatenate(cols, axis=1)

    def gate(b_f, b_b, g):                          # (3H,) each -> (2H,) [fwd|bwd]
        return jnp.concatenate([b_f[g * H:(g + 1) * H], b_b[g * H:(g + 1) * H]])

    bi = jnp.concatenate([
        gate(b_ih_f, b_ih_b, 0) + gate(b_hh_f, b_hh_b, 0),   # r: fold input+hidden
        gate(b_ih_f, b_ih_b, 1) + gate(b_hh_f, b_hh_b, 1),   # z: fold input+hidden
        gate(b_ih_f, b_ih_b, 2),                             # n: input-side only
    ]).reshape(1, 6 * H)
    bhn = gate(b_hh_f, b_hh_b, 2).reshape(1, 2 * H)          # n: hidden-side (scaled by r)
    return comb_w(w_ih_f, w_ih_b), comb_w(w_hh_f, w_hh_b), bi, bhn


# ----------------------------------------------------------------------------
# Fused Conv2d(1,F,(fs,2H)) x8 + ReLU + max-pool + Linear(8F,2) in one kernel.
# x_ref:   zero-padded (>= B*Sn + max_fs - 1 rows, 2H) sentence slab, VMEM-resident.
# w_ref:   (max_fs, 2H, 8F) per-tap weights, columns packed [f0|f1|...|f7],
#          zero-padded for taps k >= fs of a filter.
# b_ref:   (1, 8F) packed conv biases;  m_ref: (Sn, 8F) additive -1e30 mask for
#          pool windows that would run past the sentence (or cross batches).
# ----------------------------------------------------------------------------
def _conv_pool_fc_kernel(x_ref, w_ref, b_ref, m_ref, fcw_ref, fcb_ref, o_ref,
                         *, batch, sn, n_rows, max_fs):
    nc = b_ref.shape[1]                                      # 8F packed columns
    acc = jnp.zeros((n_rows, nc), jnp.float32)
    for k in range(max_fs):                                  # max_fs wide matmuls
        acc = acc + jnp.dot(x_ref[k:k + n_rows, :], w_ref[k],
                            preferred_element_type=jnp.float32)
    s = jnp.maximum(acc + b_ref[...], 0.0)                   # one bias+ReLU pass
    mask = m_ref[...]                                        # (sn, 8F) additive mask
    pooled = [jnp.max(s[b * sn:(b + 1) * sn, :] + mask, axis=0, keepdims=True)
              for b in range(batch)]                         # per-batch masked max
    cat = jnp.concatenate(pooled, axis=0)                    # (B, 8F), torch.cat order
    # nn.Dropout is identity at inference; final fc fused here.
    o_ref[...] = (jnp.dot(cat, fcw_ref[...], preferred_element_type=jnp.float32)
                  + fcb_ref[...])


def conv_pool_fc(rows_padded, w_packed, b_row, mask_add, fc_w_t, fc_b, *, batch, sn):
    R, C = rows_padded.shape
    max_fs, _, nc = w_packed.shape
    n_rows = batch * sn
    kernel = functools.partial(_conv_pool_fc_kernel, batch=batch, sn=sn,
                               n_rows=n_rows, max_fs=max_fs)
    return pl.pallas_call(
        kernel,
        out_shape=jax.ShapeDtypeStruct((batch, 2), jnp.float32),
        grid=(1,),
        in_specs=[
            pl.BlockSpec((R, C), lambda i: (0, 0)),
            pl.BlockSpec((max_fs, C, nc), lambda i: (0, 0, 0)),
            pl.BlockSpec((1, nc), lambda i: (0, 0)),
            pl.BlockSpec((sn, nc), lambda i: (0, 0)),
            pl.BlockSpec((nc, 2), lambda i: (0, 0)),
            pl.BlockSpec((1, 2), lambda i: (0, 0)),
        ],
        out_specs=pl.BlockSpec((batch, 2), lambda i: (0, 0)),
        compiler_params=pltpu.CompilerParams(dimension_semantics=("arbitrary",)),
    )(rows_padded, w_packed, b_row, mask_add, fc_w_t, fc_b)


# ----------------------------------------------------------------------------
# Parameter init (deterministic, PyTorch-default-style uniform)
# ----------------------------------------------------------------------------
def _uniform(key, shape, scale):
    return jax.random.uniform(key, shape, jnp.float32, -scale, scale)


def init_gru_dir(key, input_size, hidden):
    k1, k2, k3, k4 = jax.random.split(key, 4)
    s = 1.0 / math.sqrt(hidden)
    return (_uniform(k1, (3 * hidden, input_size), s),
            _uniform(k2, (3 * hidden, hidden), s),
            _uniform(k3, (3 * hidden,), s),
            _uniform(k4, (3 * hidden,), s))


def init_params(key, vocab_size, embedding_dim, gru_size, filter_num):
    keys = jax.random.split(key, 6 + 2 * len(FILTER_SIZES) + 2)
    params = {}
    params["embedding"] = jax.random.normal(keys[0], (vocab_size, embedding_dim),
                                            jnp.float32)
    params["word_gru_f"] = init_gru_dir(keys[1], embedding_dim, gru_size)
    params["word_gru_b"] = init_gru_dir(keys[2], embedding_dim, gru_size)
    params["sent_gru_f"] = init_gru_dir(keys[3], 2 * gru_size, gru_size)
    params["sent_gru_b"] = init_gru_dir(keys[4], 2 * gru_size, gru_size)
    convs = []
    for i, fs in enumerate(FILTER_SIZES):
        fan_in = 1 * fs * 2 * gru_size
        s = 1.0 / math.sqrt(fan_in)
        cw = _uniform(keys[5 + 2 * i], (filter_num, 1, fs, 2 * gru_size), s)
        cb = _uniform(keys[6 + 2 * i], (filter_num,), s)
        convs.append((cw, cb))
    params["convs"] = convs
    s = 1.0 / math.sqrt(8 * filter_num)
    params["fc_w"] = _uniform(keys[-2], (2, 8 * filter_num), s)
    params["fc_b"] = _uniform(keys[-1], (2,), s)
    return params


# ----------------------------------------------------------------------------
# Full forward pass
# ----------------------------------------------------------------------------
def forward(params, x, *, gru_size, filter_num):
    B, Sn, L = x.shape
    H = gru_size
    F_ = filter_num
    # TODO(synk): embedding gather stays in XLA (jnp.take); at vocab=50/E=16 a Pallas
    # one-hot-matmul / DMA-gather fusion would only save one tiny launch.
    tokens = x.reshape(B * Sn, L)
    embed = jnp.take(params["embedding"], tokens.T, axis=0)          # (L, N, E) time-major

    # word-level BiGRU fused with torch.sum(word_output, dim=1)  ->  (N, 2H)
    wi, wh, bi, bhn = combine_bigru_params(params["word_gru_f"], params["word_gru_b"])
    sent_vec = _bigru_pallas(embed, wi, wh, bi, bhn, return_sequence=False)

    # sentence-level BiGRU over sentences (full sequence needed by the convs)
    sv_tm = sent_vec.reshape(B, Sn, 2 * H).transpose(1, 0, 2)        # (Sn, B, 2H)
    wi2, wh2, bi2, bhn2 = combine_bigru_params(params["sent_gru_f"], params["sent_gru_b"])
    raw = _bigru_pallas(sv_tm, wi2, wh2, bi2, bhn2, return_sequence=True)   # (Sn, B, 2H)
    # kernel wrote the backward half in reverse time order (lane-dense store); fix it.
    sent_out = jnp.concatenate([raw[:, :, :H], jnp.flip(raw[:, :, H:], axis=0)],
                               axis=-1)                               # (Sn, B, 2H)
    rows = sent_out.transpose(1, 0, 2).reshape(B * Sn, 2 * H)        # (B*Sn, 2H)

    # zero-pad rows so every shifted window slice stays in-bounds (padding unused)
    max_fs = max(FILTER_SIZES)
    total_rows = ((B * Sn + max_fs - 1 + 7) // 8) * 8
    rows_padded = jnp.zeros((total_rows, 2 * H), jnp.float32).at[:B * Sn].set(rows)

    # pack conv weights/biases per tap: (max_fs, 2H, 8F), zero for taps >= fs
    nc = len(FILTER_SIZES) * F_
    w_packed = jnp.zeros((max_fs, 2 * H, nc), jnp.float32)
    b_row = jnp.zeros((1, nc), jnp.float32)
    for fi, (fs, (cw, cb)) in enumerate(zip(FILTER_SIZES, params["convs"])):
        wt = jnp.transpose(cw[:, 0, :, :], (1, 2, 0))                # (fs, 2H, F)
        w_packed = w_packed.at[:fs, :, fi * F_:(fi + 1) * F_].set(wt)
        b_row = b_row.at[0, fi * F_:(fi + 1) * F_].set(cb)

    # additive mask: row j of a sentence-batch is a valid pool window for filter fi
    # iff j <= Sn - fs (also excludes windows that would cross batch boundaries).
    pos = jnp.arange(Sn, dtype=jnp.int32)[:, None]                   # (Sn, 1)
    plim = jnp.repeat(jnp.array([Sn - fs + 1 for fs in FILTER_SIZES], jnp.int32),
                      F_)[None, :]                                   # (1, 8F)
    mask_add = jnp.where(pos < plim, 0.0, -1e30).astype(jnp.float32)  # (Sn, 8F)

    return conv_pool_fc(rows_padded, w_packed, b_row, mask_add,
                        params["fc_w"].T, params["fc_b"].reshape(1, 2),
                        batch=B, sn=Sn)                              # (B, 2)


if __name__ == "__main__":
    vocab_size, embedding_dim, gru_size, filter_num = 50, 16, 16, 8
    batch, sentence_num, sentence_len = 2, 20, 8   # sentence_num >= 20 (largest conv)

    key = jax.random.PRNGKey(0)
    kp, kx = jax.random.split(key)
    params = init_params(kp, vocab_size, embedding_dim, gru_size, filter_num)
    x = jax.random.randint(kx, (batch, sentence_num, sentence_len), 0, vocab_size,
                           dtype=jnp.int32)

    out = forward(params, x, gru_size=gru_size, filter_num=filter_num)
    out = jax.block_until_ready(out)
    assert out.shape == (batch, 2) and out.dtype == jnp.float32
    print("KERNEL_OK")
</pallas_src>

<mosaic_0001>
module attributes {stable_mosaic.version = 11 : i64} {
  func.func @_bigru_sum_kernel(%arg0: i32, %arg1: memref<8x40x16xf32, #tpu.memory_space<vmem>>, %arg2: memref<32x96xf32, #tpu.memory_space<vmem>>, %arg3: memref<32x96xf32, #tpu.memory_space<vmem>>, %arg4: memref<1x96xf32, #tpu.memory_space<vmem>>, %arg5: memref<1x32xf32, #tpu.memory_space<vmem>>, %arg6: memref<40x32xf32, #tpu.memory_space<vmem>>) attributes {dimension_semantics = [#tpu.dimension_semantics<arbitrary>], iteration_bounds = array<i64: 1>, scalar_prefetch = 0 : i64, scratch_operands = 0 : i64, tpu.core_type = #tpu.core_type<tc>, window_params = [{pipeline_mode = #tpu.pipeline_mode<synchronous>, transform_indices = @transform_0, window_bounds = array<i64: 8, 40, 16>}, {pipeline_mode = #tpu.pipeline_mode<synchronous>, transform_indices = @transform_1, window_bounds = array<i64: 32, 96>}, {pipeline_mode = #tpu.pipeline_mode<synchronous>, transform_indices = @transform_2, window_bounds = array<i64: 32, 96>}, {pipeline_mode = #tpu.pipeline_mode<synchronous>, transform_indices = @transform_3, window_bounds = array<i64: 1, 96>}, {pipeline_mode = #tpu.pipeline_mode<synchronous>, transform_indices = @transform_4, window_bounds = array<i64: 1, 32>}, {pipeline_mode = #tpu.pipeline_mode<synchronous>, transform_indices = @transform_5, window_bounds = array<i64: 40, 32>}]} {
    %c0 = arith.constant 0 : index
    %c0_0 = arith.constant 0 : index
    %0 = vector.load %arg2[%c0, %c0_0] : memref<32x96xf32, #tpu.memory_space<vmem>>, vector<32x96xf32>
    %c0_1 = arith.constant 0 : index
    %c0_2 = arith.constant 0 : index
    %1 = vector.load %arg3[%c0_1, %c0_2] : memref<32x96xf32, #tpu.memory_space<vmem>>, vector<32x96xf32>
    %c0_3 = arith.constant 0 : index
    %c0_4 = arith.constant 0 : index
    %2 = vector.load %arg4[%c0_3, %c0_4] : memref<1x96xf32, #tpu.memory_space<vmem>>, vector<1x96xf32>
    %c0_5 = arith.constant 0 : index
    %c0_6 = arith.constant 0 : index
    %3 = vector.load %arg5[%c0_5, %c0_6] : memref<1x32xf32, #tpu.memory_space<vmem>>, vector<1x32xf32>
    %cst = arith.constant 0.000000e+00 : f32
    %4 = vector.broadcast %cst : f32 to vector<40x32xf32>
    %c0_i32 = arith.constant 0 : i32
    %5 = arith.index_cast %c0_i32 : i32 to index
    %c0_7 = arith.constant 0 : index
    %c0_8 = arith.constant 0 : index
    %6 = vector.load %arg1[%5, %c0_7, %c0_8] : memref<8x40x16xf32, #tpu.memory_space<vmem>>, vector<1x40x16xf32>
    %7 = vector.shape_cast %6 : vector<1x40x16xf32> to vector<40x16xf32>
    %c7_i32 = arith.constant 7 : i32
    %8 = arith.subi %c7_i32, %c0_i32 : i32
    %9 = arith.index_cast %8 : i32 to index
    %c0_9 = arith.constant 0 : index
    %c0_10 = arith.constant 0 : index
    %10 = vector.load %arg1[%9, %c0_9, %c0_10] : memref<8x40x16xf32, #tpu.memory_space<vmem>>, vector<1x40x16xf32>
    %11 = vector.shape_cast %10 : vector<1x40x16xf32> to vector<40x16xf32>
    %12 = tpu.concatenate %7, %11 in 1 : vector<40x16xf32>, vector<40x16xf32> -> vector<40x32xf32>
    %cst_11 = arith.constant dense<0.000000e+00> : vector<40x96xf32>
    %13 = tpu.matmul %12, %0, %cst_11 {dimension_numbers = #tpu.dot_dimension_numbers<[1], [0], [0], [1], [0, 0, 1, 1], [], []>} : vector<40x32xf32>, vector<32x96xf32>, vector<40x96xf32> -> vector<40x96xf32>
    %14 = vector.broadcast %2 : vector<1x96xf32> to vector<40x96xf32>
    %15 = arith.addf %13, %14 : vector<40x96xf32>
    %cst_12 = arith.constant dense<0.000000e+00> : vector<40x96xf32>
    %16 = tpu.matmul %4, %1, %cst_12 {dimension_numbers = #tpu.dot_dimension_numbers<[1], [0], [0], [1], [0, 0, 1, 1], [], []>} : vector<40x32xf32>, vector<32x96xf32>, vector<40x96xf32> -> vector<40x96xf32>
    %17 = vector.extract_strided_slice %15 {offsets = [0, 0], sizes = [40, 32], strides = [1, 1]} : vector<40x96xf32> to vector<40x32xf32>
    %18 = vector.extract_strided_slice %16 {offsets = [0, 0], sizes = [40, 32], strides = [1, 1]} : vector<40x96xf32> to vector<40x32xf32>
    %19 = arith.addf %17, %18 : vector<40x32xf32>
    %20 = arith.negf %19 : vector<40x32xf32>
    %21 = math.exp %20 : vector<40x32xf32>
    %cst_13 = arith.constant 1.000000e+00 : f32
    %22 = vector.broadcast %cst_13 : f32 to vector<40x32xf32>
    %23 = arith.addf %22, %21 : vector<40x32xf32>
    %24 = arith.divf %22, %23 : vector<40x32xf32>
    %25 = vector.extract_strided_slice %15 {offsets = [0, 32], sizes = [40, 32], strides = [1, 1]} : vector<40x96xf32> to vector<40x32xf32>
    %26 = vector.extract_strided_slice %16 {offsets = [0, 32], sizes = [40, 32], strides = [1, 1]} : vector<40x96xf32> to vector<40x32xf32>
    %27 = arith.addf %25, %26 : vector<40x32xf32>
    %28 = arith.negf %27 : vector<40x32xf32>
    %29 = math.exp %28 : vector<40x32xf32>
    %cst_14 = arith.constant 1.000000e+00 : f32
    %30 = vector.broadcast %cst_14 : f32 to vector<40x32xf32>
    %31 = arith.addf %30, %29 : vector<40x32xf32>
    %32 = arith.divf %30, %31 : vector<40x32xf32>
    %33 = vector.extract_strided_slice %15 {offsets = [0, 64], sizes = [40, 32], strides = [1, 1]} : vector<40x96xf32> to vector<40x32xf32>
    %34 = vector.extract_strided_slice %16 {offsets = [0, 64], sizes = [40, 32], strides = [1, 1]} : vector<40x96xf32> to vector<40x32xf32>
    %35 = vector.broadcast %3 : vector<1x32xf32> to vector<40x32xf32>
    %36 = arith.addf %34, %35 : vector<40x32xf32>
    %37 = arith.mulf %24, %36 : vector<40x32xf32>
    %38 = arith.addf %33, %37 : vector<40x32xf32>
    %39 = math.tanh %38 : vector<40x32xf32>
    %cst_15 = arith.constant 1.000000e+00 : f32
    %40 = vector.broadcast %cst_15 : f32 to vector<40x32xf32>
    %41 = arith.subf %40, %32 : vector<40x32xf32>
    %42 = arith.mulf %41, %39 : vector<40x32xf32>
    %43 = arith.mulf %32, %4 : vector<40x32xf32>
    %44 = arith.addf %42, %43 : vector<40x32xf32>
    %45 = arith.addf %4, %44 : vector<40x32xf32>
    %c1_i32 = arith.constant 1 : i32
    %46 = arith.index_cast %c1_i32 : i32 to index
    %c0_16 = arith.constant 0 : index
    %c0_17 = arith.constant 0 : index
    %47 = vector.load %arg1[%46, %c0_16, %c0_17] : memref<8x40x16xf32, #tpu.memory_space<vmem>>, vector<1x40x16xf32>
    %48 = vector.shape_cast %47 : vector<1x40x16xf32> to vector<40x16xf32>
    %c7_i32_18 = arith.constant 7 : i32
    %49 = arith.subi %c7_i32_18, %c1_i32 : i32
    %50 = arith.index_cast %49 : i32 to index
    %c0_19 = arith.constant 0 : index
    %c0_20 = arith.constant 0 : index
    %51 = vector.load %arg1[%50, %c0_19, %c0_20] : memref<8x40x16xf32, #tpu.memory_space<vmem>>, vector<1x40x16xf32>
    %52 = vector.shape_cast %51 : vector<1x40x16xf32> to vector<40x16xf32>
    %53 = tpu.concatenate %48, %52 in 1 : vector<40x16xf32>, vector<40x16xf32> -> vector<40x32xf32>
    %cst_21 = arith.constant dense<0.000000e+00> : vector<40x96xf32>
    %54 = tpu.matmul %53, %0, %cst_21 {dimension_numbers = #tpu.dot_dimension_numbers<[1], [0], [0], [1], [0, 0, 1, 1], [], []>} : vector<40x32xf32>, vector<32x96xf32>, vector<40x96xf32> -> vector<40x96xf32>
    %55 = vector.broadcast %2 : vector<1x96xf32> to vector<40x96xf32>
    %56 = arith.addf %54, %55 : vector<40x96xf32>
    %cst_22 = arith.constant dense<0.000000e+00> : vector<40x96xf32>
    %57 = tpu.matmul %44, %1, %cst_22 {dimension_numbers = #tpu.dot_dimension_numbers<[1], [0], [0], [1], [0, 0, 1, 1], [], []>} : vector<40x32xf32>, vector<32x96xf32>, vector<40x96xf32> -> vector<40x96xf32>
    %58 = vector.extract_strided_slice %56 {offsets = [0, 0], sizes = [40, 32], strides = [1, 1]} : vector<40x96xf32> to vector<40x32xf32>
    %59 = vector.extract_strided_slice %57 {offsets = [0, 0], sizes = [40, 32], strides = [1, 1]} : vector<40x96xf32> to vector<40x32xf32>
    %60 = arith.addf %58, %59 : vector<40x32xf32>
    %61 = arith.negf %60 : vector<40x32xf32>
    %62 = math.exp %61 : vector<40x32xf32>
    %cst_23 = arith.constant 1.000000e+00 : f32
    %63 = vector.broadcast %cst_23 : f32 to vector<40x32xf32>
    %64 = arith.addf %63, %62 : vector<40x32xf32>
    %65 = arith.divf %63, %64 : vector<40x32xf32>
    %66 = vector.extract_strided_slice %56 {offsets = [0, 32], sizes = [40, 32], strides = [1, 1]} : vector<40x96xf32> to vector<40x32xf32>
    %67 = vector.extract_strided_slice %57 {offsets = [0, 32], sizes = [40, 32], strides = [1, 1]} : vector<40x96xf32> to vector<40x32xf32>
    %68 = arith.addf %66, %67 : vector<40x32xf32>
    %69 = arith.negf %68 : vector<40x32xf32>
    %70 = math.exp %69 : vector<40x32xf32>
    %cst_24 = arith.constant 1.000000e+00 : f32
    %71 = vector.broadcast %cst_24 : f32 to vector<40x32xf32>
    %72 = arith.addf %71, %70 : vector<40x32xf32>
    %73 = arith.divf %71, %72 : vector<40x32xf32>
    %74 = vector.extract_strided_slice %56 {offsets = [0, 64], sizes = [40, 32], strides = [1, 1]} : vector<40x96xf32> to vector<40x32xf32>
    %75 = vector.extract_strided_slice %57 {offsets = [0, 64], sizes = [40, 32], strides = [1, 1]} : vector<40x96xf32> to vector<40x32xf32>
    %76 = vector.broadcast %3 : vector<1x32xf32> to vector<40x32xf32>
    %77 = arith.addf %75, %76 : vector<40x32xf32>
    %78 = arith.mulf %65, %77 : vector<40x32xf32>
    %79 = arith.addf %74, %78 : vector<40x32xf32>
    %80 = math.tanh %79 : vector<40x32xf32>
    %cst_25 = arith.constant 1.000000e+00 : f32
    %81 = vector.broadcast %cst_25 : f32 to vector<40x32xf32>
    %82 = arith.subf %81, %73 : vector<40x32xf32>
    %83 = arith.mulf %82, %80 : vector<40x32xf32>
    %84 = arith.mulf %73, %44 : vector<40x32xf32>
    %85 = arith.addf %83, %84 : vector<40x32xf32>
    %86 = arith.addf %45, %85 : vector<40x32xf32>
    %c2_i32 = arith.constant 2 : i32
    %87 = arith.index_cast %c2_i32 : i32 to index
    %c0_26 = arith.constant 0 : index
    %c0_27 = arith.constant 0 : index
    %88 = vector.load %arg1[%87, %c0_26, %c0_27] : memref<8x40x16xf32, #tpu.memory_space<vmem>>, vector<1x40x16xf32>
    %89 = vector.shape_cast %88 : vector<1x40x16xf32> to vector<40x16xf32>
    %c7_i32_28 = arith.constant 7 : i32
    %90 = arith.subi %c7_i32_28, %c2_i32 : i32
    %91 = arith.index_cast %90 : i32 to index
    %c0_29 = arith.constant 0 : index
    %c0_30 = arith.constant 0 : index
    %92 = vector.load %arg1[%91, %c0_29, %c0_30] : memref<8x40x16xf32, #tpu.memory_space<vmem>>, vector<1x40x16xf32>
    %93 = vector.shape_cast %92 : vector<1x40x16xf32> to vector<40x16xf32>
    %94 = tpu.concatenate %89, %93 in 1 : vector<40x16xf32>, vector<40x16xf32> -> vector<40x32xf32>
    %cst_31 = arith.constant dense<0.000000e+00> : vector<40x96xf32>
    %95 = tpu.matmul %94, %0, %cst_31 {dimension_numbers = #tpu.dot_dimension_numbers<[1], [0], [0], [1], [0, 0, 1, 1], [], []>} : vector<40x32xf32>, vector<32x96xf32>, vector<40x96xf32> -> vector<40x96xf32>
    %96 = vector.broadcast %2 : vector<1x96xf32> to vector<40x96xf32>
    %97 = arith.addf %95, %96 : vector<40x96xf32>
    %cst_32 = arith.constant dense<0.000000e+00> : vector<40x96xf32>
    %98 = tpu.matmul %85, %1, %cst_32 {dimension_numbers = #tpu.dot_dimension_numbers<[1], [0], [0], [1], [0, 0, 1, 1], [], []>} : vector<40x32xf32>, vector<32x96xf32>, vector<40x96xf32> -> vector<40x96xf32>
    %99 = vector.extract_strided_slice %97 {offsets = [0, 0], sizes = [40, 32], strides = [1, 1]} : vector<40x96xf32> to vector<40x32xf32>
    %100 = vector.extract_strided_slice %98 {offsets = [0, 0], sizes = [40, 32], strides = [1, 1]} : vector<40x96xf32> to vector<40x32xf32>
    %101 = arith.addf %99, %100 : vector<40x32xf32>
    %102 = arith.negf %101 : vector<40x32xf32>
    %103 = math.exp %102 : vector<40x32xf32>
    %cst_33 = arith.constant 1.000000e+00 : f32
    %104 = vector.broadcast %cst_33 : f32 to vector<40x32xf32>
    %105 = arith.addf %104, %103 : vector<40x32xf32>
    %106 = arith.divf %104, %105 : vector<40x32xf32>
    %107 = vector.extract_strided_slice %97 {offsets = [0, 32], sizes = [40, 32], strides = [1, 1]} : vector<40x96xf32> to vector<40x32xf32>
    %108 = vector.extract_strided_slice %98 {offsets = [0, 32], sizes = [40, 32], strides = [1, 1]} : vector<40x96xf32> to vector<40x32xf32>
    %109 = arith.addf %107, %108 : vector<40x32xf32>
    %110 = arith.negf %109 : vector<40x32xf32>
    %111 = math.exp %110 : vector<40x32xf32>
    %cst_34 = arith.constant 1.000000e+00 : f32
    %112 = vector.broadcast %cst_34 : f32 to vector<40x32xf32>
    %113 = arith.addf %112, %111 : vector<40x32xf32>
    %114 = arith.divf %112, %113 : vector<40x32xf32>
    %115 = vector.extract_strided_slice %97 {offsets = [0, 64], sizes = [40, 32], strides = [1, 1]} : vector<40x96xf32> to vector<40x32xf32>
    %116 = vector.extract_strided_slice %98 {offsets = [0, 64], sizes = [40, 32], strides = [1, 1]} : vector<40x96xf32> to vector<40x32xf32>
    %117 = vector.broadcast %3 : vector<1x32xf32> to vector<40x32xf32>
    %118 = arith.addf %116, %117 : vector<40x32xf32>
    %119 = arith.mulf %106, %118 : vector<40x32xf32>
    %120 = arith.addf %115, %119 : vector<40x32xf32>
    %121 = math.tanh %120 : vector<40x32xf32>
    %cst_35 = arith.constant 1.000000e+00 : f32
    %122 = vector.broadcast %cst_35 : f32 to vector<40x32xf32>
    %123 = arith.subf %122, %114 : vector<40x32xf32>
    %124 = arith.mulf %123, %121 : vector<40x32xf32>
    %125 = arith.mulf %114, %85 : vector<40x32xf32>
    %126 = arith.addf %124, %125 : vector<40x32xf32>
    %127 = arith.addf %86, %126 : vector<40x32xf32>
    %c3_i32 = arith.constant 3 : i32
    %128 = arith.index_cast %c3_i32 : i32 to index
    %c0_36 = arith.constant 0 : index
    %c0_37 = arith.constant 0 : index
    %129 = vector.load %arg1[%128, %c0_36, %c0_37] : memref<8x40x16xf32, #tpu.memory_space<vmem>>, vector<1x40x16xf32>
    %130 = vector.shape_cast %129 : vector<1x40x16xf32> to vector<40x16xf32>
    %c7_i32_38 = arith.constant 7 : i32
    %131 = arith.subi %c7_i32_38, %c3_i32 : i32
    %132 = arith.index_cast %131 : i32 to index
    %c0_39 = arith.constant 0 : index
    %c0_40 = arith.constant 0 : index
    %133 = vector.load %arg1[%132, %c0_39, %c0_40] : memref<8x40x16xf32, #tpu.memory_space<vmem>>, vector<1x40x16xf32>
    %134 = vector.shape_cast %133 : vector<1x40x16xf32> to vector<40x16xf32>
    %135 = tpu.concatenate %130, %134 in 1 : vector<40x16xf32>, vector<40x16xf32> -> vector<40x32xf32>
    %cst_41 = arith.constant dense<0.000000e+00> : vector<40x96xf32>
    %136 = tpu.matmul %135, %0, %cst_41 {dimension_numbers = #tpu.dot_dimension_numbers<[1], [0], [0], [1], [0, 0, 1, 1], [], []>} : vector<40x32xf32>, vector<32x96xf32>, vector<40x96xf32> -> vector<40x96xf32>
    %137 = vector.broadcast %2 : vector<1x96xf32> to vector<40x96xf32>
    %138 = arith.addf %136, %137 : vector<40x96xf32>
    %cst_42 = arith.constant dense<0.000000e+00> : vector<40x96xf32>
    %139 = tpu.matmul %126, %1, %cst_42 {dimension_numbers = #tpu.dot_dimension_numbers<[1], [0], [0], [1], [0, 0, 1, 1], [], []>} : vector<40x32xf32>, vector<32x96xf32>, vector<40x96xf32> -> vector<40x96xf32>
    %140 = vector.extract_strided_slice %138 {offsets = [0, 0], sizes = [40, 32], strides = [1, 1]} : vector<40x96xf32> to vector<40x32xf32>
    %141 = vector.extract_strided_slice %139 {offsets = [0, 0], sizes = [40, 32], strides = [1, 1]} : vector<40x96xf32> to vector<40x32xf32>
    %142 = arith.addf %140, %141 : vector<40x32xf32>
    %143 = arith.negf %142 : vector<40x32xf32>
    %144 = math.exp %143 : vector<40x32xf32>
    %cst_43 = arith.constant 1.000000e+00 : f32
    %145 = vector.broadcast %cst_43 : f32 to vector<40x32xf32>
    %146 = arith.addf %145, %144 : vector<40x32xf32>
    %147 = arith.divf %145, %146 : vector<40x32xf32>
    %148 = vector.extract_strided_slice %138 {offsets = [0, 32], sizes = [40, 32], strides = [1, 1]} : vector<40x96xf32> to vector<40x32xf32>
    %149 = vector.extract_strided_slice %139 {offsets = [0, 32], sizes = [40, 32], strides = [1, 1]} : vector<40x96xf32> to vector<40x32xf32>
    %150 = arith.addf %148, %149 : vector<40x32xf32>
    %151 = arith.negf %150 : vector<40x32xf32>
    %152 = math.exp %151 : vector<40x32xf32>
    %cst_44 = arith.constant 1.000000e+00 : f32
    %153 = vector.broadcast %cst_44 : f32 to vector<40x32xf32>
    %154 = arith.addf %153, %152 : vector<40x32xf32>
    %155 = arith.divf %153, %154 : vector<40x32xf32>
    %156 = vector.extract_strided_slice %138 {offsets = [0, 64], sizes = [40, 32], strides = [1, 1]} : vector<40x96xf32> to vector<40x32xf32>
    %157 = vector.extract_strided_slice %139 {offsets = [0, 64], sizes = [40, 32], strides = [1, 1]} : vector<40x96xf32> to vector<40x32xf32>
    %158 = vector.broadcast %3 : vector<1x32xf32> to vector<40x32xf32>
    %159 = arith.addf %157, %158 : vector<40x32xf32>
    %160 = arith.mulf %147, %159 : vector<40x32xf32>
    %161 = arith.addf %156, %160 : vector<40x32xf32>
    %162 = math.tanh %161 : vector<40x32xf32>
    %cst_45 = arith.constant 1.000000e+00 : f32
    %163 = vector.broadcast %cst_45 : f32 to vector<40x32xf32>
    %164 = arith.subf %163, %155 : vector<40x32xf32>
    %165 = arith.mulf %164, %162 : vector<40x32xf32>
    %166 = arith.mulf %155, %126 : vector<40x32xf32>
    %167 = arith.addf %165, %166 : vector<40x32xf32>
    %168 = arith.addf %127, %167 : vector<40x32xf32>
    %c4_i32 = arith.constant 4 : i32
    %169 = arith.index_cast %c4_i32 : i32 to index
    %c0_46 = arith.constant 0 : index
    %c0_47 = arith.constant 0 : index
    %170 = vector.load %arg1[%169, %c0_46, %c0_47] : memref<8x40x16xf32, #tpu.memory_space<vmem>>, vector<1x40x16xf32>
    %171 = vector.shape_cast %170 : vector<1x40x16xf32> to vector<40x16xf32>
    %c7_i32_48 = arith.constant 7 : i32
    %172 = arith.subi %c7_i32_48, %c4_i32 : i32
    %173 = arith.index_cast %172 : i32 to index
    %c0_49 = arith.constant 0 : index
    %c0_50 = arith.constant 0 : index
    %174 = vector.load %arg1[%173, %c0_49, %c0_50] : memref<8x40x16xf32, #tpu.memory_space<vmem>>, vector<1x40x16xf32>
    %175 = vector.shape_cast %174 : vector<1x40x16xf32> to vector<40x16xf32>
    %176 = tpu.concatenate %171, %175 in 1 : vector<40x16xf32>, vector<40x16xf32> -> vector<40x32xf32>
    %cst_51 = arith.constant dense<0.000000e+00> : vector<40x96xf32>
    %177 = tpu.matmul %176, %0, %cst_51 {dimension_numbers = #tpu.dot_dimension_numbers<[1], [0], [0], [1], [0, 0, 1, 1], [], []>} : vector<40x32xf32>, vector<32x96xf32>, vector<40x96xf32> -> vector<40x96xf32>
    %178 = vector.broadcast %2 : vector<1x96xf32> to vector<40x96xf32>
    %179 = arith.addf %177, %178 : vector<40x96xf32>
    %cst_52 = arith.constant dense<0.000000e+00> : vector<40x96xf32>
    %180 = tpu.matmul %167, %1, %cst_52 {dimension_numbers = #tpu.dot_dimension_numbers<[1], [0], [0], [1], [0, 0, 1, 1], [], []>} : vector<40x32xf32>, vector<32x96xf32>, vector<40x96xf32> -> vector<40x96xf32>
    %181 = vector.extract_strided_slice %179 {offsets = [0, 0], sizes = [40, 32], strides = [1, 1]} : vector<40x96xf32> to vector<40x32xf32>
    %182 = vector.extract_strided_slice %180 {offsets = [0, 0], sizes = [40, 32], strides = [1, 1]} : vector<40x96xf32> to vector<40x32xf32>
    %183 = arith.addf %181, %182 : vector<40x32xf32>
    %184 = arith.negf %183 : vector<40x32xf32>
    %185 = math.exp %184 : vector<40x32xf32>
    %cst_53 = arith.constant 1.000000e+00 : f32
    %186 = vector.broadcast %cst_53 : f32 to vector<40x32xf32>
    %187 = arith.addf %186, %185 : vector<40x32xf32>
    %188 = arith.divf %186, %187 : vector<40x32xf32>
    %189 = vector.extract_strided_slice %179 {offsets = [0, 32], sizes = [40, 32], strides = [1, 1]} : vector<40x96xf32> to vector<40x32xf32>
    %190 = vector.extract_strided_slice %180 {offsets = [0, 32], sizes = [40, 32], strides = [1, 1]} : vector<40x96xf32> to vector<40x32xf32>
    %191 = arith.addf %189, %190 : vector<40x32xf32>
    %192 = arith.negf %191 : vector<40x32xf32>
    %193 = math.exp %192 : vector<40x32xf32>
    %cst_54 = arith.constant 1.000000e+00 : f32
    %194 = vector.broadcast %cst_54 : f32 to vector<40x32xf32>
    %195 = arith.addf %194, %193 : vector<40x32xf32>
    %196 = arith.divf %194, %195 : vector<40x32xf32>
    %197 = vector.extract_strided_slice %179 {offsets = [0, 64], sizes = [40, 32], strides = [1, 1]} : vector<40x96xf32> to vector<40x32xf32>
    %198 = vector.extract_strided_slice %180 {offsets = [0, 64], sizes = [40, 32], strides = [1, 1]} : vector<40x96xf32> to vector<40x32xf32>
    %199 = vector.broadcast %3 : vector<1x32xf32> to vector<40x32xf32>
    %200 = arith.addf %198, %199 : vector<40x32xf32>
    %201 = arith.mulf %188, %200 : vector<40x32xf32>
    %202 = arith.addf %197, %201 : vector<40x32xf32>
    %203 = math.tanh %202 : vector<40x32xf32>
    %cst_55 = arith.constant 1.000000e+00 : f32
    %204 = vector.broadcast %cst_55 : f32 to vector<40x32xf32>
    %205 = arith.subf %204, %196 : vector<40x32xf32>
    %206 = arith.mulf %205, %203 : vector<40x32xf32>
    %207 = arith.mulf %196, %167 : vector<40x32xf32>
    %208 = arith.addf %206, %207 : vector<40x32xf32>
    %209 = arith.addf %168, %208 : vector<40x32xf32>
    %c5_i32 = arith.constant 5 : i32
    %210 = arith.index_cast %c5_i32 : i32 to index
    %c0_56 = arith.constant 0 : index
    %c0_57 = arith.constant 0 : index
    %211 = vector.load %arg1[%210, %c0_56, %c0_57] : memref<8x40x16xf32, #tpu.memory_space<vmem>>, vector<1x40x16xf32>
    %212 = vector.shape_cast %211 : vector<1x40x16xf32> to vector<40x16xf32>
    %c7_i32_58 = arith.constant 7 : i32
    %213 = arith.subi %c7_i32_58, %c5_i32 : i32
    %214 = arith.index_cast %213 : i32 to index
    %c0_59 = arith.constant 0 : index
    %c0_60 = arith.constant 0 : index
    %215 = vector.load %arg1[%214, %c0_59, %c0_60] : memref<8x40x16xf32, #tpu.memory_space<vmem>>, vector<1x40x16xf32>
    %216 = vector.shape_cast %215 : vector<1x40x16xf32> to vector<40x16xf32>
    %217 = tpu.concatenate %212, %216 in 1 : vector<40x16xf32>, vector<40x16xf32> -> vector<40x32xf32>
    %cst_61 = arith.constant dense<0.000000e+00> : vector<40x96xf32>
    %218 = tpu.matmul %217, %0, %cst_61 {dimension_numbers = #tpu.dot_dimension_numbers<[1], [0], [0], [1], [0, 0, 1, 1], [], []>} : vector<40x32xf32>, vector<32x96xf32>, vector<40x96xf32> -> vector<40x96xf32>
    %219 = vector.broadcast %2 : vector<1x96xf32> to vector<40x96xf32>
    %220 = arith.addf %218, %219 : vector<40x96xf32>
    %cst_62 = arith.constant dense<0.000000e+00> : vector<40x96xf32>
    %221 = tpu.matmul %208, %1, %cst_62 {dimension_numbers = #tpu.dot_dimension_numbers<[1], [0], [0], [1], [0, 0, 1, 1], [], []>} : vector<40x32xf32>, vector<32x96xf32>, vector<40x96xf32> -> vector<40x96xf32>
    %222 = vector.extract_strided_slice %220 {offsets = [0, 0], sizes = [40, 32], strides = [1, 1]} : vector<40x96xf32> to vector<40x32xf32>
    %223 = vector.extract_strided_slice %221 {offsets = [0, 0], sizes = [40, 32], strides = [1, 1]} : vector<40x96xf32> to vector<40x32xf32>
    %224 = arith.addf %222, %223 : vector<40x32xf32>
    %225 = arith.negf %224 : vector<40x32xf32>
    %226 = math.exp %225 : vector<40x32xf32>
    %cst_63 = arith.constant 1.000000e+00 : f32
    %227 = vector.broadcast %cst_63 : f32 to vector<40x32xf32>
    %228 = arith.addf %227, %226 : vector<40x32xf32>
    %229 = arith.divf %227, %228 : vector<40x32xf32>
    %230 = vector.extract_strided_slice %220 {offsets = [0, 32], sizes = [40, 32], strides = [1, 1]} : vector<40x96xf32> to vector<40x32xf32>
    %231 = vector.extract_strided_slice %221 {offsets = [0, 32], sizes = [40, 32], strides = [1, 1]} : vector<40x96xf32> to vector<40x32xf32>
    %232 = arith.addf %230, %231 : vector<40x32xf32>
    %233 = arith.negf %232 : vector<40x32xf32>
    %234 = math.exp %233 : vector<40x32xf32>
    %cst_64 = arith.constant 1.000000e+00 : f32
    %235 = vector.broadcast %cst_64 : f32 to vector<40x32xf32>
    %236 = arith.addf %235, %234 : vector<40x32xf32>
    %237 = arith.divf %235, %236 : vector<40x32xf32>
    %238 = vector.extract_strided_slice %220 {offsets = [0, 64], sizes = [40, 32], strides = [1, 1]} : vector<40x96xf32> to vector<40x32xf32>
    %239 = vector.extract_strided_slice %221 {offsets = [0, 64], sizes = [40, 32], strides = [1, 1]} : vector<40x96xf32> to vector<40x32xf32>
    %240 = vector.broadcast %3 : vector<1x32xf32> to vector<40x32xf32>
    %241 = arith.addf %239, %240 : vector<40x32xf32>
    %242 = arith.mulf %229, %241 : vector<40x32xf32>
    %243 = arith.addf %238, %242 : vector<40x32xf32>
    %244 = math.tanh %243 : vector<40x32xf32>
    %cst_65 = arith.constant 1.000000e+00 : f32
    %245 = vector.broadcast %cst_65 : f32 to vector<40x32xf32>
    %246 = arith.subf %245, %237 : vector<40x32xf32>
    %247 = arith.mulf %246, %244 : vector<40x32xf32>
    %248 = arith.mulf %237, %208 : vector<40x32xf32>
    %249 = arith.addf %247, %248 : vector<40x32xf32>
    %250 = arith.addf %209, %249 : vector<40x32xf32>
    %c6_i32 = arith.constant 6 : i32
    %251 = arith.index_cast %c6_i32 : i32 to index
    %c0_66 = arith.constant 0 : index
    %c0_67 = arith.constant 0 : index
    %252 = vector.load %arg1[%251, %c0_66, %c0_67] : memref<8x40x16xf32, #tpu.memory_space<vmem>>, vector<1x40x16xf32>
    %253 = vector.shape_cast %252 : vector<1x40x16xf32> to vector<40x16xf32>
    %c7_i32_68 = arith.constant 7 : i32
    %254 = arith.subi %c7_i32_68, %c6_i32 : i32
    %255 = arith.index_cast %254 : i32 to index
    %c0_69 = arith.constant 0 : index
    %c0_70 = arith.constant 0 : index
    %256 = vector.load %arg1[%255, %c0_69, %c0_70] : memref<8x40x16xf32, #tpu.memory_space<vmem>>, vector<1x40x16xf32>
    %257 = vector.shape_cast %256 : vector<1x40x16xf32> to vector<40x16xf32>
    %258 = tpu.concatenate %253, %257 in 1 : vector<40x16xf32>, vector<40x16xf32> -> vector<40x32xf32>
    %cst_71 = arith.constant dense<0.000000e+00> : vector<40x96xf32>
    %259 = tpu.matmul %258, %0, %cst_71 {dimension_numbers = #tpu.dot_dimension_numbers<[1], [0], [0], [1], [0, 0, 1, 1], [], []>} : vector<40x32xf32>, vector<32x96xf32>, vector<40x96xf32> -> vector<40x96xf32>
    %260 = vector.broadcast %2 : vector<1x96xf32> to vector<40x96xf32>
    %261 = arith.addf %259, %260 : vector<40x96xf32>
    %cst_72 = arith.constant dense<0.000000e+00> : vector<40x96xf32>
    %262 = tpu.matmul %249, %1, %cst_72 {dimension_numbers = #tpu.dot_dimension_numbers<[1], [0], [0], [1], [0, 0, 1, 1], [], []>} : vector<40x32xf32>, vector<32x96xf32>, vector<40x96xf32> -> vector<40x96xf32>
    %263 = vector.extract_strided_slice %261 {offsets = [0, 0], sizes = [40, 32], strides = [1, 1]} : vector<40x96xf32> to vector<40x32xf32>
    %264 = vector.extract_strided_slice %262 {offsets = [0, 0], sizes = [40, 32], strides = [1, 1]} : vector<40x96xf32> to vector<40x32xf32>
    %265 = arith.addf %263, %264 : vector<40x32xf32>
    %266 = arith.negf %265 : vector<40x32xf32>
    %267 = math.exp %266 : vector<40x32xf32>
    %cst_73 = arith.constant 1.000000e+00 : f32
    %268 = vector.broadcast %cst_73 : f32 to vector<40x32xf32>
    %269 = arith.addf %268, %267 : vector<40x32xf32>
    %270 = arith.divf %268, %269 : vector<40x32xf32>
    %271 = vector.extract_strided_slice %261 {offsets = [0, 32], sizes = [40, 32], strides = [1, 1]} : vector<40x96xf32> to vector<40x32xf32>
    %272 = vector.extract_strided_slice %262 {offsets = [0, 32], sizes = [40, 32], strides = [1, 1]} : vector<40x96xf32> to vector<40x32xf32>
    %273 = arith.addf %271, %272 : vector<40x32xf32>
    %274 = arith.negf %273 : vector<40x32xf32>
    %275 = math.exp %274 : vector<40x32xf32>
    %cst_74 = arith.constant 1.000000e+00 : f32
    %276 = vector.broadcast %cst_74 : f32 to vector<40x32xf32>
    %277 = arith.addf %276, %275 : vector<40x32xf32>
    %278 = arith.divf %276, %277 : vector<40x32xf32>
    %279 = vector.extract_strided_slice %261 {offsets = [0, 64], sizes = [40, 32], strides = [1, 1]} : vector<40x96xf32> to vector<40x32xf32>
    %280 = vector.extract_strided_slice %262 {offsets = [0, 64], sizes = [40, 32], strides = [1, 1]} : vector<40x96xf32> to vector<40x32xf32>
    %281 = vector.broadcast %3 : vector<1x32xf32> to vector<40x32xf32>
    %282 = arith.addf %280, %281 : vector<40x32xf32>
    %283 = arith.mulf %270, %282 : vector<40x32xf32>
    %284 = arith.addf %279, %283 : vector<40x32xf32>
    %285 = math.tanh %284 : vector<40x32xf32>
    %cst_75 = arith.constant 1.000000e+00 : f32
    %286 = vector.broadcast %cst_75 : f32 to vector<40x32xf32>
    %287 = arith.subf %286, %278 : vector<40x32xf32>
    %288 = arith.mulf %287, %285 : vector<40x32xf32>
    %289 = arith.mulf %278, %249 : vector<40x32xf32>
    %290 = arith.addf %288, %289 : vector<40x32xf32>
    %291 = arith.addf %250, %290 : vector<40x32xf32>
    %c7_i32_76 = arith.constant 7 : i32
    %292 = arith.index_cast %c7_i32_76 : i32 to index
    %c0_77 = arith.constant 0 : index
    %c0_78 = arith.constant 0 : index
    %293 = vector.load %arg1[%292, %c0_77, %c0_78] : memref<8x40x16xf32, #tpu.memory_space<vmem>>, vector<1x40x16xf32>
    %294 = vector.shape_cast %293 : vector<1x40x16xf32> to vector<40x16xf32>
    %c7_i32_79 = arith.constant 7 : i32
    %295 = arith.subi %c7_i32_79, %c7_i32_76 : i32
    %296 = arith.index_cast %295 : i32 to index
    %c0_80 = arith.constant 0 : index
    %c0_81 = arith.constant 0 : index
    %297 = vector.load %arg1[%296, %c0_80, %c0_81] : memref<8x40x16xf32, #tpu.memory_space<vmem>>, vector<1x40x16xf32>
    %298 = vector.shape_cast %297 : vector<1x40x16xf32> to vector<40x16xf32>
    %299 = tpu.concatenate %294, %298 in 1 : vector<40x16xf32>, vector<40x16xf32> -> vector<40x32xf32>
    %cst_82 = arith.constant dense<0.000000e+00> : vector<40x96xf32>
    %300 = tpu.matmul %299, %0, %cst_82 {dimension_numbers = #tpu.dot_dimension_numbers<[1], [0], [0], [1], [0, 0, 1, 1], [], []>} : vector<40x32xf32>, vector<32x96xf32>, vector<40x96xf32> -> vector<40x96xf32>
    %301 = vector.broadcast %2 : vector<1x96xf32> to vector<40x96xf32>
    %302 = arith.addf %300, %301 : vector<40x96xf32>
    %cst_83 = arith.constant dense<0.000000e+00> : vector<40x96xf32>
    %303 = tpu.matmul %290, %1, %cst_83 {dimension_numbers = #tpu.dot_dimension_numbers<[1], [0], [0], [1], [0, 0, 1, 1], [], []>} : vector<40x32xf32>, vector<32x96xf32>, vector<40x96xf32> -> vector<40x96xf32>
    %304 = vector.extract_strided_slice %302 {offsets = [0, 0], sizes = [40, 32], strides = [1, 1]} : vector<40x96xf32> to vector<40x32xf32>
    %305 = vector.extract_strided_slice %303 {offsets = [0, 0], sizes = [40, 32], strides = [1, 1]} : vector<40x96xf32> to vector<40x32xf32>
    %306 = arith.addf %304, %305 : vector<40x32xf32>
    %307 = arith.negf %306 : vector<40x32xf32>
    %308 = math.exp %307 : vector<40x32xf32>
    %cst_84 = arith.constant 1.000000e+00 : f32
    %309 = vector.broadcast %cst_84 : f32 to vector<40x32xf32>
    %310 = arith.addf %309, %308 : vector<40x32xf32>
    %311 = arith.divf %309, %310 : vector<40x32xf32>
    %312 = vector.extract_strided_slice %302 {offsets = [0, 32], sizes = [40, 32], strides = [1, 1]} : vector<40x96xf32> to vector<40x32xf32>
    %313 = vector.extract_strided_slice %303 {offsets = [0, 32], sizes = [40, 32], strides = [1, 1]} : vector<40x96xf32> to vector<40x32xf32>
    %314 = arith.addf %312, %313 : vector<40x32xf32>
    %315 = arith.negf %314 : vector<40x32xf32>
    %316 = math.exp %315 : vector<40x32xf32>
    %cst_85 = arith.constant 1.000000e+00 : f32
    %317 = vector.broadcast %cst_85 : f32 to vector<40x32xf32>
    %318 = arith.addf %317, %316 : vector<40x32xf32>
    %319 = arith.divf %317, %318 : vector<40x32xf32>
    %320 = vector.extract_strided_slice %302 {offsets = [0, 64], sizes = [40, 32], strides = [1, 1]} : vector<40x96xf32> to vector<40x32xf32>
    %321 = vector.extract_strided_slice %303 {offsets = [0, 64], sizes = [40, 32], strides = [1, 1]} : vector<40x96xf32> to vector<40x32xf32>
    %322 = vector.broadcast %3 : vector<1x32xf32> to vector<40x32xf32>
    %323 = arith.addf %321, %322 : vector<40x32xf32>
    %324 = arith.mulf %311, %323 : vector<40x32xf32>
    %325 = arith.addf %320, %324 : vector<40x32xf32>
    %326 = math.tanh %325 : vector<40x32xf32>
    %cst_86 = arith.constant 1.000000e+00 : f32
    %327 = vector.broadcast %cst_86 : f32 to vector<40x32xf32>
    %328 = arith.subf %327, %319 : vector<40x32xf32>
    %329 = arith.mulf %328, %326 : vector<40x32xf32>
    %330 = arith.mulf %319, %290 : vector<40x32xf32>
    %331 = arith.addf %329, %330 : vector<40x32xf32>
    %332 = arith.addf %291, %331 : vector<40x32xf32>
    %c8_i32 = arith.constant 8 : i32
    %c0_87 = arith.constant 0 : index
    %c0_88 = arith.constant 0 : index
    %333 = vector.load %arg6[%c0_87, %c0_88] : memref<40x32xf32, #tpu.memory_space<vmem>>, vector<40x32xf32>
    tpu.vector_store %arg6[%c0_87, %c0_88], %332 {strides = array<i32>} : memref<40x32xf32, #tpu.memory_space<vmem>>, vector<40x32xf32>,
    return
  }
  func.func @transform_0(%arg0: i32) -> (i32, i32, i32) {
    %c0_i32 = arith.constant 0 : i32
    %c0_i32_0 = arith.constant 0 : i32
    %c0_i32_1 = arith.constant 0 : i32
    %c0_i32_2 = arith.constant 0 : i32
    return %c0_i32, %c0_i32_0, %c0_i32_1 : i32, i32, i32
  }
  func.func @transform_1(%arg0: i32) -> (i32, i32) {
    %c0_i32 = arith.constant 0 : i32
    %c0_i32_0 = arith.constant 0 : i32
    %c0_i32_1 = arith.constant 0 : i32
    return %c0_i32, %c0_i32_0 : i32, i32
  }
  func.func @transform_2(%arg0: i32) -> (i32, i32) {
    %c0_i32 = arith.constant 0 : i32
    %c0_i32_0 = arith.constant 0 : i32
    %c0_i32_1 = arith.constant 0 : i32
    return %c0_i32, %c0_i32_0 : i32, i32
  }
  func.func @transform_3(%arg0: i32) -> (i32, i32) {
    %c0_i32 = arith.constant 0 : i32
    %c0_i32_0 = arith.constant 0 : i32
    %c0_i32_1 = arith.constant 0 : i32
    return %c0_i32, %c0_i32_0 : i32, i32
  }
  func.func @transform_4(%arg0: i32) -> (i32, i32) {
    %c0_i32 = arith.constant 0 : i32
    %c0_i32_0 = arith.constant 0 : i32
    %c0_i32_1 = arith.constant 0 : i32
    return %c0_i32, %c0_i32_0 : i32, i32
  }
  func.func @transform_5(%arg0: i32) -> (i32, i32) {
    %c0_i32 = arith.constant 0 : i32
    %c0_i32_0 = arith.constant 0 : i32
    %c0_i32_1 = arith.constant 0 : i32
    return %c0_i32, %c0_i32_0 : i32, i32
  }
}

</mosaic_0001>

<bundles_post_ra>
// kernel: tpu_custom_call.1
= control target key start
LH: loop header
LB: loop body
LE: loop exit
PB: predicated region body
PF: predicated region fallthrough
CT: control target
= control target key end

     0   :  { %v4218_v1 = vmov 0.0|0.0   ;;  %vm4219_vm0 = vmmov 0   ;;  %v4220_v3 = vmov 0.0   ;;  %s4221_s22 = smov 16   ;;  %vm61_vm1 = vcmask 130048   ;;  %s4223_s8 = smov 96   ;;  %s5404_s0 = inlined_call_operand.vmem [shape: f32[8,40,16], index: 0, kind: input, shape index: {}]   ;;  %s5405_s2 = inlined_call_operand.vmem [shape: f32[32,96], index: 2, kind: input, shape index: {}]   ;;  %s5406_s1 = inlined_call_operand.vmem [shape: f32[32,96], index: 1, kind: input, shape index: {}]   ;;  %s5407_s4 = inlined_call_operand.vmem [shape: f32[1,32], index: 4, kind: input, shape index: {}]   ;;  %s5408_s3 = inlined_call_operand.vmem [shape: f32[1,96], index: 3, kind: input, shape index: {}]   ;;  %s5409_s5 = inlined_call_operand.vmem [shape: f32[40,32], index: 5, kind: output, shape index: {}]  }
   0x1   :  { %v3180_v0 = vld [vmem:[%s5404_s0 + $0x118] sm:$0xff]  ;;  %3850 = vmatprep.subr.bf16.mxu1 %v4218_v1  ;;  %v24_v2 = vld [vmem:[%s5405_s2] sm:$0xff]  ;;  %3507 = vmatprep.mubr.msk.f32.mxu1 %vm4219_vm0, %v4220_v3  ;;  %v25_v4 = vld [vmem:[%s5405_s2 + $0x8] sm:$0xff]  ;;  %vm73_vm2 = vcmask 261120  }
   0x2   :  { %46 = vrot.lane.b32.xlu0 %v3180_v0, %s4221_s22  ;;  %v3182_v5 = vld [vmem:[%s5404_s0 + $0x128] sm:$0xff]  ;;  %v26_v6 = vld [vmem:[%s5405_s2 + $0x10] sm:$0xff]  ;;  %3844 = vmatprep.subr.bf16.mxu0 %v4218_v1  ;;  %v3181_v7 = vld [vmem:[%s5404_s0 + $0x120] sm:$0xff]  ;;  %v4277_v8 = vpack.c.bf16 %v25_v4, %v24_v2 }
   0x3   :  { %50 = vrot.lane.b32.xlu1 %v3182_v5, %s4221_s22  ;;  %v27_v9 = vld [vmem:[%s5405_s2 + $0x18] sm:$0xff]  ;;  %v3183_v10 = vld [vmem:[%s5404_s0 + $0x130] sm:$0xff]  ;;  %3484 = vmatprep.mubr.msk.f32.mxu0 %vm4219_vm0, %v4220_v3  ;;  %v20_v11 = vld [vmem:[%s5406_s1] sm:$0xff] }
   0x4   :  { %v21_v12 = vld [vmem:[%s5406_s1 + $0x8] sm:$0xff]  ;;  %v22_v13 = vld [vmem:[%s5406_s1 + $0x10] sm:$0xff]  ;;  %3852 = vmatpush3.bf16.msra.mxu1 %v4277_v8  ;;  %v4298_v14 = vpack.c.bf16 %v27_v9, %v26_v6  ;;  %v23_v16 = vld [vmem:[%s5406_s1 + $0x18] sm:$0xff]  ;;  %s4222_s1 = smov 64  }
   0x5   :  { %v4300_v15 = vpack.c.bf16 %v21_v12, %v20_v11  ;;  %3853 = vmatprep.subr.bf16.mxu1 %v4218_v1  ;;  %v3184_v17 = vld [vmem:[%s5404_s0 + $0x138] sm:$0xff]  ;;  %v4312_v18 = vpack.c.bf16 %v23_v16, %v22_v13  ;;  %v3196_v19 = vld [vmem:[%s5407_s4] ss:$0 sm:$0xff]  ;;  %v31_v23 = vld [vmem:[%s5404_s0 + $0x8] sm:$0xff] }
   0x6   :  { %48 = vrot.lane.b32.xlu0 %v3181_v7, %s4221_s22  ;;  %v30_v20 = vld [vmem:[%s5404_s0] sm:$0xff]  ;;  %v32_v26 = vld [vmem:[%s5404_s0 + $0x10] sm:$0xff]  ;;  %v33_v30 = vld [vmem:[%s5404_s0 + $0x18] sm:$0xff] }
   0x7   :  { %52 = vrot.lane.b32.xlu1 %v3183_v10, %s4221_s22  ;;  %3846 = vmatpush3.bf16.msra.mxu0 %v4300_v15  ;;  %v34_v33 = vld [vmem:[%s5404_s0 + $0x20] sm:$0xff] }
   0x8   :  { %3847 = vmatprep.subr.bf16.mxu0 %v4218_v1  ;;  %3855 = vmatpush3.bf16.msra.mxu1 %v4298_v14  ;;  %v4397_v51 = vld [vmem:[%s5408_s3] ss:$0 sm:$0xff] }
   0x9   :  { %3862 = vmatprep.subr.bf16.mxu1 %v4218_v1 }
   0xa   :  { %54 = vrot.lane.b32.xlu0 %v3184_v17, %s4221_s22 }
   0xb   :  { %3849 = vmatpush3.bf16.msra.mxu0 %v4312_v18  ;;  %312 = vrot.lane.b32.xlu1 %v3196_v19, %s4222_s1 }
   0xc   :  { %3508 = vmatmul.mubr.f32.vlgmr.msra.gmra.mrb[0].mxu1 %v4220_v3  ;;  %3856 = vmatprep.subr.bf16.mxu0 %v4218_v1 }
   0xd   :  { %3510 = vmatprep.mubr.msk.f32.mxu1 %vm4219_vm0, %v4220_v3  ;;  %3864 = vmatpush3.bf16.msra.mxu1 %v4277_v8 }
   0xe   :  { %3865 = vmatprep.subr.bf16.mxu1 %v4218_v1 }
  0x10   :  { %3511 = vmatmul.mubr.f32.gmra.mrb[2].mxu1 %v4220_v3 }
  0x11   :  { %3513 = vmatprep.mubr.msk.f32.mxu1 %vm4219_vm0, %v4220_v3  ;;  %3867 = vmatpush3.bf16.msra.mxu1 %v4298_v14 }
  0x12   :  { %3874 = vmatprep.subr.bf16.mxu1 %v4218_v1 }
  0x14   :  { %3514 = vmatmul.mubr.f32.gmra.mrb[4].mxu1 %v4220_v3 }
  0x15   :  { %3516 = vmatprep.mubr.msk.f32.mxu1 %vm4219_vm0, %v4220_v3 }
  0x18   :  { %3517 = vmatmul.mubr.f32.gmra.mrb[6].mxu1 %v4220_v3 }
  0x19   :  { %3519 = vmatprep.mubr.msk.f32.mxu1 %vm4219_vm0, %v4220_v3 }
  0x1c   :  { %3520 = vmatmul.mubr.f32.gmra.mrb[8].mxu1 %v4220_v3 }
  0x1d   :  { %3553 = vmatprep.mubr.msk.f32.mxu1 %vm4219_vm0, %v4220_v3 }
  0x74   :  { %v47_v21 = vpop.permute.xlu0 %46 }
  0x75   :  { %v62_v22 = vsel %vm61_vm1, %v30_v20, %v47_v21  ;;  %v51_v24 = vpop.permute.xlu1 %50 }
  0x76   :  { %3485 = vmatmul.mubr.msk.f32.vlgmr.msra.gmra.mrb[0].mxu0 %vm73_vm2, %v62_v22  ;;  %v64_v28 = vsel %vm61_vm1, %v32_v26, %v51_v24 }
  0x77   :  { %3487 = vmatprep.mubr.msk.f32.mxu0 %vm4219_vm0, %v4220_v3  ;;  %3858 = vmatpush3.bf16.msra.mxu0 %v4300_v15 }
  0x78   :  { %v49_v25 = vpop.permute.xlu0 %48  ;;  %3859 = vmatprep.subr.bf16.mxu0 %v4218_v1 }
  0x79   :  { %v63_v27 = vsel %vm61_vm1, %v31_v23, %v49_v25  ;;  %v53_v29 = vpop.permute.xlu1 %52 }
  0x7a   :  { %3488 = vmatmul.mubr.msk.f32.gmra.mrb[2].mxu0 %vm73_vm2, %v63_v27  ;;  %v65_v31 = vsel %vm61_vm1, %v33_v30, %v53_v29 }
  0x7b   :  { %3490 = vmatprep.mubr.msk.f32.mxu0 %vm4219_vm0, %v4220_v3  ;;  %3861 = vmatpush3.bf16.msra.mxu0 %v4312_v18 }
  0x7c   :  { %3868 = vmatprep.subr.bf16.mxu0 %v4218_v1  ;;  %v55_v32 = vpop.permute.xlu0 %54 }
  0x7d   :  { %v66_v34 = vsel %vm61_vm1, %v34_v33, %v55_v32  ;;  %v4382_v35 = vpop.permute.xlu1 %312 }
  0x7e   :  { %3491 = vmatmul.mubr.msk.f32.gmra.mrb[4].mxu0 %vm73_vm2, %v64_v28 }
  0x7f   :  { %3493 = vmatprep.mubr.msk.f32.mxu0 %vm4219_vm0, %v4220_v3 }
  0x82   :  { %3494 = vmatmul.mubr.msk.f32.gmra.mrb[6].mxu0 %vm73_vm2, %v65_v31 }
  0x83   :  { %3496 = vmatprep.mubr.msk.f32.mxu0 %vm4219_vm0, %v4220_v3 }
  0x86   :  { %3497 = vmatmul.mubr.msk.f32.gmra.mrb[8].mxu0 %vm73_vm2, %v66_v34 }
  0x87   :  { %3530 = vmatprep.mubr.msk.f32.mxu0 %vm4219_vm0, %v4220_v3 }
  0xdf   :  { %v248_v36 = vpop.f32.mrb[0].mxu1 }
  0xe0   :  { %v3509_v37 = vpop.f32.mrb[1].mxu1  ;;  %v315_v38 = vadd.f32 %v4382_v35, %v248_v36 }
  0xe2   :  { %325 = vrot.lane.b32.xlu0 %v315_v38, %s4222_s1 }
  0xe3   :  { %v253_v39 = vpop.f32.mrb[2].mxu1 }
  0xe4   :  { %v316_v40 = vadd.f32 %v4382_v35, %v253_v39  ;;  %v3512_v41 = vpop.f32.mrb[3].mxu1 }
  0xe6   :  { %327 = vrot.lane.b32.xlu1 %v316_v40, %s4222_s1 }
  0xe7   :  { %v258_v42 = vpop.f32.mrb[4].mxu1 }
  0xe8   :  { %v317_v43 = vadd.f32 %v4382_v35, %v258_v42  ;;  %v3515_v44 = vpop.f32.mrb[5].mxu1 }
  0xea   :  { %329 = vrot.lane.b32.xlu0 %v317_v43, %s4222_s1 }
  0xeb   :  { %v263_v45 = vpop.f32.mrb[6].mxu1 }
  0xec   :  { %v318_v46 = vadd.f32 %v4382_v35, %v263_v45  ;;  %v3518_v47 = vpop.f32.mrb[7].mxu1 }
  0xee   :  { %331 = vrot.lane.b32.xlu1 %v318_v46, %s4222_s1 }
  0xef   :  { %v268_v48 = vpop.f32.mrb[8].mxu1 }
  0xf0   :  { %v319_v49 = vadd.f32 %v4382_v35, %v268_v48  ;;  %v3521_v50 = vpop.f32.mrb[9].mxu1 }
  0xf2   :  { %333 = vrot.lane.b32.xlu0 %v319_v49, %s4222_s1 }
 0x149   :  { %v155_v52 = vpop.f32.mrb[0].mxu0 }
 0x14a   :  { %v4400_v53 = vadd.f32 %v4397_v51, %v155_v52  ;;  %v3486_v54 = vpop.f32.mrb[1].mxu0 }
 0x14c   :  { %v272_v55 = vadd.f32 %v248_v36, %v4400_v53 }
 0x14d   :  { %v160_v56 = vpop.f32.mrb[2].mxu0 }
 0x14e   :  { %v3191_v57 = vmul.f32 -1.442695, %v272_v55  ;;  %v4404_v58 = vadd.f32 %v4397_v51, %v160_v56  ;;  %v3489_v59 = vpop.f32.mrb[3].mxu0 }
 0x150   :  { %3946 = vpow2.f32 %v3191_v57  ;;  %v273_v60 = vadd.f32 %v253_v39, %v4404_v58 }
 0x151   :  { %v165_v61 = vpop.f32.mrb[4].mxu0 }
 0x152   :  { %v3192_v62 = vmul.f32 -1.442695, %v273_v60  ;;  %v166_v63 = vadd.f32 %v4397_v51, %v165_v61  ;;  %v3492_v0 = vpop.f32.mrb[5].mxu0 }
 0x154   :  { %3948 = vpow2.f32 %v3192_v62  ;;  %v274_v2 = vadd.f32 %v258_v42, %v166_v63  ;;  %v326_v28 = vpop.permute.xlu0 %325 }
 0x155   :  { %v170_v4 = vpop.f32.mrb[6].mxu0 }
 0x156   :  { %v3193_v5 = vmul.f32 -1.442695, %v274_v2  ;;  %v171_v6 = vadd.f32 %v4397_v51, %v170_v4  ;;  %v3495_v7 = vpop.f32.mrb[7].mxu0 }
 0x158   :  { %3950 = vpow2.f32 %v3193_v5  ;;  %v275_v9 = vadd.f32 %v263_v45, %v171_v6  ;;  %v328_v33 = vpop.permute.xlu1 %327 }
 0x159   :  { %v175_v10 = vpop.f32.mrb[8].mxu0 }
 0x15a   :  { %v3947_v11 = vpop.eup %3946  ;;  %v3194_v12 = vmul.f32 -1.442695, %v275_v9  ;;  %v176_v13 = vadd.f32 %v4397_v51, %v175_v10  ;;  %v3498_v16 = vpop.f32.mrb[9].mxu0 }
 0x15b   :  { %v292_v17 = vadd.f32 1.0, %v3947_v11 }
 0x15c   :  { %3952 = vpow2.f32 %v3194_v12  ;;  %v276_v19 = vadd.f32 %v268_v48, %v176_v13  ;;  %v330_v37 = vpop.permute.xlu0 %329 }
 0x15d   :  { %3954 = vrcp.f32 %v292_v17 }
 0x15e   :  { %v3949_v20 = vpop.eup %3948  ;;  %v3195_v21 = vmul.f32 -1.442695, %v276_v19 }
 0x15f   :  { %v293_v22 = vadd.f32 1.0, %v3949_v20 }
 0x160   :  { %3956 = vpow2.f32 %v3195_v21  ;;  %v332_v40 = vpop.permute.xlu1 %331 }
 0x161   :  { %3958 = vrcp.f32 %v293_v22 }
 0x162   :  { %v3951_v23 = vpop.eup %3950 }
 0x163   :  { %v294_v24 = vadd.f32 1.0, %v3951_v23 }
 0x164   :  { %v334_v43 = vpop.permute.xlu0 %333 }
 0x165   :  { %3960 = vrcp.f32 %v294_v24 }
 0x166   :  { %v3953_v25 = vpop.eup %3952 }
 0x167   :  { %v3955_v26 = vpop.eup %3954  ;;  %v295_v27 = vadd.f32 1.0, %v3953_v25 }
 0x168   :  { %v340_v29 = vmul.f32 %v3955_v26, %v326_v28  ;;  %v375_v61 = vsub.f32 1.0, %v3955_v26 }
 0x169   :  { %3962 = vrcp.f32 %v295_v27  ;;  %v3202_v27 = vld [vmem:[%s5404_s0 + $0xf0] sm:$0xff] }
 0x16a   :  { %v3957_v30 = vpop.eup %3956  ;;  %350 = vrot.lane.b32.xlu1 %v340_v29, %s4222_s1  ;;  %v3203_v29 = vld [vmem:[%s5404_s0 + $0xf8] sm:$0xff] }
 0x16b   :  { %v3959_v31 = vpop.eup %3958  ;;  %v296_v32 = vadd.f32 1.0, %v3957_v30  ;;  %v3204_v30 = vld [vmem:[%s5404_s0 + $0x100] sm:$0xff] }
 0x16c   :  { %v341_v34 = vmul.f32 %v3959_v31, %v328_v33  ;;  %v376_v4 = vsub.f32 1.0, %v3959_v31 }
 0x16d   :  { %3964 = vrcp.f32 %v296_v32  ;;  %v3206_v32 = vld [vmem:[%s5404_s0 + $0x110] sm:$0xff] }
 0x16e   :  { %352 = vrot.lane.b32.xlu0 %v341_v34, %s4222_s1 }
 0x16f   :  { %v3961_v36 = vpop.eup %3960 }
 0x170   :  { %v342_v38 = vmul.f32 %v3961_v36, %v330_v37  ;;  %v377_v10 = vsub.f32 1.0, %v3961_v36  ;;  %v407_v12 = vmul.f32 0.0, %v3961_v36 }
 0x172   :  { %354 = vrot.lane.b32.xlu1 %v342_v38, %s4222_s1  ;;  %v3197_v38 = vld [vmem:[%s5404_s0 + $0x28] sm:$0xff] }
 0x173   :  { %v3963_v39 = vpop.eup %3962 }
 0x174   :  { %v343_v41 = vmul.f32 %v3963_v39, %v332_v40  ;;  %v378_v17 = vsub.f32 1.0, %v3963_v39  ;;  %v408_v20 = vmul.f32 0.0, %v3963_v39 }
 0x176   :  { %356 = vrot.lane.b32.xlu0 %v343_v41, %s4222_s1 }
 0x177   :  { %v3965_v42 = vpop.eup %3964 }
 0x178   :  { %v344_v44 = vmul.f32 %v3965_v42, %v334_v43  ;;  %v379_v23 = vsub.f32 1.0, %v3965_v42  ;;  %v409_v25 = vmul.f32 0.0, %v3965_v42  ;;  %v3198_v42 = vld [vmem:[%s5404_s0 + $0x30] sm:$0xff] }
 0x17a   :  { %358 = vrot.lane.b32.xlu1 %v344_v44, %s4222_s1  ;;  %v3199_v44 = vld [vmem:[%s5404_s0 + $0x38] sm:$0xff] }
 0x1dc   :  { %v351_v45 = vpop.permute.xlu1 %350 }
 0x1dd   :  { %v365_v46 = vadd.f32 %v351_v45, %v4400_v53 }
 0x1df   :  { %3966 = vtanh.f32 %v365_v46 }
 0x1e0   :  { %v353_v47 = vpop.permute.xlu0 %352 }
 0x1e1   :  { %v366_v48 = vadd.f32 %v353_v47, %v4404_v58 }
 0x1e3   :  { %3968 = vtanh.f32 %v366_v48  ;;  %v3200_v48 = vld [vmem:[%s5404_s0 + $0x40] sm:$0xff] }
 0x1e4   :  { %v355_v49 = vpop.permute.xlu1 %354 }
 0x1e5   :  { %v367_v50 = vadd.f32 %v355_v49, %v166_v63  ;;  %v405_v63 = vmul.f32 0.0, %v3955_v26 }
 0x1e7   :  { %3970 = vtanh.f32 %v367_v50 }
 0x1e8   :  { %v357_v52 = vpop.permute.xlu0 %356 }
 0x1e9   :  { %v3967_v54 = vpop.eup %3966  ;;  %v368_v55 = vadd.f32 %v357_v52, %v171_v6  ;;  %v406_v6 = vmul.f32 0.0, %v3959_v31  ;;  %v3205_v31 = vld [vmem:[%s5404_s0 + $0x108] sm:$0xff] }
 0x1ea   :  { %385 = vrot.lane.b32.xlu0 %v3967_v54, %s4223_s8  ;;  %v3201_v52 = vld [vmem:[%s5404_s0 + $0x48] sm:$0xff] }
 0x1eb   :  { %3972 = vtanh.f32 %v368_v55 }
 0x1ec   :  { %v359_v56 = vpop.permute.xlu1 %358 }
 0x1ed   :  { %v3969_v57 = vpop.eup %3968  ;;  %v369_v59 = vadd.f32 %v359_v56, %v176_v13 }
 0x1ee   :  { %387 = vrot.lane.b32.xlu1 %v3969_v57, %s4223_s8 }
 0x1ef   :  { %3974 = vtanh.f32 %v369_v59 }
 0x1f1   :  { %v3971_v53 = vpop.eup %3970 }
 0x1f2   :  { %389 = vrot.lane.b32.xlu0 %v3971_v53, %s4223_s8 }
 0x1f5   :  { %v3973_v58 = vpop.eup %3972 }
 0x1f6   :  { %391 = vrot.lane.b32.xlu1 %v3973_v58, %s4223_s8 }
 0x1f9   :  { %v3975_v60 = vpop.eup %3974 }
 0x1fa   :  { %393 = vrot.lane.b32.xlu0 %v3975_v60, %s4223_s8 }
 0x25c   :  { %v386_v62 = vpop.permute.xlu0 %385 }
 0x25d   :  { %v400_v0 = vmul.f32 %v386_v62, %v375_v61 }
 0x25f   :  { %v4422_v2 = vadd.f32 %v405_v63, %v400_v0 }
 0x260   :  { %v388_v5 = vpop.permute.xlu1 %387 }
 0x261   :  { %v401_v7 = vmul.f32 %v388_v5, %v376_v4  ;;  %567 = vrot.lane.b32.xlu1 %v4422_v2, %s4223_s8 }
 0x263   :  { %v4426_v9 = vadd.f32 %v406_v6, %v401_v7 }
 0x264   :  { %v390_v11 = vpop.permute.xlu0 %389 }
 0x265   :  { %v402_v13 = vmul.f32 %v390_v11, %v377_v10  ;;  %569 = vrot.lane.b32.xlu0 %v4426_v9, %s4223_s8 }
 0x267   :  { %v4430_v16 = vadd.f32 %v407_v12, %v402_v13 }
 0x268   :  { %v392_v19 = vpop.permute.xlu1 %391 }
 0x269   :  { %v403_v21 = vmul.f32 %v392_v19, %v378_v17  ;;  %571 = vrot.lane.b32.xlu1 %v4430_v16, %s4223_s8 }
 0x26b   :  { %v4434_v22 = vadd.f32 %v408_v20, %v403_v21 }
 0x26c   :  { %v394_v24 = vpop.permute.xlu0 %393 }
 0x26d   :  { %v404_v26 = vmul.f32 %v394_v24, %v379_v23  ;;  %573 = vrot.lane.b32.xlu0 %v4434_v22, %s4223_s8 }
 0x26f   :  { %v4441_v28 = vadd.f32 %v409_v25, %v404_v26 }
 0x271   :  { %575 = vrot.lane.b32.xlu1 %v4441_v28, %s4223_s8  ;;  %437 = vrot.lane.b32.xlu0 %v3202_v27, %s4221_s22 }
 0x275   :  { %439 = vrot.lane.b32.xlu1 %v3203_v29, %s4221_s22  ;;  %441 = vrot.lane.b32.xlu0 %v3204_v30, %s4221_s22 }
 0x279   :  { %443 = vrot.lane.b32.xlu1 %v3205_v31, %s4221_s22  ;;  %445 = vrot.lane.b32.xlu0 %v3206_v32, %s4221_s22 }
 0x2d3   :  { %v568_v33 = vpop.permute.xlu1 %567 }
 0x2d4   :  { %3554 = vmatmul.mubr.msk.f32.vlgmr.msra.gmra.mrb[10].mxu1 %vm73_vm2, %v568_v33 }
 0x2d5   :  { %3556 = vmatprep.mubr.msk.f32.mxu1 %vm4219_vm0, %v4220_v3  ;;  %3876 = vmatpush3.bf16.msra.mxu1 %v4277_v8 }
 0x2d6   :  { %3877 = vmatprep.subr.bf16.mxu1 %v4218_v1 }
 0x2d7   :  { %v570_v34 = vpop.permute.xlu0 %569 }
 0x2d8   :  { %3557 = vmatmul.mubr.msk.f32.gmra.mrb[12].mxu1 %vm73_vm2, %v570_v34 }
 0x2d9   :  { %3559 = vmatprep.mubr.msk.f32.mxu1 %vm4219_vm0, %v4220_v3  ;;  %3879 = vmatpush3.bf16.msra.mxu1 %v4298_v14 }
 0x2da   :  { %3886 = vmatprep.subr.bf16.mxu1 %v4218_v1 }
 0x2db   :  { %v572_v36 = vpop.permute.xlu1 %571 }
 0x2dc   :  { %3560 = vmatmul.mubr.msk.f32.gmra.mrb[14].mxu1 %vm73_vm2, %v572_v36 }
 0x2dd   :  { %3562 = vmatprep.mubr.msk.f32.mxu1 %vm4219_vm0, %v4220_v3 }
 0x2df   :  { %v574_v37 = vpop.permute.xlu0 %573 }
 0x2e0   :  { %3563 = vmatmul.mubr.msk.f32.gmra.mrb[16].mxu1 %vm73_vm2, %v574_v37 }
 0x2e1   :  { %3565 = vmatprep.mubr.msk.f32.mxu1 %vm4219_vm0, %v4220_v3 }
 0x2e3   :  { %v438_v39 = vpop.permute.xlu0 %437  ;;  %v576_v40 = vpop.permute.xlu1 %575 }
 0x2e4   :  { %v452_v41 = vsel %vm61_vm1, %v3197_v38, %v438_v39  ;;  %3566 = vmatmul.mubr.msk.f32.gmra.mrb[18].mxu1 %vm73_vm2, %v576_v40 }
 0x2e5   :  { %3531 = vmatmul.mubr.msk.f32.vlgmr.msra.gmra.mrb[10].mxu0 %vm73_vm2, %v452_v41  ;;  %3599 = vmatprep.mubr.msk.f32.mxu1 %vm4219_vm0, %v4220_v3 }
 0x2e6   :  { %3533 = vmatprep.mubr.msk.f32.mxu0 %vm4219_vm0, %v4220_v3  ;;  %3870 = vmatpush3.bf16.msra.mxu0 %v4300_v15 }
 0x2e7   :  { %v440_v43 = vpop.permute.xlu1 %439  ;;  %v442_v45 = vpop.permute.xlu0 %441  ;;  %3871 = vmatprep.subr.bf16.mxu0 %v4218_v1 }
 0x2e8   :  { %v453_v46 = vsel %vm61_vm1, %v3198_v42, %v440_v43  ;;  %v454_v47 = vsel %vm61_vm1, %v3199_v44, %v442_v45 }
 0x2e9   :  { %3534 = vmatmul.mubr.msk.f32.gmra.mrb[12].mxu0 %vm73_vm2, %v453_v46 }
 0x2ea   :  { %3536 = vmatprep.mubr.msk.f32.mxu0 %vm4219_vm0, %v4220_v3  ;;  %3873 = vmatpush3.bf16.msra.mxu0 %v4312_v18 }
 0x2eb   :  { %v444_v49 = vpop.permute.xlu1 %443  ;;  %3880 = vmatprep.subr.bf16.mxu0 %v4218_v1  ;;  %v446_v54 = vpop.permute.xlu0 %445 }
 0x2ec   :  { %v455_v50 = vsel %vm61_vm1, %v3200_v48, %v444_v49  ;;  %v456_v55 = vsel %vm61_vm1, %v3201_v52, %v446_v54 }
 0x2ed   :  { %3537 = vmatmul.mubr.msk.f32.gmra.mrb[14].mxu0 %vm73_vm2, %v454_v47 }
 0x2ee   :  { %3539 = vmatprep.mubr.msk.f32.mxu0 %vm4219_vm0, %v4220_v3 }
 0x2f1   :  { %3540 = vmatmul.mubr.msk.f32.gmra.mrb[16].mxu0 %vm73_vm2, %v455_v50 }
 0x2f2   :  { %3542 = vmatprep.mubr.msk.f32.mxu0 %vm4219_vm0, %v4220_v3 }
 0x2f5   :  { %3543 = vmatmul.mubr.msk.f32.gmra.mrb[18].mxu0 %vm73_vm2, %v456_v55 }
 0x2f6   :  { %3576 = vmatprep.mubr.msk.f32.mxu0 %vm4219_vm0, %v4220_v3 }
 0x3a7   :  { %v653_v56 = vpop.f32.mrb[10].mxu1 }
 0x3a8   :  { %v712_v57 = vadd.f32 %v653_v56, %v4382_v35  ;;  %v3555_v59 = vpop.f32.mrb[11].mxu1 }
 0x3aa   :  { %722 = vrot.lane.b32.xlu1 %v712_v57, %s4222_s1 }
 0x3ab   :  { %v658_v53 = vpop.f32.mrb[12].mxu1 }
 0x3ac   :  { %v713_v58 = vadd.f32 %v658_v53, %v4382_v35  ;;  %v3558_v60 = vpop.f32.mrb[13].mxu1 }
 0x3ae   :  { %724 = vrot.lane.b32.xlu0 %v713_v58, %s4222_s1 }
 0x3af   :  { %v663_v61 = vpop.f32.mrb[14].mxu1 }
 0x3b0   :  { %v714_v62 = vadd.f32 %v663_v61, %v4382_v35  ;;  %v3561_v63 = vpop.f32.mrb[15].mxu1 }
 0x3b2   :  { %726 = vrot.lane.b32.xlu1 %v714_v62, %s4222_s1 }
 0x3b3   :  { %v668_v0 = vpop.f32.mrb[16].mxu1 }
 0x3b4   :  { %v715_v4 = vadd.f32 %v668_v0, %v4382_v35  ;;  %v3564_v5 = vpop.f32.mrb[17].mxu1 }
 0x3b6   :  { %728 = vrot.lane.b32.xlu0 %v715_v4, %s4222_s1 }
 0x3b7   :  { %v673_v6 = vpop.f32.mrb[18].mxu1 }
 0x3b8   :  { %v716_v7 = vadd.f32 %v673_v6, %v4382_v35  ;;  %v538_v10 = vpop.f32.mrb[10].mxu0  ;;  %v3567_v11 = vpop.f32.mrb[19].mxu1 }
 0x3b9   :  { %v3532_v12 = vpop.f32.mrb[11].mxu0  ;;  %v539_v26 = vadd.f32 %v4397_v51, %v538_v10 }
 0x3ba   :  { %730 = vrot.lane.b32.xlu1 %v716_v7, %s4222_s1 }
 0x3bb   :  { %v677_v27 = vadd.f32 %v653_v56, %v539_v26 }
 0x3bc   :  { %v543_v13 = vpop.f32.mrb[12].mxu0 }
 0x3bd   :  { %v3535_v17 = vpop.f32.mrb[13].mxu0  ;;  %v544_v29 = vadd.f32 %v4397_v51, %v543_v13  ;;  %v3217_v30 = vmul.f32 -1.442695, %v677_v27 }
 0x3bf   :  { %v678_v31 = vadd.f32 %v658_v53, %v544_v29  ;;  %3976 = vpow2.f32 %v3217_v30 }
 0x3c0   :  { %v548_v19 = vpop.f32.mrb[14].mxu0 }
 0x3c1   :  { %v3538_v20 = vpop.f32.mrb[15].mxu0  ;;  %v549_v32 = vadd.f32 %v4397_v51, %v548_v19  ;;  %v3218_v33 = vmul.f32 -1.442695, %v678_v31 }
 0x3c3   :  { %v679_v34 = vadd.f32 %v663_v61, %v549_v32  ;;  %3978 = vpow2.f32 %v3218_v33 }
 0x3c4   :  { %v553_v21 = vpop.f32.mrb[16].mxu0 }
 0x3c5   :  { %v3541_v23 = vpop.f32.mrb[17].mxu0  ;;  %v554_v36 = vadd.f32 %v4397_v51, %v553_v21  ;;  %v3219_v37 = vmul.f32 -1.442695, %v679_v34 }
 0x3c7   :  { %v680_v38 = vadd.f32 %v668_v0, %v554_v36  ;;  %3980 = vpow2.f32 %v3219_v37 }
 0x3c8   :  { %v558_v24 = vpop.f32.mrb[18].mxu0 }
 0x3c9   :  { %v3544_v25 = vpop.f32.mrb[19].mxu0  ;;  %v559_v39 = vadd.f32 %v4397_v51, %v558_v24  ;;  %v3220_v40 = vmul.f32 -1.442695, %v680_v38  ;;  %v3977_v42 = vpop.eup %3976 }
 0x3ca   :  { %v697_v44 = vadd.f32 1.0, %v3977_v42 }
 0x3cb   :  { %v681_v41 = vadd.f32 %v673_v6, %v559_v39  ;;  %3982 = vpow2.f32 %v3220_v40 }
 0x3cd   :  { %v3221_v43 = vmul.f32 -1.442695, %v681_v41  ;;  %v3979_v45 = vpop.eup %3978 }
 0x3ce   :  { %v698_v46 = vadd.f32 1.0, %v3979_v45 }
 0x3cf   :  { %3984 = vpow2.f32 %v3221_v43 }
 0x3d0   :  { %3986 = vrcp.f32 %v697_v44 }
 0x3d1   :  { %v3981_v47 = vpop.eup %3980  ;;  %3988 = vrcp.f32 %v698_v46 }
 0x3d2   :  { %v699_v48 = vadd.f32 1.0, %v3981_v47 }
 0x3d4   :  { %3990 = vrcp.f32 %v699_v48 }
 0x3d5   :  { %v3983_v49 = vpop.eup %3982 }
 0x3d6   :  { %v700_v50 = vadd.f32 1.0, %v3983_v49 }
 0x3d8   :  { %3992 = vrcp.f32 %v700_v50 }
 0x3d9   :  { %v3985_v52 = vpop.eup %3984 }
 0x3da   :  { %v3987_v54 = vpop.eup %3986  ;;  %v701_v57 = vadd.f32 1.0, %v3985_v52 }
 0x3db   :  { %v3989_v59 = vpop.eup %3988  ;;  %v772_v31 = vsub.f32 1.0, %v3987_v54  ;;  %v802_v33 = vmul.f32 %v3987_v54, %v4422_v2 }
 0x3dc   :  { %3994 = vrcp.f32 %v701_v57  ;;  %v773_v37 = vsub.f32 1.0, %v3989_v59 }
 0x3de   :  { %v3991_v60 = vpop.eup %3990 }
 0x3df   :  { %v774_v42 = vsub.f32 1.0, %v3991_v60  ;;  %v804_v44 = vmul.f32 %v3991_v60, %v4430_v16 }
 0x3e2   :  { %v3993_v63 = vpop.eup %3992 }
 0x3e3   :  { %v775_v47 = vsub.f32 1.0, %v3993_v63  ;;  %v805_v49 = vmul.f32 %v3993_v63, %v4434_v22 }
 0x3e6   :  { %v3995_v5 = vpop.eup %3994 }
 0x41c   :  { %v723_v55 = vpop.permute.xlu1 %722 }
 0x41d   :  { %v737_v56 = vmul.f32 %v3987_v54, %v723_v55  ;;  %v776_v54 = vsub.f32 1.0, %v3995_v5 }
 0x41f   :  { %747 = vrot.lane.b32.xlu0 %v737_v56, %s4222_s1  ;;  %v806_v56 = vmul.f32 %v3995_v5, %v4441_v28 }
 0x420   :  { %v725_v53 = vpop.permute.xlu0 %724 }
 0x421   :  { %v738_v58 = vmul.f32 %v3989_v59, %v725_v53 }
 0x423   :  { %749 = vrot.lane.b32.xlu1 %v738_v58, %s4222_s1  ;;  %v3228_v58 = vld [vmem:[%s5404_s0 + $0xd0] sm:$0xff] }
 0x424   :  { %v727_v61 = vpop.permute.xlu1 %726 }
 0x425   :  { %v739_v62 = vmul.f32 %v3991_v60, %v727_v61  ;;  %v3229_v60 = vld [vmem:[%s5404_s0 + $0xd8] sm:$0xff]  ;;  %v3230_v61 = vld [vmem:[%s5404_s0 + $0xe0] sm:$0xff] }
 0x427   :  { %751 = vrot.lane.b32.xlu0 %v739_v62, %s4222_s1  ;;  %v3231_v62 = vld [vmem:[%s5404_s0 + $0xe8] sm:$0xff] }
 0x428   :  { %v729_v0 = vpop.permute.xlu0 %728 }
 0x429   :  { %v740_v4 = vmul.f32 %v3993_v63, %v729_v0 }
 0x42b   :  { %753 = vrot.lane.b32.xlu1 %v740_v4, %s4222_s1 }
 0x42c   :  { %v731_v6 = vpop.permute.xlu1 %730 }
 0x42d   :  { %v741_v7 = vmul.f32 %v3995_v5, %v731_v6  ;;  %v3222_v6 = vld [vmem:[%s5404_s0 + $0x50] sm:$0xff] }
 0x42f   :  { %755 = vrot.lane.b32.xlu0 %v741_v7, %s4222_s1 }
 0x491   :  { %v748_v10 = vpop.permute.xlu0 %747 }
 0x492   :  { %v762_v11 = vadd.f32 %v748_v10, %v539_v26 }
 0x494   :  { %3996 = vtanh.f32 %v762_v11 }
 0x495   :  { %v750_v12 = vpop.permute.xlu1 %749 }
 0x496   :  { %v763_v13 = vadd.f32 %v750_v12, %v544_v29  ;;  %v3223_v12 = vld [vmem:[%s5404_s0 + $0x58] sm:$0xff] }
 0x498   :  { %3998 = vtanh.f32 %v763_v13 }
 0x499   :  { %v752_v17 = vpop.permute.xlu0 %751 }
 0x49a   :  { %v764_v19 = vadd.f32 %v752_v17, %v549_v32  ;;  %v3224_v17 = vld [vmem:[%s5404_s0 + $0x60] sm:$0xff] }
 0x49c   :  { %4000 = vtanh.f32 %v764_v19 }
 0x49d   :  { %v754_v20 = vpop.permute.xlu1 %753 }
 0x49e   :  { %v3997_v21 = vpop.eup %3996  ;;  %v765_v23 = vadd.f32 %v754_v20, %v554_v36 }
 0x49f   :  { %782 = vrot.lane.b32.xlu1 %v3997_v21, %s4223_s8 }
 0x4a0   :  { %4002 = vtanh.f32 %v765_v23  ;;  %v3225_v23 = vld [vmem:[%s5404_s0 + $0x68] sm:$0xff] }
 0x4a1   :  { %v756_v24 = vpop.permute.xlu0 %755 }
 0x4a2   :  { %v3999_v25 = vpop.eup %3998  ;;  %v766_v27 = vadd.f32 %v756_v24, %v559_v39  ;;  %v803_v39 = vmul.f32 %v3989_v59, %v4426_v9  ;;  %v3227_v59 = vld [vmem:[%s5404_s0 + $0xc8] sm:$0xff] }
 0x4a3   :  { %784 = vrot.lane.b32.xlu0 %v3999_v25, %s4223_s8 }
 0x4a4   :  { %4004 = vtanh.f32 %v766_v27  ;;  %v3226_v27 = vld [vmem:[%s5404_s0 + $0x70] sm:$0xff] }
 0x4a6   :  { %v4001_v26 = vpop.eup %4000 }
 0x4a7   :  { %786 = vrot.lane.b32.xlu1 %v4001_v26, %s4223_s8 }
 0x4aa   :  { %v4003_v29 = vpop.eup %4002 }
 0x4ab   :  { %788 = vrot.lane.b32.xlu0 %v4003_v29, %s4223_s8 }
 0x4ae   :  { %v4005_v30 = vpop.eup %4004 }
 0x4af   :  { %790 = vrot.lane.b32.xlu1 %v4005_v30, %s4223_s8 }
 0x511   :  { %v783_v32 = vpop.permute.xlu1 %782 }
 0x512   :  { %v797_v34 = vmul.f32 %v783_v32, %v772_v31 }
 0x514   :  { %v4546_v36 = vadd.f32 %v802_v33, %v797_v34 }
 0x515   :  { %v785_v38 = vpop.permute.xlu0 %784 }
 0x516   :  { %v798_v40 = vmul.f32 %v785_v38, %v773_v37  ;;  %964 = vrot.lane.b32.xlu0 %v4546_v36, %s4223_s8 }
 0x518   :  { %v4551_v41 = vadd.f32 %v803_v39, %v798_v40 }
 0x519   :  { %v787_v43 = vpop.permute.xlu1 %786 }
 0x51a   :  { %v799_v45 = vmul.f32 %v787_v43, %v774_v42  ;;  %966 = vrot.lane.b32.xlu1 %v4551_v41, %s4223_s8 }
 0x51c   :  { %v4556_v46 = vadd.f32 %v804_v44, %v799_v45 }
 0x51d   :  { %v789_v48 = vpop.permute.xlu0 %788 }
 0x51e   :  { %v800_v50 = vmul.f32 %v789_v48, %v775_v47  ;;  %968 = vrot.lane.b32.xlu0 %v4556_v46, %s4223_s8 }
 0x520   :  { %v4561_v52 = vadd.f32 %v805_v49, %v800_v50 }
 0x521   :  { %v791_v55 = vpop.permute.xlu1 %790 }
 0x522   :  { %v801_v57 = vmul.f32 %v791_v55, %v776_v54  ;;  %970 = vrot.lane.b32.xlu1 %v4561_v52, %s4223_s8 }
 0x524   :  { %v4569_v53 = vadd.f32 %v806_v56, %v801_v57 }
 0x526   :  { %972 = vrot.lane.b32.xlu0 %v4569_v53, %s4223_s8  ;;  %834 = vrot.lane.b32.xlu1 %v3227_v59, %s4221_s22 }
 0x52a   :  { %836 = vrot.lane.b32.xlu0 %v3228_v58, %s4221_s22  ;;  %838 = vrot.lane.b32.xlu1 %v3229_v60, %s4221_s22 }
 0x52e   :  { %840 = vrot.lane.b32.xlu0 %v3230_v61, %s4221_s22  ;;  %842 = vrot.lane.b32.xlu1 %v3231_v62, %s4221_s22 }
 0x588   :  { %v965_v63 = vpop.permute.xlu0 %964 }
 0x589   :  { %3600 = vmatmul.mubr.msk.f32.vlgmr.msra.gmra.mrb[20].mxu1 %vm73_vm2, %v965_v63 }
 0x58a   :  { %3602 = vmatprep.mubr.msk.f32.mxu1 %vm4219_vm0, %v4220_v3  ;;  %3888 = vmatpush3.bf16.msra.mxu1 %v4277_v8 }
 0x58b   :  { %3889 = vmatprep.subr.bf16.mxu1 %v4218_v1 }
 0x58c   :  { %v967_v0 = vpop.permute.xlu1 %966 }
 0x58d   :  { %3603 = vmatmul.mubr.msk.f32.gmra.mrb[22].mxu1 %vm73_vm2, %v967_v0 }
 0x58e   :  { %3605 = vmatprep.mubr.msk.f32.mxu1 %vm4219_vm0, %v4220_v3  ;;  %3891 = vmatpush3.bf16.msra.mxu1 %v4298_v14 }
 0x58f   :  { %3898 = vmatprep.subr.bf16.mxu1 %v4218_v1 }
 0x590   :  { %v969_v4 = vpop.permute.xlu0 %968 }
 0x591   :  { %3606 = vmatmul.mubr.msk.f32.gmra.mrb[24].mxu1 %vm73_vm2, %v969_v4 }
 0x592   :  { %3608 = vmatprep.mubr.msk.f32.mxu1 %vm4219_vm0, %v4220_v3 }
 0x594   :  { %v971_v5 = vpop.permute.xlu1 %970 }
 0x595   :  { %3609 = vmatmul.mubr.msk.f32.gmra.mrb[26].mxu1 %vm73_vm2, %v971_v5 }
 0x596   :  { %3611 = vmatprep.mubr.msk.f32.mxu1 %vm4219_vm0, %v4220_v3 }
 0x598   :  { %v835_v7 = vpop.permute.xlu1 %834  ;;  %v973_v10 = vpop.permute.xlu0 %972 }
 0x599   :  { %v849_v11 = vsel %vm61_vm1, %v3222_v6, %v835_v7  ;;  %3612 = vmatmul.mubr.msk.f32.gmra.mrb[28].mxu1 %vm73_vm2, %v973_v10 }
 0x59a   :  { %3577 = vmatmul.mubr.msk.f32.vlgmr.msra.gmra.mrb[20].mxu0 %vm73_vm2, %v849_v11  ;;  %3645 = vmatprep.mubr.msk.f32.mxu1 %vm4219_vm0, %v4220_v3 }
 0x59b   :  { %3579 = vmatprep.mubr.msk.f32.mxu0 %vm4219_vm0, %v4220_v3  ;;  %3882 = vmatpush3.bf16.msra.mxu0 %v4300_v15 }
 0x59c   :  { %v837_v13 = vpop.permute.xlu0 %836  ;;  %v839_v19 = vpop.permute.xlu1 %838  ;;  %3883 = vmatprep.subr.bf16.mxu0 %v4218_v1 }
 0x59d   :  { %v850_v20 = vsel %vm61_vm1, %v3223_v12, %v837_v13  ;;  %v851_v21 = vsel %vm61_vm1, %v3224_v17, %v839_v19 }
 0x59e   :  { %3580 = vmatmul.mubr.msk.f32.gmra.mrb[22].mxu0 %vm73_vm2, %v850_v20 }
 0x59f   :  { %3582 = vmatprep.mubr.msk.f32.mxu0 %vm4219_vm0, %v4220_v3  ;;  %3885 = vmatpush3.bf16.msra.mxu0 %v4312_v18 }
 0x5a0   :  { %v841_v24 = vpop.permute.xlu0 %840  ;;  %3892 = vmatprep.subr.bf16.mxu0 %v4218_v1  ;;  %v843_v26 = vpop.permute.xlu1 %842 }
 0x5a1   :  { %v852_v25 = vsel %vm61_vm1, %v3225_v23, %v841_v24  ;;  %v853_v29 = vsel %vm61_vm1, %v3226_v27, %v843_v26 }
 0x5a2   :  { %3583 = vmatmul.mubr.msk.f32.gmra.mrb[24].mxu0 %vm73_vm2, %v851_v21 }
 0x5a3   :  { %3585 = vmatprep.mubr.msk.f32.mxu0 %vm4219_vm0, %v4220_v3 }
 0x5a6   :  { %3586 = vmatmul.mubr.msk.f32.gmra.mrb[26].mxu0 %vm73_vm2, %v852_v25 }
 0x5a7   :  { %3588 = vmatprep.mubr.msk.f32.mxu0 %vm4219_vm0, %v4220_v3 }
 0x5aa   :  { %3589 = vmatmul.mubr.msk.f32.gmra.mrb[28].mxu0 %vm73_vm2, %v853_v29 }
 0x5ab   :  { %3622 = vmatprep.mubr.msk.f32.mxu0 %vm4219_vm0, %v4220_v3 }
 0x65c   :  { %v1050_v30 = vpop.f32.mrb[20].mxu1 }
 0x65d   :  { %v1109_v31 = vadd.f32 %v1050_v30, %v4382_v35  ;;  %v3601_v32 = vpop.f32.mrb[21].mxu1 }
 0x65f   :  { %1119 = vrot.lane.b32.xlu0 %v1109_v31, %s4222_s1 }
 0x660   :  { %v1055_v33 = vpop.f32.mrb[22].mxu1 }
 0x661   :  { %v1110_v34 = vadd.f32 %v1055_v33, %v4382_v35  ;;  %v3604_v37 = vpop.f32.mrb[23].mxu1 }
 0x663   :  { %1121 = vrot.lane.b32.xlu1 %v1110_v34, %s4222_s1 }
 0x664   :  { %v1060_v38 = vpop.f32.mrb[24].mxu1 }
 0x665   :  { %v1111_v39 = vadd.f32 %v1060_v38, %v4382_v35  ;;  %v3607_v40 = vpop.f32.mrb[25].mxu1 }
 0x667   :  { %1123 = vrot.lane.b32.xlu0 %v1111_v39, %s4222_s1 }
 0x668   :  { %v1065_v42 = vpop.f32.mrb[26].mxu1 }
 0x669   :  { %v1112_v43 = vadd.f32 %v1065_v42, %v4382_v35  ;;  %v3610_v44 = vpop.f32.mrb[27].mxu1 }
 0x66b   :  { %1125 = vrot.lane.b32.xlu1 %v1112_v43, %s4222_s1 }
 0x66c   :  { %v1070_v45 = vpop.f32.mrb[28].mxu1 }
 0x66d   :  { %v1113_v47 = vadd.f32 %v1070_v45, %v4382_v35  ;;  %v935_v48 = vpop.f32.mrb[20].mxu0  ;;  %v3613_v49 = vpop.f32.mrb[29].mxu1 }
 0x66e   :  { %v3578_v50 = vpop.f32.mrb[21].mxu0  ;;  %v936_v62 = vadd.f32 %v4397_v51, %v935_v48 }
 0x66f   :  { %1127 = vrot.lane.b32.xlu0 %v1113_v47, %s4222_s1 }
 0x670   :  { %v1074_v63 = vadd.f32 %v1050_v30, %v936_v62 }
 0x671   :  { %v940_v54 = vpop.f32.mrb[22].mxu0 }
 0x672   :  { %v3581_v55 = vpop.f32.mrb[23].mxu0  ;;  %v941_v0 = vadd.f32 %v4397_v51, %v940_v54  ;;  %v3242_v4 = vmul.f32 -1.442695, %v1074_v63 }
 0x674   :  { %v1075_v5 = vadd.f32 %v1055_v33, %v941_v0  ;;  %4006 = vpow2.f32 %v3242_v4 }
 0x675   :  { %v945_v56 = vpop.f32.mrb[24].mxu0 }
 0x676   :  { %v3584_v57 = vpop.f32.mrb[25].mxu0  ;;  %v946_v6 = vadd.f32 %v4397_v51, %v945_v56  ;;  %v3243_v7 = vmul.f32 -1.442695, %v1075_v5 }
 0x678   :  { %v1076_v10 = vadd.f32 %v1060_v38, %v946_v6  ;;  %4008 = vpow2.f32 %v3243_v7 }
 0x679   :  { %v950_v59 = vpop.f32.mrb[26].mxu0 }
 0x67a   :  { %v3587_v58 = vpop.f32.mrb[27].mxu0  ;;  %v951_v11 = vadd.f32 %v4397_v51, %v950_v59  ;;  %v3244_v12 = vmul.f32 -1.442695, %v1076_v10 }
 0x67c   :  { %v1077_v13 = vadd.f32 %v1065_v42, %v951_v11  ;;  %4010 = vpow2.f32 %v3244_v12 }
 0x67d   :  { %v955_v60 = vpop.f32.mrb[28].mxu0 }
 0x67e   :  { %v3590_v61 = vpop.f32.mrb[29].mxu0  ;;  %v956_v17 = vadd.f32 %v4397_v51, %v955_v60  ;;  %v3245_v19 = vmul.f32 -1.442695, %v1077_v13  ;;  %v4007_v21 = vpop.eup %4006 }
 0x67f   :  { %v1094_v24 = vadd.f32 1.0, %v4007_v21 }
 0x680   :  { %v1078_v20 = vadd.f32 %v1070_v45, %v956_v17  ;;  %4012 = vpow2.f32 %v3245_v19 }
 0x682   :  { %v3246_v23 = vmul.f32 -1.442695, %v1078_v20  ;;  %v4009_v25 = vpop.eup %4008 }
 0x683   :  { %v1095_v27 = vadd.f32 1.0, %v4009_v25 }
 0x684   :  { %4014 = vpow2.f32 %v3246_v23 }
 0x685   :  { %4016 = vrcp.f32 %v1094_v24 }
 0x686   :  { %v4011_v26 = vpop.eup %4010  ;;  %4018 = vrcp.f32 %v1095_v27 }
 0x687   :  { %v1096_v29 = vadd.f32 1.0, %v4011_v26 }
 0x689   :  { %4020 = vrcp.f32 %v1096_v29 }
 0x68a   :  { %v4013_v30 = vpop.eup %4012 }
 0x68b   :  { %v1097_v31 = vadd.f32 1.0, %v4013_v30 }
 0x68d   :  { %4022 = vrcp.f32 %v1097_v31 }
 0x68e   :  { %v4015_v32 = vpop.eup %4014 }
 0x68f   :  { %v4017_v33 = vpop.eup %4016  ;;  %v1098_v37 = vadd.f32 1.0, %v4015_v32 }
 0x690   :  { %v4019_v38 = vpop.eup %4018  ;;  %v1169_v12 = vsub.f32 1.0, %v4017_v33  ;;  %v1199_v13 = vmul.f32 %v4017_v33, %v4546_v36 }
 0x691   :  { %4024 = vrcp.f32 %v1098_v37  ;;  %v1200_v23 = vmul.f32 %v4019_v38, %v4551_v41 }
 0x693   :  { %v4021_v42 = vpop.eup %4020 }
 0x694   :  { %v1171_v27 = vsub.f32 1.0, %v4021_v42  ;;  %v1201_v29 = vmul.f32 %v4021_v42, %v4556_v46 }
 0x697   :  { %v4023_v45 = vpop.eup %4022 }
 0x698   :  { %v1172_v32 = vsub.f32 1.0, %v4023_v45 }
 0x69b   :  { %v4025_v49 = vpop.eup %4024 }
 0x6d1   :  { %v1120_v51 = vpop.permute.xlu0 %1119 }
 0x6d2   :  { %v1134_v34 = vmul.f32 %v4017_v33, %v1120_v51  ;;  %v1202_v51 = vmul.f32 %v4023_v45, %v4561_v52 }
 0x6d4   :  { %1144 = vrot.lane.b32.xlu1 %v1134_v34, %s4222_s1 }
 0x6d5   :  { %v1122_v39 = vpop.permute.xlu1 %1121 }
 0x6d6   :  { %v1135_v40 = vmul.f32 %v4019_v38, %v1122_v39 }
 0x6d8   :  { %1146 = vrot.lane.b32.xlu0 %v1135_v40, %s4222_s1  ;;  %v1203_v40 = vmul.f32 %v4025_v49, %v4569_v53 }
 0x6d9   :  { %v1124_v43 = vpop.permute.xlu0 %1123 }
 0x6da   :  { %v1136_v44 = vmul.f32 %v4021_v42, %v1124_v43  ;;  %v4697_v43 = vld [vmem:[%s5404_s0 + $0xa0] sm:$0xff] }
 0x6dc   :  { %1148 = vrot.lane.b32.xlu1 %v1136_v44, %s4222_s1 }
 0x6dd   :  { %v1126_v47 = vpop.permute.xlu1 %1125 }
 0x6de   :  { %v1137_v48 = vmul.f32 %v4023_v45, %v1126_v47  ;;  %v4708_v45 = vld [vmem:[%s5404_s0 + $0xa8] sm:$0xff]  ;;  %v4713_v47 = vld [vmem:[%s5404_s0 + $0xb0] sm:$0xff] }
 0x6e0   :  { %1150 = vrot.lane.b32.xlu0 %v1137_v48, %s4222_s1  ;;  %v4722_v48 = vld [vmem:[%s5404_s0 + $0xb8] sm:$0xff] }
 0x6e1   :  { %v1128_v50 = vpop.permute.xlu0 %1127 }
 0x6e2   :  { %v1138_v54 = vmul.f32 %v4025_v49, %v1128_v50 }
 0x6e4   :  { %1152 = vrot.lane.b32.xlu1 %v1138_v54, %s4222_s1 }
 0x746   :  { %v1145_v55 = vpop.permute.xlu1 %1144 }
 0x747   :  { %v1159_v56 = vadd.f32 %v1145_v55, %v936_v62 }
 0x749   :  { %4026 = vtanh.f32 %v1159_v56 }
 0x74a   :  { %v1147_v57 = vpop.permute.xlu0 %1146 }
 0x74b   :  { %v1160_v59 = vadd.f32 %v1147_v57, %v941_v0  ;;  %v4750_v57 = vld [vmem:[%s5404_s0 + $0x78] sm:$0xff] }
 0x74d   :  { %4028 = vtanh.f32 %v1160_v59 }
 0x74e   :  { %v1149_v58 = vpop.permute.xlu1 %1148 }
 0x74f   :  { %v1161_v60 = vadd.f32 %v1149_v58, %v946_v6 }
 0x751   :  { %4030 = vtanh.f32 %v1161_v60 }
 0x752   :  { %v1151_v61 = vpop.permute.xlu0 %1150 }
 0x753   :  { %v4027_v63 = vpop.eup %4026  ;;  %v1162_v4 = vadd.f32 %v1151_v61, %v951_v11  ;;  %v4761_v61 = vld [vmem:[%s5404_s0 + $0x80] sm:$0xff] }
 0x754   :  { %1179 = vrot.lane.b32.xlu0 %v4027_v63, %s4223_s8 }
 0x755   :  { %4032 = vtanh.f32 %v1162_v4  ;;  %v4771_v4 = vld [vmem:[%s5404_s0 + $0x88] sm:$0xff] }
 0x756   :  { %v1153_v5 = vpop.permute.xlu1 %1152 }
 0x757   :  { %v4029_v7 = vpop.eup %4028  ;;  %v1163_v10 = vadd.f32 %v1153_v5, %v956_v17  ;;  %v1170_v17 = vsub.f32 1.0, %v4019_v38  ;;  %v1173_v38 = vsub.f32 1.0, %v4025_v49  ;;  %v4727_v49 = vld [vmem:[%s5404_s0 + $0xc0] sm:$0xff] }
 0x758   :  { %1181 = vrot.lane.b32.xlu1 %v4029_v7, %s4223_s8 }
 0x759   :  { %4034 = vtanh.f32 %v1163_v10 }
 0x75b   :  { %v4031_v62 = vpop.eup %4030 }
 0x75c   :  { %1183 = vrot.lane.b32.xlu0 %v4031_v62, %s4223_s8  ;;  %v4785_v62 = vld [vmem:[%s5404_s0 + $0x90] sm:$0xff] }
 0x75f   :  { %v4033_v0 = vpop.eup %4032 }
 0x760   :  { %1185 = vrot.lane.b32.xlu1 %v4033_v0, %s4223_s8 }
 0x763   :  { %v4035_v6 = vpop.eup %4034 }
 0x764   :  { %1187 = vrot.lane.b32.xlu0 %v4035_v6, %s4223_s8 }
 0x7c6   :  { %v1180_v11 = vpop.permute.xlu0 %1179 }
 0x7c7   :  { %v1194_v19 = vmul.f32 %v1180_v11, %v1169_v12  ;;  %v4796_v12 = vld [vmem:[%s5404_s0 + $0x98] sm:$0xff] }
 0x7c9   :  { %v4674_v20 = vadd.f32 %v1199_v13, %v1194_v19 }
 0x7ca   :  { %v1182_v21 = vpop.permute.xlu1 %1181 }
 0x7cb   :  { %v1195_v24 = vmul.f32 %v1182_v21, %v1170_v17  ;;  %1361 = vrot.lane.b32.xlu1 %v4674_v20, %s4223_s8 }
 0x7cd   :  { %v4679_v25 = vadd.f32 %v1200_v23, %v1195_v24 }
 0x7ce   :  { %v1184_v26 = vpop.permute.xlu0 %1183 }
 0x7cf   :  { %v1196_v30 = vmul.f32 %v1184_v26, %v1171_v27  ;;  %1363 = vrot.lane.b32.xlu0 %v4679_v25, %s4223_s8 }
 0x7d1   :  { %v4684_v31 = vadd.f32 %v1201_v29, %v1196_v30 }
 0x7d2   :  { %v1186_v33 = vpop.permute.xlu1 %1185 }
 0x7d3   :  { %v1197_v34 = vmul.f32 %v1186_v33, %v1172_v32  ;;  %1365 = vrot.lane.b32.xlu1 %v4684_v31, %s4223_s8 }
 0x7d5   :  { %v4689_v37 = vadd.f32 %v1202_v51, %v1197_v34 }
 0x7d6   :  { %v1188_v39 = vpop.permute.xlu0 %1187 }
 0x7d7   :  { %v1198_v42 = vmul.f32 %v1188_v39, %v1173_v38  ;;  %1367 = vrot.lane.b32.xlu0 %v4689_v37, %s4223_s8 }
 0x7d9   :  { %v4699_v44 = vadd.f32 %v1203_v40, %v1198_v42 }
 0x7db   :  { %1369 = vrot.lane.b32.xlu1 %v4699_v44, %s4223_s8  ;;  %1231 = vrot.lane.b32.xlu0 %v4697_v43, %s4221_s22 }
 0x7df   :  { %1233 = vrot.lane.b32.xlu1 %v4708_v45, %s4221_s22  ;;  %1235 = vrot.lane.b32.xlu0 %v4713_v47, %s4221_s22 }
 0x7e3   :  { %1237 = vrot.lane.b32.xlu1 %v4722_v48, %s4221_s22  ;;  %1239 = vrot.lane.b32.xlu0 %v4727_v49, %s4221_s22 }
 0x83d   :  { %v1362_v50 = vpop.permute.xlu1 %1361 }
 0x83e   :  { %3646 = vmatmul.mubr.msk.f32.vlgmr.msra.gmra.mrb[30].mxu1 %vm73_vm2, %v1362_v50 }
 0x83f   :  { %3648 = vmatprep.mubr.msk.f32.mxu1 %vm4219_vm0, %v4220_v3  ;;  %3900 = vmatpush3.bf16.msra.mxu1 %v4277_v8 }
 0x840   :  { %3901 = vmatprep.subr.bf16.mxu1 %v4218_v1 }
 0x841   :  { %v1364_v54 = vpop.permute.xlu0 %1363 }
 0x842   :  { %3649 = vmatmul.mubr.msk.f32.gmra.mrb[32].mxu1 %vm73_vm2, %v1364_v54 }
 0x843   :  { %3651 = vmatprep.mubr.msk.f32.mxu1 %vm4219_vm0, %v4220_v3  ;;  %3903 = vmatpush3.bf16.msra.mxu1 %v4298_v14 }
 0x844   :  { %3910 = vmatprep.subr.bf16.mxu1 %v4218_v1 }
 0x845   :  { %v1366_v55 = vpop.permute.xlu1 %1365 }
 0x846   :  { %3652 = vmatmul.mubr.msk.f32.gmra.mrb[34].mxu1 %vm73_vm2, %v1366_v55 }
 0x847   :  { %3654 = vmatprep.mubr.msk.f32.mxu1 %vm4219_vm0, %v4220_v3 }
 0x849   :  { %v1368_v56 = vpop.permute.xlu0 %1367 }
 0x84a   :  { %3655 = vmatmul.mubr.msk.f32.gmra.mrb[36].mxu1 %vm73_vm2, %v1368_v56 }
 0x84b   :  { %3657 = vmatprep.mubr.msk.f32.mxu1 %vm4219_vm0, %v4220_v3 }
 0x84d   :  { %v1232_v59 = vpop.permute.xlu0 %1231  ;;  %v1370_v58 = vpop.permute.xlu1 %1369 }
 0x84e   :  { %v1246_v60 = vsel %vm61_vm1, %v4750_v57, %v1232_v59  ;;  %3658 = vmatmul.mubr.msk.f32.gmra.mrb[38].mxu1 %vm73_vm2, %v1370_v58 }
 0x84f   :  { %3623 = vmatmul.mubr.msk.f32.vlgmr.msra.gmra.mrb[30].mxu0 %vm73_vm2, %v1246_v60  ;;  %3691 = vmatprep.mubr.msk.f32.mxu1 %vm4219_vm0, %v4220_v3 }
 0x850   :  { %3625 = vmatprep.mubr.msk.f32.mxu0 %vm4219_vm0, %v4220_v3  ;;  %3894 = vmatpush3.bf16.msra.mxu0 %v4300_v15 }
 0x851   :  { %v1234_v63 = vpop.permute.xlu1 %1233  ;;  %v1236_v5 = vpop.permute.xlu0 %1235  ;;  %3895 = vmatprep.subr.bf16.mxu0 %v4218_v1 }
 0x852   :  { %v1247_v7 = vsel %vm61_vm1, %v4761_v61, %v1234_v63  ;;  %v1248_v10 = vsel %vm61_vm1, %v4771_v4, %v1236_v5  ;;  %v4819_v5 = vld [vmem:[%s5408_s3] ss:$0 sm:$0xff] }
 0x853   :  { %3626 = vmatmul.mubr.msk.f32.gmra.mrb[32].mxu0 %vm73_vm2, %v1247_v7 }
 0x854   :  { %3628 = vmatprep.mubr.msk.f32.mxu0 %vm4219_vm0, %v4220_v3  ;;  %3897 = vmatpush3.bf16.msra.mxu0 %v4312_v18 }
 0x855   :  { %v1238_v0 = vpop.permute.xlu1 %1237  ;;  %3904 = vmatprep.subr.bf16.mxu0 %v4218_v1  ;;  %v1240_v11 = vpop.permute.xlu0 %1239 }
 0x856   :  { %v1249_v6 = vsel %vm61_vm1, %v4785_v62, %v1238_v0  ;;  %v1250_v13 = vsel %vm61_vm1, %v4796_v12, %v1240_v11 }
 0x857   :  { %3629 = vmatmul.mubr.msk.f32.gmra.mrb[34].mxu0 %vm73_vm2, %v1248_v10 }
 0x858   :  { %3631 = vmatprep.mubr.msk.f32.mxu0 %vm4219_vm0, %v4220_v3 }
 0x85b   :  { %3632 = vmatmul.mubr.msk.f32.gmra.mrb[36].mxu0 %vm73_vm2, %v1249_v6 }
 0x85c   :  { %3634 = vmatprep.mubr.msk.f32.mxu0 %vm4219_vm0, %v4220_v3 }
 0x85f   :  { %3635 = vmatmul.mubr.msk.f32.gmra.mrb[38].mxu0 %vm73_vm2, %v1250_v13 }
 0x860   :  { %3668 = vmatprep.mubr.msk.f32.mxu0 %vm4219_vm0, %v4220_v3 }
 0x911   :  { %v1447_v19 = vpop.f32.mrb[30].mxu1 }
 0x912   :  { %v1506_v17 = vadd.f32 %v1447_v19, %v4382_v35  ;;  %v3647_v21 = vpop.f32.mrb[31].mxu1 }
 0x914   :  { %1516 = vrot.lane.b32.xlu1 %v1506_v17, %s4222_s1 }
 0x915   :  { %v1452_v23 = vpop.f32.mrb[32].mxu1 }
 0x916   :  { %v1507_v24 = vadd.f32 %v1452_v23, %v4382_v35  ;;  %v3650_v27 = vpop.f32.mrb[33].mxu1 }
 0x918   :  { %1518 = vrot.lane.b32.xlu0 %v1507_v24, %s4222_s1 }
 0x919   :  { %v1457_v26 = vpop.f32.mrb[34].mxu1 }
 0x91a   :  { %v1508_v29 = vadd.f32 %v1457_v26, %v4382_v35  ;;  %v3653_v30 = vpop.f32.mrb[35].mxu1 }
 0x91c   :  { %1520 = vrot.lane.b32.xlu1 %v1508_v29, %s4222_s1 }
 0x91d   :  { %v1462_v32 = vpop.f32.mrb[36].mxu1 }
 0x91e   :  { %v1509_v33 = vadd.f32 %v1462_v32, %v4382_v35  ;;  %v3656_v51 = vpop.f32.mrb[37].mxu1 }
 0x920   :  { %1522 = vrot.lane.b32.xlu0 %v1509_v33, %s4222_s1 }
 0x921   :  { %v1467_v34 = vpop.f32.mrb[38].mxu1 }
 0x922   :  { %v1510_v38 = vadd.f32 %v1467_v34, %v4382_v35  ;;  %v1332_v39 = vpop.f32.mrb[30].mxu0  ;;  %v3659_v40 = vpop.f32.mrb[39].mxu1 }
 0x923   :  { %v3624_v42 = vpop.f32.mrb[31].mxu0  ;;  %v1333_v7 = vadd.f32 %v4819_v5, %v1332_v39 }
 0x924   :  { %1524 = vrot.lane.b32.xlu1 %v1510_v38, %s4222_s1 }
 0x925   :  { %v1471_v10 = vadd.f32 %v1447_v19, %v1333_v7 }
 0x926   :  { %v1337_v50 = vpop.f32.mrb[32].mxu0 }
 0x927   :  { %v3627_v54 = vpop.f32.mrb[33].mxu0  ;;  %v1338_v0 = vadd.f32 %v4819_v5, %v1337_v50  ;;  %v3267_v6 = vmul.f32 -1.442695, %v1471_v10 }
 0x929   :  { %v1472_v11 = vadd.f32 %v1452_v23, %v1338_v0  ;;  %4036 = vpow2.f32 %v3267_v6 }
 0x92a   :  { %v1342_v55 = vpop.f32.mrb[34].mxu0 }
 0x92b   :  { %v3630_v56 = vpop.f32.mrb[35].mxu0  ;;  %v1343_v13 = vadd.f32 %v4819_v5, %v1342_v55  ;;  %v3268_v17 = vmul.f32 -1.442695, %v1472_v11 }
 0x92d   :  { %v1473_v21 = vadd.f32 %v1457_v26, %v1343_v13  ;;  %4038 = vpow2.f32 %v3268_v17 }
 0x92e   :  { %v1347_v59 = vpop.f32.mrb[36].mxu0 }
 0x92f   :  { %v3633_v58 = vpop.f32.mrb[37].mxu0  ;;  %v1348_v24 = vadd.f32 %v4819_v5, %v1347_v59  ;;  %v3269_v27 = vmul.f32 -1.442695, %v1473_v21 }
 0x931   :  { %v1474_v29 = vadd.f32 %v1462_v32, %v1348_v24  ;;  %4040 = vpow2.f32 %v3269_v27 }
 0x932   :  { %v1352_v60 = vpop.f32.mrb[38].mxu0 }
 0x933   :  { %v3636_v63 = vpop.f32.mrb[39].mxu0  ;;  %v1353_v30 = vadd.f32 %v4819_v5, %v1352_v60  ;;  %v3270_v33 = vmul.f32 -1.442695, %v1474_v29  ;;  %v4037_v19 = vpop.eup %4036 }
 0x934   :  { %v1491_v39 = vadd.f32 1.0, %v4037_v19 }
 0x935   :  { %v1475_v51 = vadd.f32 %v1467_v34, %v1353_v30  ;;  %4042 = vpow2.f32 %v3270_v33 }
 0x937   :  { %v3271_v38 = vmul.f32 -1.442695, %v1475_v51  ;;  %v4039_v23 = vpop.eup %4038 }
 0x938   :  { %v1492_v40 = vadd.f32 1.0, %v4039_v23 }
 0x939   :  { %4044 = vpow2.f32 %v3271_v38 }
 0x93a   :  { %4046 = vrcp.f32 %v1491_v39 }
 0x93b   :  { %v4041_v42 = vpop.eup %4040  ;;  %4048 = vrcp.f32 %v1492_v40 }
 0x93c   :  { %v1493_v26 = vadd.f32 1.0, %v4041_v42 }
 0x93e   :  { %4050 = vrcp.f32 %v1493_v26 }
 0x93f   :  { %v4043_v50 = vpop.eup %4042 }
 0x940   :  { %v1494_v54 = vadd.f32 1.0, %v4043_v50 }
 0x942   :  { %4052 = vrcp.f32 %v1494_v54 }
 0x943   :  { %v4045_v32 = vpop.eup %4044 }
 0x944   :  { %v4047_v55 = vpop.eup %4046  ;;  %v1495_v34 = vadd.f32 1.0, %v4045_v32 }
 0x945   :  { %v4049_v58 = vpop.eup %4048 }
 0x946   :  { %4054 = vrcp.f32 %v1495_v34  ;;  %v1566_v34 = vsub.f32 1.0, %v4047_v55 }
 0x948   :  { %v4051_v10 = vpop.eup %4050 }
 0x94c   :  { %v4053_v17 = vpop.eup %4052 }
 0x950   :  { %v4055_v29 = vpop.eup %4054 }
 0x986   :  { %v1517_v56 = vpop.permute.xlu1 %1516 }
 0x987   :  { %v1531_v59 = vmul.f32 %v4047_v55, %v1517_v56 }
 0x989   :  { %1541 = vrot.lane.b32.xlu0 %v1531_v59, %s4222_s1 }
 0x98a   :  { %v1519_v60 = vpop.permute.xlu0 %1518 }
 0x98b   :  { %v1532_v63 = vmul.f32 %v4049_v58, %v1519_v60  ;;  %v1596_v60 = vmul.f32 %v4047_v55, %v4674_v20 }
 0x98d   :  { %1543 = vrot.lane.b32.xlu1 %v1532_v63, %s4222_s1 }
 0x98e   :  { %v1521_v6 = vpop.permute.xlu1 %1520 }
 0x98f   :  { %v1533_v11 = vmul.f32 %v4051_v10, %v1521_v6 }
 0x991   :  { %1545 = vrot.lane.b32.xlu0 %v1533_v11, %s4222_s1 }
 0x992   :  { %v1523_v21 = vpop.permute.xlu0 %1522 }
 0x993   :  { %v1534_v27 = vmul.f32 %v4053_v17, %v1523_v21  ;;  %v1597_v21 = vmul.f32 %v4049_v58, %v4679_v25 }
 0x995   :  { %1547 = vrot.lane.b32.xlu1 %v1534_v27, %s4222_s1 }
 0x996   :  { %v1525_v33 = vpop.permute.xlu1 %1524 }
 0x997   :  { %v1535_v51 = vmul.f32 %v4055_v29, %v1525_v33 }
 0x999   :  { %1549 = vrot.lane.b32.xlu0 %v1535_v51, %s4222_s1  ;;  %v1568_v51 = vsub.f32 1.0, %v4051_v10 }
 0x9fb   :  { %v1542_v19 = vpop.permute.xlu0 %1541 }
 0x9fc   :  { %v1556_v38 = vadd.f32 %v1542_v19, %v1333_v7 }
 0x9fe   :  { %4056 = vtanh.f32 %v1556_v38  ;;  %v1598_v38 = vmul.f32 %v4051_v10, %v4684_v31  ;;  %v1600_v10 = vmul.f32 %v4055_v29, %v4699_v44 }
 0x9ff   :  { %v1544_v39 = vpop.permute.xlu1 %1543 }
 0xa00   :  { %v1557_v23 = vadd.f32 %v1544_v39, %v1338_v0 }
 0xa02   :  { %4058 = vtanh.f32 %v1557_v23  ;;  %v1569_v23 = vsub.f32 1.0, %v4053_v17 }
 0xa03   :  { %v1546_v40 = vpop.permute.xlu0 %1545 }
 0xa04   :  { %v1558_v42 = vadd.f32 %v1546_v40, %v1343_v13 }
 0xa06   :  { %4060 = vtanh.f32 %v1558_v42 }
 0xa07   :  { %v1548_v26 = vpop.permute.xlu1 %1547 }
 0xa08   :  { %v4057_v50 = vpop.eup %4056  ;;  %v1559_v54 = vadd.f32 %v1548_v26, %v1348_v24 }
 0xa09   :  { %1576 = vrot.lane.b32.xlu1 %v4057_v50, %s4223_s8  ;;  %v1570_v50 = vsub.f32 1.0, %v4055_v29 }
 0xa0a   :  { %4062 = vtanh.f32 %v1559_v54 }
 0xa0b   :  { %v1550_v32 = vpop.permute.xlu0 %1549 }
 0xa0c   :  { %v4059_v56 = vpop.eup %4058  ;;  %v1560_v59 = vadd.f32 %v1550_v32, %v1353_v30  ;;  %v1567_v30 = vsub.f32 1.0, %v4049_v58  ;;  %v1599_v58 = vmul.f32 %v4053_v17, %v4689_v37 }
 0xa0d   :  { %1578 = vrot.lane.b32.xlu0 %v4059_v56, %s4223_s8 }
 0xa0e   :  { %4064 = vtanh.f32 %v1560_v59 }
 0xa10   :  { %v4061_v7 = vpop.eup %4060 }
 0xa11   :  { %1580 = vrot.lane.b32.xlu1 %v4061_v7, %s4223_s8 }
 0xa14   :  { %v4063_v0 = vpop.eup %4062 }
 0xa15   :  { %1582 = vrot.lane.b32.xlu0 %v4063_v0, %s4223_s8 }
 0xa18   :  { %v4065_v13 = vpop.eup %4064 }
 0xa19   :  { %1584 = vrot.lane.b32.xlu1 %v4065_v13, %s4223_s8 }
 0xa7b   :  { %v1577_v24 = vpop.permute.xlu1 %1576 }
 0xa7c   :  { %v1591_v63 = vmul.f32 %v1577_v24, %v1566_v34 }
 0xa7e   :  { %v4837_v6 = vadd.f32 %v1596_v60, %v1591_v63 }
 0xa7f   :  { %v1579_v11 = vpop.permute.xlu0 %1578 }
 0xa80   :  { %v1592_v27 = vmul.f32 %v1579_v11, %v1567_v30  ;;  %1746 = vrot.lane.b32.xlu0 %v4837_v6, %s4223_s8 }
 0xa82   :  { %v4842_v33 = vadd.f32 %v1597_v21, %v1592_v27 }
 0xa83   :  { %v1581_v19 = vpop.permute.xlu1 %1580 }
 0xa84   :  { %v1593_v39 = vmul.f32 %v1581_v19, %v1568_v51  ;;  %1748 = vrot.lane.b32.xlu1 %v4842_v33, %s4223_s8 }
 0xa86   :  { %v4847_v55 = vadd.f32 %v1598_v38, %v1593_v39 }
 0xa87   :  { %v1583_v40 = vpop.permute.xlu0 %1582 }
 0xa88   :  { %v1594_v42 = vmul.f32 %v1583_v40, %v1569_v23  ;;  %1750 = vrot.lane.b32.xlu0 %v4847_v55, %s4223_s8 }
 0xa8a   :  { %v4852_v26 = vadd.f32 %v1599_v58, %v1594_v42 }
 0xa8b   :  { %v1585_v54 = vpop.permute.xlu1 %1584 }
 0xa8c   :  { %v1595_v32 = vmul.f32 %v1585_v54, %v1570_v50  ;;  %1752 = vrot.lane.b32.xlu1 %v4852_v26, %s4223_s8 }
 0xa8e   :  { %v4857_v56 = vadd.f32 %v1600_v10, %v1595_v32 }
 0xa90   :  { %1754 = vrot.lane.b32.xlu0 %v4857_v56, %s4223_s8  ;;  %1616 = vrot.lane.b32.xlu1 %v4750_v57, %s4221_s22 }
 0xa94   :  { %1618 = vrot.lane.b32.xlu0 %v4761_v61, %s4221_s22  ;;  %1620 = vrot.lane.b32.xlu1 %v4771_v4, %s4221_s22 }
 0xa98   :  { %1622 = vrot.lane.b32.xlu0 %v4785_v62, %s4221_s22  ;;  %1624 = vrot.lane.b32.xlu1 %v4796_v12, %s4221_s22 }
 0xaf2   :  { %v1747_v17 = vpop.permute.xlu0 %1746 }
 0xaf3   :  { %3692 = vmatmul.mubr.msk.f32.vlgmr.msra.gmra.mrb[40].mxu1 %vm73_vm2, %v1747_v17 }
 0xaf4   :  { %3694 = vmatprep.mubr.msk.f32.mxu1 %vm4219_vm0, %v4220_v3  ;;  %3912 = vmatpush3.bf16.msra.mxu1 %v4277_v8 }
 0xaf5   :  { %3913 = vmatprep.subr.bf16.mxu1 %v4218_v1 }
 0xaf6   :  { %v1749_v57 = vpop.permute.xlu1 %1748 }
 0xaf7   :  { %3695 = vmatmul.mubr.msk.f32.gmra.mrb[42].mxu1 %vm73_vm2, %v1749_v57 }
 0xaf8   :  { %3697 = vmatprep.mubr.msk.f32.mxu1 %vm4219_vm0, %v4220_v3  ;;  %3915 = vmatpush3.bf16.msra.mxu1 %v4298_v14 }
 0xaf9   :  { %3922 = vmatprep.subr.bf16.mxu1 %v4218_v1 }
 0xafa   :  { %v1751_v61 = vpop.permute.xlu0 %1750 }
 0xafb   :  { %3698 = vmatmul.mubr.msk.f32.gmra.mrb[44].mxu1 %vm73_vm2, %v1751_v61 }
 0xafc   :  { %3700 = vmatprep.mubr.msk.f32.mxu1 %vm4219_vm0, %v4220_v3 }
 0xafe   :  { %v1753_v4 = vpop.permute.xlu1 %1752 }
 0xaff   :  { %3701 = vmatmul.mubr.msk.f32.gmra.mrb[46].mxu1 %vm73_vm2, %v1753_v4 }
 0xb00   :  { %3703 = vmatprep.mubr.msk.f32.mxu1 %vm4219_vm0, %v4220_v3 }
 0xb02   :  { %v1617_v62 = vpop.permute.xlu1 %1616  ;;  %v1755_v12 = vpop.permute.xlu0 %1754 }
 0xb03   :  { %v1631_v29 = vsel %vm61_vm1, %v4697_v43, %v1617_v62  ;;  %3704 = vmatmul.mubr.msk.f32.gmra.mrb[48].mxu1 %vm73_vm2, %v1755_v12 }
 0xb04   :  { %3669 = vmatmul.mubr.msk.f32.vlgmr.msra.gmra.mrb[40].mxu0 %vm73_vm2, %v1631_v29  ;;  %3737 = vmatprep.mubr.msk.f32.mxu1 %vm4219_vm0, %v4220_v3 }
 0xb05   :  { %3671 = vmatprep.mubr.msk.f32.mxu0 %vm4219_vm0, %v4220_v3  ;;  %3906 = vmatpush3.bf16.msra.mxu0 %v4300_v15 }
 0xb06   :  { %v1619_v59 = vpop.permute.xlu0 %1618  ;;  %v1621_v7 = vpop.permute.xlu1 %1620  ;;  %3907 = vmatprep.subr.bf16.mxu0 %v4218_v1 }
 0xb07   :  { %v1632_v0 = vsel %vm61_vm1, %v4708_v45, %v1619_v59  ;;  %v1633_v43 = vsel %vm61_vm1, %v4713_v47, %v1621_v7 }
 0xb08   :  { %3672 = vmatmul.mubr.msk.f32.gmra.mrb[42].mxu0 %vm73_vm2, %v1632_v0 }
 0xb09   :  { %3674 = vmatprep.mubr.msk.f32.mxu0 %vm4219_vm0, %v4220_v3  ;;  %3909 = vmatpush3.bf16.msra.mxu0 %v4312_v18 }
 0xb0a   :  { %v1623_v13 = vpop.permute.xlu0 %1622  ;;  %3916 = vmatprep.subr.bf16.mxu0 %v4218_v1  ;;  %v1625_v45 = vpop.permute.xlu1 %1624 }
 0xb0b   :  { %v1634_v34 = vsel %vm61_vm1, %v4722_v48, %v1623_v13  ;;  %v1635_v47 = vsel %vm61_vm1, %v4727_v49, %v1625_v45 }
 0xb0c   :  { %3675 = vmatmul.mubr.msk.f32.gmra.mrb[44].mxu0 %vm73_vm2, %v1633_v43 }
 0xb0d   :  { %3677 = vmatprep.mubr.msk.f32.mxu0 %vm4219_vm0, %v4220_v3 }
 0xb10   :  { %3678 = vmatmul.mubr.msk.f32.gmra.mrb[46].mxu0 %vm73_vm2, %v1634_v34 }
 0xb11   :  { %3680 = vmatprep.mubr.msk.f32.mxu0 %vm4219_vm0, %v4220_v3 }
 0xb14   :  { %3681 = vmatmul.mubr.msk.f32.gmra.mrb[48].mxu0 %vm73_vm2, %v1635_v47 }
 0xb15   :  { %3714 = vmatprep.mubr.msk.f32.mxu0 %vm4219_vm0, %v4220_v3 }
 0xbc6   :  { %v1832_v24 = vpop.f32.mrb[40].mxu1 }
 0xbc7   :  { %v1891_v48 = vadd.f32 %v1832_v24, %v4382_v35  ;;  %v3693_v60 = vpop.f32.mrb[41].mxu1 }
 0xbc9   :  { %1901 = vrot.lane.b32.xlu0 %v1891_v48, %s4222_s1 }
 0xbca   :  { %v1837_v63 = vpop.f32.mrb[42].mxu1 }
 0xbcb   :  { %v1892_v30 = vadd.f32 %v1837_v63, %v4382_v35  ;;  %v3696_v11 = vpop.f32.mrb[43].mxu1 }
 0xbcd   :  { %1903 = vrot.lane.b32.xlu1 %v1892_v30, %s4222_s1 }
 0xbce   :  { %v1842_v49 = vpop.f32.mrb[44].mxu1 }
 0xbcf   :  { %v1893_v21 = vadd.f32 %v1842_v49, %v4382_v35  ;;  %v3699_v27 = vpop.f32.mrb[45].mxu1 }
 0xbd1   :  { %1905 = vrot.lane.b32.xlu0 %v1893_v21, %s4222_s1 }
 0xbd2   :  { %v1847_v51 = vpop.f32.mrb[46].mxu1 }
 0xbd3   :  { %v1894_v19 = vadd.f32 %v1847_v51, %v4382_v35  ;;  %v3702_v38 = vpop.f32.mrb[47].mxu1 }
 0xbd5   :  { %1907 = vrot.lane.b32.xlu1 %v1894_v19, %s4222_s1 }
 0xbd6   :  { %v1852_v39 = vpop.f32.mrb[48].mxu1 }
 0xbd7   :  { %v1895_v23 = vadd.f32 %v1852_v39, %v4382_v35  ;;  %v1717_v40 = vpop.f32.mrb[40].mxu0  ;;  %v3705_v58 = vpop.f32.mrb[49].mxu1 }
 0xbd8   :  { %v3670_v42 = vpop.f32.mrb[41].mxu0  ;;  %v1718_v62 = vadd.f32 %v4819_v5, %v1717_v40 }
 0xbd9   :  { %1909 = vrot.lane.b32.xlu0 %v1895_v23, %s4222_s1 }
 0xbda   :  { %v1856_v12 = vadd.f32 %v1832_v24, %v1718_v62 }
 0xbdb   :  { %v1722_v50 = vpop.f32.mrb[42].mxu0 }
 0xbdc   :  { %v3673_v54 = vpop.f32.mrb[43].mxu0  ;;  %v1723_v29 = vadd.f32 %v4819_v5, %v1722_v50  ;;  %v3282_v59 = vmul.f32 -1.442695, %v1856_v12 }
 0xbde   :  { %v1857_v7 = vadd.f32 %v1837_v63, %v1723_v29  ;;  %4066 = vpow2.f32 %v3282_v59 }
 0xbdf   :  { %v1727_v10 = vpop.f32.mrb[44].mxu0 }
 0xbe0   :  { %v3676_v32 = vpop.f32.mrb[45].mxu0  ;;  %v1728_v0 = vadd.f32 %v4819_v5, %v1727_v10  ;;  %v3283_v43 = vmul.f32 -1.442695, %v1857_v7 }
 0xbe2   :  { %v1858_v13 = vadd.f32 %v1842_v49, %v1728_v0  ;;  %4068 = vpow2.f32 %v3283_v43 }
 0xbe3   :  { %v1732_v17 = vpop.f32.mrb[46].mxu0 }
 0xbe4   :  { %v3679_v57 = vpop.f32.mrb[47].mxu0  ;;  %v1733_v34 = vadd.f32 %v4819_v5, %v1732_v17  ;;  %v3284_v45 = vmul.f32 -1.442695, %v1858_v13 }
 0xbe6   :  { %v1859_v47 = vadd.f32 %v1847_v51, %v1733_v34  ;;  %4070 = vpow2.f32 %v3284_v45 }
 0xbe7   :  { %v1737_v61 = vpop.f32.mrb[48].mxu0 }
 0xbe8   :  { %v3682_v4 = vpop.f32.mrb[49].mxu0  ;;  %v1738_v48 = vadd.f32 %v4819_v5, %v1737_v61  ;;  %v3285_v60 = vmul.f32 -1.442695, %v1859_v47  ;;  %v4067_v24 = vpop.eup %4066 }
 0xbe9   :  { %v1876_v21 = vadd.f32 1.0, %v4067_v24 }
 0xbea   :  { %v1860_v30 = vadd.f32 %v1852_v39, %v1738_v48  ;;  %4072 = vpow2.f32 %v3285_v60 }
 0xbec   :  { %v3286_v11 = vmul.f32 -1.442695, %v1860_v30  ;;  %v4069_v63 = vpop.eup %4068 }
 0xbed   :  { %v1877_v27 = vadd.f32 1.0, %v4069_v63 }
 0xbee   :  { %4074 = vpow2.f32 %v3286_v11 }
 0xbef   :  { %4076 = vrcp.f32 %v1876_v21 }
 0xbf0   :  { %v4071_v19 = vpop.eup %4070  ;;  %4078 = vrcp.f32 %v1877_v27 }
 0xbf1   :  { %v1878_v49 = vadd.f32 1.0, %v4071_v19 }
 0xbf3   :  { %4080 = vrcp.f32 %v1878_v49 }
 0xbf4   :  { %v4073_v38 = vpop.eup %4072 }
 0xbf5   :  { %v1879_v23 = vadd.f32 1.0, %v4073_v38 }
 0xbf7   :  { %4082 = vrcp.f32 %v1879_v23 }
 0xbf8   :  { %v4075_v51 = vpop.eup %4074 }
 0xbf9   :  { %v4077_v40 = vpop.eup %4076  ;;  %v1880_v39 = vadd.f32 1.0, %v4075_v51 }
 0xbfa   :  { %v4079_v50 = vpop.eup %4078  ;;  %v1951_v38 = vsub.f32 1.0, %v4077_v40  ;;  %v1981_v23 = vmul.f32 %v4077_v40, %v4837_v6 }
 0xbfb   :  { %4084 = vrcp.f32 %v1880_v39  ;;  %v1982_v39 = vmul.f32 %v4079_v50, %v4842_v33 }
 0xbfd   :  { %v4081_v32 = vpop.eup %4080 }
 0xc01   :  { %v4083_v61 = vpop.eup %4082 }
 0xc05   :  { %v4085_v59 = vpop.eup %4084 }
 0xc3b   :  { %v1902_v58 = vpop.permute.xlu0 %1901 }
 0xc3c   :  { %v1916_v42 = vmul.f32 %v4077_v40, %v1902_v58 }
 0xc3e   :  { %1926 = vrot.lane.b32.xlu1 %v1916_v42, %s4222_s1 }
 0xc3f   :  { %v1904_v54 = vpop.permute.xlu1 %1903 }
 0xc40   :  { %v1917_v10 = vmul.f32 %v4079_v50, %v1904_v54 }
 0xc42   :  { %1928 = vrot.lane.b32.xlu0 %v1917_v10, %s4222_s1 }
 0xc43   :  { %v1906_v17 = vpop.permute.xlu0 %1905 }
 0xc44   :  { %v1918_v57 = vmul.f32 %v4081_v32, %v1906_v17  ;;  %v1953_v17 = vsub.f32 1.0, %v4081_v32 }
 0xc46   :  { %1930 = vrot.lane.b32.xlu1 %v1918_v57, %s4222_s1 }
 0xc47   :  { %v1908_v4 = vpop.permute.xlu1 %1907 }
 0xc48   :  { %v1919_v12 = vmul.f32 %v4083_v61, %v1908_v4  ;;  %v1983_v4 = vmul.f32 %v4081_v32, %v4847_v55  ;;  %v1985_v32 = vmul.f32 %v4085_v59, %v4857_v56 }
 0xc4a   :  { %1932 = vrot.lane.b32.xlu0 %v1919_v12, %s4222_s1 }
 0xc4b   :  { %v1910_v7 = vpop.permute.xlu0 %1909 }
 0xc4c   :  { %v1920_v43 = vmul.f32 %v4085_v59, %v1910_v7  ;;  %v1954_v7 = vsub.f32 1.0, %v4083_v61 }
 0xc4e   :  { %1934 = vrot.lane.b32.xlu1 %v1920_v43, %s4222_s1 }
 0xcb0   :  { %v1927_v13 = vpop.permute.xlu1 %1926 }
 0xcb1   :  { %v1941_v45 = vadd.f32 %v1927_v13, %v1718_v62 }
 0xcb3   :  { %4086 = vtanh.f32 %v1941_v45 }
 0xcb4   :  { %v1929_v47 = vpop.permute.xlu0 %1928 }
 0xcb5   :  { %v1942_v60 = vadd.f32 %v1929_v47, %v1723_v29  ;;  %v1955_v47 = vsub.f32 1.0, %v4085_v59  ;;  %v4189_v59 = vld [vmem:[%s5404_s0 + $0x60] sm:$0xff] }
 0xcb7   :  { %4088 = vtanh.f32 %v1942_v60 }
 0xcb8   :  { %v1931_v30 = vpop.permute.xlu1 %1930 }
 0xcb9   :  { %v1943_v24 = vadd.f32 %v1931_v30, %v1728_v0 }
 0xcbb   :  { %4090 = vtanh.f32 %v1943_v24 }
 0xcbc   :  { %v1933_v11 = vpop.permute.xlu0 %1932 }
 0xcbd   :  { %v4087_v21 = vpop.eup %4086  ;;  %v1944_v63 = vadd.f32 %v1933_v11, %v1733_v34  ;;  %v4188_v11 = vld [vmem:[%s5404_s0 + $0x58] sm:$0xff] }
 0xcbe   :  { %1961 = vrot.lane.b32.xlu0 %v4087_v21, %s4223_s8  ;;  %v4190_v21 = vld [vmem:[%s5404_s0 + $0x68] sm:$0xff] }
 0xcbf   :  { %4092 = vtanh.f32 %v1944_v63  ;;  %v4191_v63 = vld [vmem:[%s5404_s0 + $0x70] sm:$0xff] }
 0xcc0   :  { %v1935_v27 = vpop.permute.xlu1 %1934 }
 0xcc1   :  { %v4089_v19 = vpop.eup %4088  ;;  %v1945_v49 = vadd.f32 %v1935_v27, %v1738_v48  ;;  %v1952_v48 = vsub.f32 1.0, %v4079_v50  ;;  %v1984_v50 = vmul.f32 %v4083_v61, %v4852_v26  ;;  %v4187_v61 = vld [vmem:[%s5404_s0 + $0x50] sm:$0xff] }
 0xcc2   :  { %1963 = vrot.lane.b32.xlu1 %v4089_v19, %s4223_s8 }
 0xcc3   :  { %4094 = vtanh.f32 %v1945_v49 }
 0xcc5   :  { %v4091_v62 = vpop.eup %4090 }
 0xcc6   :  { %1965 = vrot.lane.b32.xlu0 %v4091_v62, %s4223_s8 }
 0xcc9   :  { %v4093_v29 = vpop.eup %4092 }
 0xcca   :  { %1967 = vrot.lane.b32.xlu1 %v4093_v29, %s4223_s8 }
 0xccd   :  { %v4095_v0 = vpop.eup %4094 }
 0xcce   :  { %1969 = vrot.lane.b32.xlu0 %v4095_v0, %s4223_s8 }
 0xd30   :  { %v1962_v34 = vpop.permute.xlu0 %1961 }
 0xd31   :  { %v1976_v51 = vmul.f32 %v1962_v34, %v1951_v38  ;;  %v4192_v38 = vld [vmem:[%s5404_s0 + $0xc8] sm:$0xff] }
 0xd33   :  { %v4945_v58 = vadd.f32 %v1981_v23, %v1976_v51 }
 0xd34   :  { %v1964_v42 = vpop.permute.xlu1 %1963 }
 0xd35   :  { %v1977_v54 = vmul.f32 %v1964_v42, %v1952_v48  ;;  %2131 = vrot.lane.b32.xlu1 %v4945_v58, %s4223_s8  ;;  %v4193_v48 = vld [vmem:[%s5404_s0 + $0xd0] sm:$0xff] }
 0xd37   :  { %v4950_v10 = vadd.f32 %v1982_v39, %v1977_v54  ;;  %v4194_v39 = vld [vmem:[%s5404_s0 + $0xd8] sm:$0xff] }
 0xd38   :  { %v1966_v57 = vpop.permute.xlu0 %1965 }
 0xd39   :  { %v1978_v12 = vmul.f32 %v1966_v57, %v1953_v17  ;;  %2133 = vrot.lane.b32.xlu0 %v4950_v10, %s4223_s8  ;;  %v4195_v57 = vld [vmem:[%s5404_s0 + $0xe0] sm:$0xff] }
 0xd3b   :  { %v4955_v40 = vadd.f32 %v1983_v4, %v1978_v12 }
 0xd3c   :  { %v1968_v43 = vpop.permute.xlu1 %1967 }
 0xd3d   :  { %v1979_v13 = vmul.f32 %v1968_v43, %v1954_v7  ;;  %2135 = vrot.lane.b32.xlu1 %v4955_v40, %s4223_s8  ;;  %v4196_v7 = vld [vmem:[%s5404_s0 + $0xe8] sm:$0xff] }
 0xd3f   :  { %v4960_v45 = vadd.f32 %v1984_v50, %v1979_v13 }
 0xd40   :  { %v1970_v60 = vpop.permute.xlu0 %1969 }
 0xd41   :  { %v1980_v30 = vmul.f32 %v1970_v60, %v1955_v47  ;;  %2137 = vrot.lane.b32.xlu0 %v4960_v45, %s4223_s8 }
 0xd43   :  { %v4965_v24 = vadd.f32 %v1985_v32, %v1980_v30 }
 0xd45   :  { %2139 = vrot.lane.b32.xlu1 %v4965_v24, %s4223_s8  ;;  %2001 = vrot.lane.b32.xlu0 %v4187_v61, %s4221_s22 }
 0xd49   :  { %2003 = vrot.lane.b32.xlu1 %v4188_v11, %s4221_s22  ;;  %2005 = vrot.lane.b32.xlu0 %v4189_v59, %s4221_s22 }
 0xd4d   :  { %2007 = vrot.lane.b32.xlu1 %v4190_v21, %s4221_s22  ;;  %2009 = vrot.lane.b32.xlu0 %v4191_v63, %s4221_s22 }
 0xda7   :  { %v2132_v27 = vpop.permute.xlu1 %2131 }
 0xda8   :  { %3738 = vmatmul.mubr.msk.f32.vlgmr.msra.gmra.mrb[50].mxu1 %vm73_vm2, %v2132_v27 }
 0xda9   :  { %3740 = vmatprep.mubr.msk.f32.mxu1 %vm4219_vm0, %v4220_v3  ;;  %3924 = vmatpush3.bf16.msra.mxu1 %v4277_v8 }
 0xdaa   :  { %3925 = vmatprep.subr.bf16.mxu1 %v4218_v1 }
 0xdab   :  { %v2134_v19 = vpop.permute.xlu0 %2133 }
 0xdac   :  { %3741 = vmatmul.mubr.msk.f32.gmra.mrb[52].mxu1 %vm73_vm2, %v2134_v19 }
 0xdad   :  { %3743 = vmatprep.mubr.msk.f32.mxu1 %vm4219_vm0, %v4220_v3  ;;  %3927 = vmatpush3.bf16.msra.mxu1 %v4298_v14 }
 0xdae   :  { %3934 = vmatprep.subr.bf16.mxu1 %v4218_v1 }
 0xdaf   :  { %v2136_v49 = vpop.permute.xlu1 %2135 }
 0xdb0   :  { %3744 = vmatmul.mubr.msk.f32.gmra.mrb[54].mxu1 %vm73_vm2, %v2136_v49 }
 0xdb1   :  { %3746 = vmatprep.mubr.msk.f32.mxu1 %vm4219_vm0, %v4220_v3 }
 0xdb3   :  { %v2138_v62 = vpop.permute.xlu0 %2137 }
 0xdb4   :  { %3747 = vmatmul.mubr.msk.f32.gmra.mrb[56].mxu1 %vm73_vm2, %v2138_v62 }
 0xdb5   :  { %3749 = vmatprep.mubr.msk.f32.mxu1 %vm4219_vm0, %v4220_v3 }
 0xdb7   :  { %v2002_v29 = vpop.permute.xlu0 %2001  ;;  %v2140_v0 = vpop.permute.xlu1 %2139 }
 0xdb8   :  { %v2016_v34 = vsel %vm61_vm1, %v4192_v38, %v2002_v29  ;;  %3750 = vmatmul.mubr.msk.f32.gmra.mrb[58].mxu1 %vm73_vm2, %v2140_v0 }
 0xdb9   :  { %3715 = vmatmul.mubr.msk.f32.vlgmr.msra.gmra.mrb[50].mxu0 %vm73_vm2, %v2016_v34  ;;  %3783 = vmatprep.mubr.msk.f32.mxu1 %vm4219_vm0, %v4220_v3 }
 0xdba   :  { %3717 = vmatprep.mubr.msk.f32.mxu0 %vm4219_vm0, %v4220_v3  ;;  %3918 = vmatpush3.bf16.msra.mxu0 %v4300_v15 }
 0xdbb   :  { %v2004_v23 = vpop.permute.xlu1 %2003  ;;  %v2006_v51 = vpop.permute.xlu0 %2005  ;;  %3919 = vmatprep.subr.bf16.mxu0 %v4218_v1 }
 0xdbc   :  { %v2017_v42 = vsel %vm61_vm1, %v4193_v48, %v2004_v23  ;;  %v2018_v54 = vsel %vm61_vm1, %v4194_v39, %v2006_v51 }
 0xdbd   :  { %3718 = vmatmul.mubr.msk.f32.gmra.mrb[52].mxu0 %vm73_vm2, %v2017_v42 }
 0xdbe   :  { %3720 = vmatprep.mubr.msk.f32.mxu0 %vm4219_vm0, %v4220_v3  ;;  %3921 = vmatpush3.bf16.msra.mxu0 %v4312_v18 }
 0xdbf   :  { %v2008_v17 = vpop.permute.xlu1 %2007  ;;  %3928 = vmatprep.subr.bf16.mxu0 %v4218_v1  ;;  %v2010_v12 = vpop.permute.xlu0 %2009 }
 0xdc0   :  { %v2019_v4 = vsel %vm61_vm1, %v4195_v57, %v2008_v17  ;;  %v2020_v43 = vsel %vm61_vm1, %v4196_v7, %v2010_v12 }
 0xdc1   :  { %3721 = vmatmul.mubr.msk.f32.gmra.mrb[54].mxu0 %vm73_vm2, %v2018_v54 }
 0xdc2   :  { %3723 = vmatprep.mubr.msk.f32.mxu0 %vm4219_vm0, %v4220_v3 }
 0xdc5   :  { %3724 = vmatmul.mubr.msk.f32.gmra.mrb[56].mxu0 %vm73_vm2, %v2019_v4 }
 0xdc6   :  { %3726 = vmatprep.mubr.msk.f32.mxu0 %vm4219_vm0, %v4220_v3 }
 0xdc9   :  { %3727 = vmatmul.mubr.msk.f32.gmra.mrb[58].mxu0 %vm73_vm2, %v2020_v43 }
 0xdca   :  { %3760 = vmatprep.mubr.msk.f32.mxu0 %vm4219_vm0, %v4220_v3 }
 0xe7b   :  { %v2217_v50 = vpop.f32.mrb[50].mxu1 }
 0xe7c   :  { %v2276_v13 = vadd.f32 %v2217_v50, %v4382_v35  ;;  %v3739_v47 = vpop.f32.mrb[51].mxu1 }
 0xe7e   :  { %2286 = vrot.lane.b32.xlu1 %v2276_v13, %s4222_s1 }
 0xe7f   :  { %v2222_v60 = vpop.f32.mrb[52].mxu1 }
 0xe80   :  { %v2277_v32 = vadd.f32 %v2222_v60, %v4382_v35  ;;  %v3742_v30 = vpop.f32.mrb[53].mxu1 }
 0xe82   :  { %2288 = vrot.lane.b32.xlu0 %v2277_v32, %s4222_s1 }
 0xe83   :  { %v2227_v61 = vpop.f32.mrb[54].mxu1 }
 0xe84   :  { %v2278_v11 = vadd.f32 %v2227_v61, %v4382_v35  ;;  %v3745_v59 = vpop.f32.mrb[55].mxu1 }
 0xe86   :  { %2290 = vrot.lane.b32.xlu1 %v2278_v11, %s4222_s1 }
 0xe87   :  { %v2232_v21 = vpop.f32.mrb[56].mxu1 }
 0xe88   :  { %v2279_v63 = vadd.f32 %v2232_v21, %v4382_v35  ;;  %v3748_v27 = vpop.f32.mrb[57].mxu1 }
 0xe8a   :  { %2292 = vrot.lane.b32.xlu0 %v2279_v63, %s4222_s1 }
 0xe8b   :  { %v2237_v19 = vpop.f32.mrb[58].mxu1 }
 0xe8c   :  { %v2280_v49 = vadd.f32 %v2237_v19, %v4382_v35  ;;  %v2102_v62 = vpop.f32.mrb[50].mxu0  ;;  %v3751_v29 = vpop.f32.mrb[59].mxu1 }
 0xe8d   :  { %v3716_v0 = vpop.f32.mrb[51].mxu0  ;;  %v2103_v17 = vadd.f32 %v4819_v5, %v2102_v62 }
 0xe8e   :  { %2294 = vrot.lane.b32.xlu1 %v2280_v49, %s4222_s1 }
 0xe8f   :  { %v2241_v57 = vadd.f32 %v2217_v50, %v2103_v17 }
 0xe90   :  { %v2107_v38 = vpop.f32.mrb[52].mxu0 }
 0xe91   :  { %v3719_v34 = vpop.f32.mrb[53].mxu0  ;;  %v2108_v4 = vadd.f32 %v4819_v5, %v2107_v38  ;;  %v3297_v12 = vmul.f32 -1.442695, %v2241_v57 }
 0xe93   :  { %v2242_v7 = vadd.f32 %v2222_v60, %v2108_v4  ;;  %4096 = vpow2.f32 %v3297_v12 }
 0xe94   :  { %v2112_v23 = vpop.f32.mrb[54].mxu0 }
 0xe95   :  { %v3722_v51 = vpop.f32.mrb[55].mxu0  ;;  %v2113_v43 = vadd.f32 %v4819_v5, %v2112_v23  ;;  %v3298_v13 = vmul.f32 -1.442695, %v2242_v7 }
 0xe97   :  { %v2243_v47 = vadd.f32 %v2227_v61, %v2113_v43  ;;  %4098 = vpow2.f32 %v3298_v13 }
 0xe98   :  { %v2117_v48 = vpop.f32.mrb[56].mxu0 }
 0xe99   :  { %v3725_v42 = vpop.f32.mrb[57].mxu0  ;;  %v2118_v32 = vadd.f32 %v4819_v5, %v2117_v48  ;;  %v3299_v30 = vmul.f32 -1.442695, %v2243_v47 }
 0xe9b   :  { %v2244_v11 = vadd.f32 %v2232_v21, %v2118_v32  ;;  %4100 = vpow2.f32 %v3299_v30 }
 0xe9c   :  { %v2122_v39 = vpop.f32.mrb[58].mxu0 }
 0xe9d   :  { %v3728_v54 = vpop.f32.mrb[59].mxu0  ;;  %v2123_v59 = vadd.f32 %v4819_v5, %v2122_v39  ;;  %v3300_v63 = vmul.f32 -1.442695, %v2244_v11  ;;  %v4097_v50 = vpop.eup %4096 }
 0xe9e   :  { %v2261_v62 = vadd.f32 1.0, %v4097_v50 }
 0xe9f   :  { %v2245_v27 = vadd.f32 %v2237_v19, %v2123_v59  ;;  %4102 = vpow2.f32 %v3300_v63 }
 0xea1   :  { %v3301_v49 = vmul.f32 -1.442695, %v2245_v27  ;;  %v4099_v60 = vpop.eup %4098 }
 0xea2   :  { %v2262_v29 = vadd.f32 1.0, %v4099_v60 }
 0xea3   :  { %4104 = vpow2.f32 %v3301_v49 }
 0xea4   :  { %4106 = vrcp.f32 %v2261_v62 }
 0xea5   :  { %v4101_v0 = vpop.eup %4100  ;;  %4108 = vrcp.f32 %v2262_v29 }
 0xea6   :  { %v2263_v61 = vadd.f32 1.0, %v4101_v0 }
 0xea8   :  { %4110 = vrcp.f32 %v2263_v61 }
 0xea9   :  { %v4103_v38 = vpop.eup %4102 }
 0xeaa   :  { %v2264_v34 = vadd.f32 1.0, %v4103_v38 }
 0xeac   :  { %4112 = vrcp.f32 %v2264_v34 }
 0xead   :  { %v4105_v21 = vpop.eup %4104 }
 0xeae   :  { %v4107_v23 = vpop.eup %4106  ;;  %v2265_v19 = vadd.f32 1.0, %v4105_v21 }
 0xeaf   :  { %v4109_v48 = vpop.eup %4108 }
 0xeb0   :  { %4114 = vrcp.f32 %v2265_v19  ;;  %v2366_v19 = vmul.f32 %v4107_v23, %v4945_v58 }
 0xeb2   :  { %v4111_v54 = vpop.eup %4110 }
 0xeb6   :  { %v4113_v7 = vpop.eup %4112 }
 0xeba   :  { %v4115_v30 = vpop.eup %4114 }
 0xef0   :  { %v2287_v5 = vpop.permute.xlu1 %2286 }
 0xef1   :  { %v2301_v51 = vmul.f32 %v4107_v23, %v2287_v5 }
 0xef3   :  { %2311 = vrot.lane.b32.xlu0 %v2301_v51, %s4222_s1  ;;  %v2336_v51 = vsub.f32 1.0, %v4107_v23 }
 0xef4   :  { %v2289_v42 = vpop.permute.xlu0 %2288 }
 0xef5   :  { %v2302_v39 = vmul.f32 %v4109_v48, %v2289_v42 }
 0xef7   :  { %2313 = vrot.lane.b32.xlu1 %v2302_v39, %s4222_s1 }
 0xef8   :  { %v2291_v57 = vpop.permute.xlu1 %2290 }
 0xef9   :  { %v2303_v12 = vmul.f32 %v4111_v54, %v2291_v57 }
 0xefb   :  { %2315 = vrot.lane.b32.xlu0 %v2303_v12, %s4222_s1  ;;  %v2367_v12 = vmul.f32 %v4109_v48, %v4950_v10 }
 0xefc   :  { %v2293_v13 = vpop.permute.xlu0 %2292 }
 0xefd   :  { %v2304_v47 = vmul.f32 %v4113_v7, %v2293_v13 }
 0xeff   :  { %2317 = vrot.lane.b32.xlu1 %v2304_v47, %s4222_s1 }
 0xf00   :  { %v2295_v11 = vpop.permute.xlu1 %2294 }
 0xf01   :  { %v2305_v63 = vmul.f32 %v4115_v30, %v2295_v11  ;;  %v2338_v11 = vsub.f32 1.0, %v4111_v54 }
 0xf03   :  { %2319 = vrot.lane.b32.xlu0 %v2305_v63, %s4222_s1 }
 0xf65   :  { %v2312_v27 = vpop.permute.xlu0 %2311 }
 0xf66   :  { %v2326_v50 = vadd.f32 %v2312_v27, %v2103_v17  ;;  %v2368_v27 = vmul.f32 %v4111_v54, %v4955_v40  ;;  %v2370_v54 = vmul.f32 %v4115_v30, %v4965_v24 }
 0xf68   :  { %4116 = vtanh.f32 %v2326_v50 }
 0xf69   :  { %v2314_v49 = vpop.permute.xlu1 %2313 }
 0xf6a   :  { %v2327_v62 = vadd.f32 %v2314_v49, %v2108_v4  ;;  %v2339_v49 = vsub.f32 1.0, %v4113_v7 }
 0xf6c   :  { %4118 = vtanh.f32 %v2327_v62 }
 0xf6d   :  { %v2316_v60 = vpop.permute.xlu0 %2315 }
 0xf6e   :  { %v2328_v29 = vadd.f32 %v2316_v60, %v2113_v43 }
 0xf70   :  { %4120 = vtanh.f32 %v2328_v29 }
 0xf71   :  { %v2318_v0 = vpop.permute.xlu1 %2317 }
 0xf72   :  { %v4117_v61 = vpop.eup %4116  ;;  %v2329_v38 = vadd.f32 %v2318_v0, %v2118_v32  ;;  %v2340_v0 = vsub.f32 1.0, %v4115_v30  ;;  %v4199_v30 = vld [vmem:[%s5404_s0 + $0x38] sm:$0xff] }
 0xf73   :  { %2346 = vrot.lane.b32.xlu1 %v4117_v61, %s4223_s8 }
 0xf74   :  { %4122 = vtanh.f32 %v2329_v38 }
 0xf75   :  { %v2320_v34 = vpop.permute.xlu0 %2319 }
 0xf76   :  { %v4119_v21 = vpop.eup %4118  ;;  %v2330_v5 = vadd.f32 %v2320_v34, %v2123_v59  ;;  %v2337_v59 = vsub.f32 1.0, %v4109_v48  ;;  %v2369_v48 = vmul.f32 %v4113_v7, %v4960_v45  ;;  %v4197_v7 = vld [vmem:[%s5404_s0 + $0x28] sm:$0xff] }
 0xf77   :  { %2348 = vrot.lane.b32.xlu0 %v4119_v21, %s4223_s8  ;;  %v4198_v21 = vld [vmem:[%s5404_s0 + $0x30] sm:$0xff] }
 0xf78   :  { %4124 = vtanh.f32 %v2330_v5  ;;  %v4200_v5 = vld [vmem:[%s5404_s0 + $0x40] sm:$0xff] }
 0xf7a   :  { %v4121_v17 = vpop.eup %4120 }
 0xf7b   :  { %2350 = vrot.lane.b32.xlu1 %v4121_v17, %s4223_s8  ;;  %v4201_v17 = vld [vmem:[%s5404_s0 + $0x48] sm:$0xff] }
 0xf7e   :  { %v4123_v4 = vpop.eup %4122 }
 0xf7f   :  { %2352 = vrot.lane.b32.xlu0 %v4123_v4, %s4223_s8 }
 0xf82   :  { %v4125_v43 = vpop.eup %4124 }
 0xf83   :  { %2354 = vrot.lane.b32.xlu1 %v4125_v43, %s4223_s8 }
 0xfe5   :  { %v2347_v32 = vpop.permute.xlu1 %2346 }
 0xfe6   :  { %v2361_v42 = vmul.f32 %v2347_v32, %v2336_v51 }
 0xfe8   :  { %v5073_v39 = vadd.f32 %v2366_v19, %v2361_v42  ;;  %v4202_v42 = vld [vmem:[%s5404_s0 + $0xf0] sm:$0xff] }
 0xfe9   :  { %v2349_v57 = vpop.permute.xlu0 %2348 }
 0xfea   :  { %v2362_v13 = vmul.f32 %v2349_v57, %v2337_v59  ;;  %2516 = vrot.lane.b32.xlu0 %v5073_v39, %s4223_s8 }
 0xfec   :  { %v5078_v47 = vadd.f32 %v2367_v12, %v2362_v13  ;;  %v4203_v12 = vld [vmem:[%s5404_s0 + $0xf8] sm:$0xff] }
 0xfed   :  { %v2351_v63 = vpop.permute.xlu1 %2350 }
 0xfee   :  { %v2363_v50 = vmul.f32 %v2351_v63, %v2338_v11  ;;  %2518 = vrot.lane.b32.xlu1 %v5078_v47, %s4223_s8  ;;  %v4204_v11 = vld [vmem:[%s5404_s0 + $0x100] sm:$0xff] }
 0xff0   :  { %v5083_v23 = vadd.f32 %v2368_v27, %v2363_v50 }
 0xff1   :  { %v2353_v62 = vpop.permute.xlu0 %2352 }
 0xff2   :  { %v2364_v60 = vmul.f32 %v2353_v62, %v2339_v49  ;;  %2520 = vrot.lane.b32.xlu0 %v5083_v23, %s4223_s8  ;;  %v4206_v49 = vld [vmem:[%s5404_s0 + $0x110] sm:$0xff] }
 0xff4   :  { %v5088_v29 = vadd.f32 %v2369_v48, %v2364_v60 }
 0xff5   :  { %v2355_v61 = vpop.permute.xlu1 %2354 }
 0xff6   :  { %v2365_v38 = vmul.f32 %v2355_v61, %v2340_v0  ;;  %2522 = vrot.lane.b32.xlu1 %v5088_v29, %s4223_s8 }
 0xff8   :  { %v5093_v34 = vadd.f32 %v2370_v54, %v2365_v38 }
 0xffa   :  { %2524 = vrot.lane.b32.xlu0 %v5093_v34, %s4223_s8  ;;  %2386 = vrot.lane.b32.xlu1 %v4197_v7, %s4221_s22 }
 0xffe   :  { %2388 = vrot.lane.b32.xlu0 %v4198_v21, %s4221_s22  ;;  %2390 = vrot.lane.b32.xlu1 %v4199_v30, %s4221_s22 }
0x1002   :  { %2392 = vrot.lane.b32.xlu0 %v4200_v5, %s4221_s22  ;;  %2394 = vrot.lane.b32.xlu1 %v4201_v17, %s4221_s22 }
0x105c   :  { %v2517_v4 = vpop.permute.xlu0 %2516 }
0x105d   :  { %3784 = vmatmul.mubr.msk.f32.vlgmr.msra.gmra.mrb[60].mxu1 %vm73_vm2, %v2517_v4 }
0x105e   :  { %3786 = vmatprep.mubr.msk.f32.mxu1 %vm4219_vm0, %v4220_v3  ;;  %3936 = vmatpush3.bf16.msra.mxu1 %v4277_v8 }
0x105f   :  { %3937 = vmatprep.subr.bf16.mxu1 %v4218_v1 }
0x1060   :  { %v2519_v43 = vpop.permute.xlu1 %2518 }
0x1061   :  { %3787 = vmatmul.mubr.msk.f32.gmra.mrb[62].mxu1 %vm73_vm2, %v2519_v43 }
0x1062   :  { %3789 = vmatprep.mubr.msk.f32.mxu1 %vm4219_vm0, %v4220_v3  ;;  %3939 = vmatpush3.bf16.msra.mxu1 %v4298_v14 }
0x1064   :  { %v2521_v51 = vpop.permute.xlu0 %2520 }
0x1065   :  { %3790 = vmatmul.mubr.msk.f32.gmra.mrb[64].mxu1 %vm73_vm2, %v2521_v51 }
0x1066   :  { %3792 = vmatprep.mubr.msk.f32.mxu1 %vm4219_vm0, %v4220_v3 }
0x1068   :  { %v2523_v32 = vpop.permute.xlu1 %2522 }
0x1069   :  { %3793 = vmatmul.mubr.msk.f32.gmra.mrb[66].mxu1 %vm73_vm2, %v2523_v32 }
0x106a   :  { %3795 = vmatprep.mubr.msk.f32.mxu1 %vm4219_vm0, %v4220_v3 }
0x106c   :  { %v2387_v8 = vpop.permute.xlu1 %2386  ;;  %v2525_v19 = vpop.permute.xlu0 %2524 }
0x106d   :  { %v2401_v14 = vsel %vm61_vm1, %v4202_v42, %v2387_v8  ;;  %3796 = vmatmul.mubr.msk.f32.gmra.mrb[68].mxu1 %vm73_vm2, %v2525_v19 }
0x106e   :  { %3761 = vmatmul.mubr.msk.f32.vlgmr.msra.gmra.mrb[60].mxu0 %vm73_vm2, %v2401_v14  ;;  %3829 = vmatprep.mubr.msk.f32.mxu1 %vm4219_vm0, %v4220_v3 }
0x106f   :  { %3763 = vmatprep.mubr.msk.f32.mxu0 %vm4219_vm0, %v4220_v3  ;;  %3930 = vmatpush3.bf16.msra.mxu0 %v4300_v15  ;;  %v4205_v15 = vld [vmem:[%s5404_s0 + $0x108] sm:$0xff] }
0x1070   :  { %v2389_v59 = vpop.permute.xlu0 %2388  ;;  %v2391_v57 = vpop.permute.xlu1 %2390  ;;  %3931 = vmatprep.subr.bf16.mxu0 %v4218_v1 }
0x1071   :  { %v2402_v13 = vsel %vm61_vm1, %v4203_v12, %v2389_v59  ;;  %v2403_v63 = vsel %vm61_vm1, %v4204_v11, %v2391_v57 }
0x1072   :  { %3764 = vmatmul.mubr.msk.f32.gmra.mrb[62].mxu0 %vm73_vm2, %v2402_v13 }
0x1073   :  { %3766 = vmatprep.mubr.msk.f32.mxu0 %vm4219_vm0, %v4220_v3  ;;  %3933 = vmatpush3.bf16.msra.mxu0 %v4312_v18 }
0x1074   :  { %v2393_v1 = vpop.permute.xlu0 %2392  ;;  %v2395_v50 = vpop.permute.xlu1 %2394 }
0x1075   :  { %v2404_v27 = vsel %vm61_vm1, %v4205_v15, %v2393_v1  ;;  %v2405_v18 = vsel %vm61_vm1, %v4206_v49, %v2395_v50 }
0x1076   :  { %3767 = vmatmul.mubr.msk.f32.gmra.mrb[64].mxu0 %vm73_vm2, %v2403_v63  ;;  %v5186_v63 = vld [vmem:[%s5408_s3] ss:$0 sm:$0xff] }
0x1077   :  { %3769 = vmatprep.mubr.msk.f32.mxu0 %vm4219_vm0, %v4220_v3 }
0x107a   :  { %3770 = vmatmul.mubr.msk.f32.gmra.mrb[66].mxu0 %vm73_vm2, %v2404_v27 }
0x107b   :  { %3772 = vmatprep.mubr.msk.f32.mxu0 %vm4219_vm0, %v4220_v3 }
0x107e   :  { %3773 = vmatmul.mubr.msk.f32.gmra.mrb[68].mxu0 %vm73_vm2, %v2405_v18 }
0x107f   :  { %3806 = vmatprep.mubr.msk.f32.mxu0 %vm4219_vm0, %v4220_v3 }
0x1130   :  { %v2602_v62 = vpop.f32.mrb[60].mxu1 }
0x1131   :  { %v2661_v48 = vadd.f32 %v2602_v62, %v4382_v35  ;;  %v3785_v60 = vpop.f32.mrb[61].mxu1 }
0x1133   :  { %2671 = vrot.lane.b32.xlu0 %v2661_v48, %s4222_s1 }
0x1134   :  { %v2607_v0 = vpop.f32.mrb[62].mxu1 }
0x1135   :  { %v2662_v61 = vadd.f32 %v2607_v0, %v4382_v35  ;;  %v3788_v54 = vpop.f32.mrb[63].mxu1 }
0x1137   :  { %2673 = vrot.lane.b32.xlu1 %v2662_v61, %s4222_s1 }
0x1138   :  { %v2612_v38 = vpop.f32.mrb[64].mxu1 }
0x1139   :  { %v2663_v7 = vadd.f32 %v2612_v38, %v4382_v35  ;;  %v3791_v21 = vpop.f32.mrb[65].mxu1 }
0x113b   :  { %2675 = vrot.lane.b32.xlu0 %v2663_v7, %s4222_s1 }
0x113c   :  { %v2617_v30 = vpop.f32.mrb[66].mxu1 }
0x113d   :  { %v2664_v5 = vadd.f32 %v2617_v30, %v4382_v35  ;;  %v3794_v17 = vpop.f32.mrb[67].mxu1 }
0x113f   :  { %2677 = vrot.lane.b32.xlu1 %v2664_v5, %s4222_s1 }
0x1140   :  { %v2622_v4 = vpop.f32.mrb[68].mxu1 }
0x1141   :  { %v2665_v43 = vadd.f32 %v2622_v4, %v4382_v35  ;;  %v2487_v51 = vpop.f32.mrb[60].mxu0  ;;  %v3797_v32 = vpop.f32.mrb[69].mxu1 }
0x1142   :  { %v3762_v8 = vpop.f32.mrb[61].mxu0  ;;  %v2488_v1 = vadd.f32 %v5186_v63, %v2487_v51 }
0x1143   :  { %2679 = vrot.lane.b32.xlu0 %v2665_v43, %s4222_s1 }
0x1144   :  { %v2626_v15 = vadd.f32 %v2602_v62, %v2488_v1 }
0x1145   :  { %v2492_v19 = vpop.f32.mrb[62].mxu0 }
0x1146   :  { %v3765_v42 = vpop.f32.mrb[63].mxu0  ;;  %v2493_v27 = vadd.f32 %v5186_v63, %v2492_v19  ;;  %v3312_v50 = vmul.f32 -1.442695, %v2626_v15 }
0x1148   :  { %v2627_v49 = vadd.f32 %v2607_v0, %v2493_v27  ;;  %4126 = vpow2.f32 %v3312_v50 }
0x1149   :  { %v2497_v14 = vpop.f32.mrb[64].mxu0 }
0x114a   :  { %v3768_v59 = vpop.f32.mrb[65].mxu0  ;;  %v2498_v18 = vadd.f32 %v5186_v63, %v2497_v14  ;;  %v3313_v48 = vmul.f32 -1.442695, %v2627_v49 }
0x114c   :  { %v2628_v60 = vadd.f32 %v2612_v38, %v2498_v18  ;;  %4128 = vpow2.f32 %v3313_v48 }
0x114d   :  { %v2502_v57 = vpop.f32.mrb[66].mxu0 }
0x114e   :  { %v3771_v12 = vpop.f32.mrb[67].mxu0  ;;  %v2503_v61 = vadd.f32 %v5186_v63, %v2502_v57  ;;  %v3314_v54 = vmul.f32 -1.442695, %v2628_v60 }
0x1150   :  { %v2629_v7 = vadd.f32 %v2617_v30, %v2503_v61  ;;  %4130 = vpow2.f32 %v3314_v54 }
0x1151   :  { %v2507_v13 = vpop.f32.mrb[68].mxu0 }
0x1152   :  { %v3774_v11 = vpop.f32.mrb[69].mxu0  ;;  %v2508_v21 = vadd.f32 %v5186_v63, %v2507_v13  ;;  %v3315_v5 = vmul.f32 -1.442695, %v2629_v7  ;;  %v4127_v62 = vpop.eup %4126 }
0x1153   :  { %v2646_v51 = vadd.f32 1.0, %v4127_v62 }
0x1154   :  { %v2630_v17 = vadd.f32 %v2622_v4, %v2508_v21  ;;  %4132 = vpow2.f32 %v3315_v5 }
0x1156   :  { %v3316_v43 = vmul.f32 -1.442695, %v2630_v17  ;;  %v4129_v0 = vpop.eup %4128 }
0x1157   :  { %v2647_v32 = vadd.f32 1.0, %v4129_v0 }
0x1158   :  { %4134 = vpow2.f32 %v3316_v43 }
0x1159   :  { %4136 = vrcp.f32 %v2646_v51 }
0x115a   :  { %v4131_v8 = vpop.eup %4130  ;;  %4138 = vrcp.f32 %v2647_v32 }
0x115b   :  { %v2648_v38 = vadd.f32 1.0, %v4131_v8 }
0x115d   :  { %4140 = vrcp.f32 %v2648_v38 }
0x115e   :  { %v4133_v19 = vpop.eup %4132 }
0x115f   :  { %v2649_v42 = vadd.f32 1.0, %v4133_v19 }
0x1161   :  { %4142 = vrcp.f32 %v2649_v42 }
0x1162   :  { %v4135_v30 = vpop.eup %4134 }
0x1163   :  { %v4137_v14 = vpop.eup %4136  ;;  %v2650_v4 = vadd.f32 1.0, %v4135_v30 }
0x1164   :  { %v4139_v12 = vpop.eup %4138 }
0x1165   :  { %4144 = vrcp.f32 %v2650_v4  ;;  %v2721_v4 = vsub.f32 1.0, %v4137_v14 }
0x1167   :  { %v4141_v15 = vpop.eup %4140 }
0x116b   :  { %v4143_v48 = vpop.eup %4142 }
0x116f   :  { %v4145_v7 = vpop.eup %4144 }
0x11a5   :  { %v2672_v59 = vpop.permute.xlu0 %2671 }
0x11a6   :  { %v2686_v57 = vmul.f32 %v4137_v14, %v2672_v59 }
0x11a8   :  { %2696 = vrot.lane.b32.xlu1 %v2686_v57, %s4222_s1 }
0x11a9   :  { %v2674_v13 = vpop.permute.xlu1 %2673 }
0x11aa   :  { %v2687_v11 = vmul.f32 %v4139_v12, %v2674_v13  ;;  %v2751_v13 = vmul.f32 %v4137_v14, %v5073_v39 }
0x11ac   :  { %2698 = vrot.lane.b32.xlu0 %v2687_v11, %s4222_s1 }
0x11ad   :  { %v2676_v50 = vpop.permute.xlu0 %2675 }
0x11ae   :  { %v2688_v49 = vmul.f32 %v4141_v15, %v2676_v50 }
0x11b0   :  { %2700 = vrot.lane.b32.xlu1 %v2688_v49, %s4222_s1 }
0x11b1   :  { %v2678_v60 = vpop.permute.xlu1 %2677 }
0x11b2   :  { %v2689_v54 = vmul.f32 %v4143_v48, %v2678_v60  ;;  %v2752_v60 = vmul.f32 %v4139_v12, %v5078_v47 }
0x11b4   :  { %2702 = vrot.lane.b32.xlu0 %v2689_v54, %s4222_s1 }
0x11b5   :  { %v2680_v5 = vpop.permute.xlu0 %2679 }
0x11b6   :  { %v2690_v17 = vmul.f32 %v4145_v7, %v2680_v5 }
0x11b8   :  { %2704 = vrot.lane.b32.xlu1 %v2690_v17, %s4222_s1  ;;  %v2723_v17 = vsub.f32 1.0, %v4141_v15 }
0x121a   :  { %v2697_v62 = vpop.permute.xlu1 %2696 }
0x121b   :  { %v2711_v43 = vadd.f32 %v2697_v62, %v2488_v1 }
0x121d   :  { %4146 = vtanh.f32 %v2711_v43  ;;  %v2753_v43 = vmul.f32 %v4141_v15, %v5083_v23  ;;  %v2755_v15 = vmul.f32 %v4145_v7, %v5093_v34 }
0x121e   :  { %v2699_v51 = vpop.permute.xlu0 %2698 }
0x121f   :  { %v2712_v0 = vadd.f32 %v2699_v51, %v2493_v27 }
0x1221   :  { %4148 = vtanh.f32 %v2712_v0  ;;  %v2724_v0 = vsub.f32 1.0, %v4143_v48 }
0x1222   :  { %v2701_v32 = vpop.permute.xlu1 %2700 }
0x1223   :  { %v2713_v8 = vadd.f32 %v2701_v32, %v2498_v18 }
0x1225   :  { %4150 = vtanh.f32 %v2713_v8 }
0x1226   :  { %v2703_v38 = vpop.permute.xlu0 %2702 }
0x1227   :  { %v4147_v19 = vpop.eup %4146  ;;  %v2714_v42 = vadd.f32 %v2703_v38, %v2503_v61 }
0x1228   :  { %2731 = vrot.lane.b32.xlu0 %v4147_v19, %s4223_s8  ;;  %v2725_v19 = vsub.f32 1.0, %v4145_v7  ;;  %v4210_v7 = vld [vmem:[%s5404_s0 + $0x10] sm:$0xff] }
0x1229   :  { %4152 = vtanh.f32 %v2714_v42 }
0x122a   :  { %v2705_v30 = vpop.permute.xlu1 %2704 }
0x122b   :  { %v4149_v59 = vpop.eup %4148  ;;  %v2715_v57 = vadd.f32 %v2705_v30, %v2508_v21  ;;  %v2722_v21 = vsub.f32 1.0, %v4139_v12  ;;  %v2754_v12 = vmul.f32 %v4143_v48, %v5088_v29  ;;  %v4208_v48 = vld [vmem:[%s5404_s0] sm:$0xff] }
0x122c   :  { %2733 = vrot.lane.b32.xlu1 %v4149_v59, %s4223_s8 }
0x122d   :  { %4154 = vtanh.f32 %v2715_v57  ;;  %v4209_v57 = vld [vmem:[%s5404_s0 + $0x8] sm:$0xff] }
0x122f   :  { %v4151_v1 = vpop.eup %4150 }
0x1230   :  { %2735 = vrot.lane.b32.xlu0 %v4151_v1, %s4223_s8  ;;  %v4211_v1 = vld [vmem:[%s5404_s0 + $0x18] sm:$0xff] }
0x1233   :  { %v4153_v27 = vpop.eup %4152 }
0x1234   :  { %2737 = vrot.lane.b32.xlu1 %v4153_v27, %s4223_s8  ;;  %v4212_v27 = vld [vmem:[%s5404_s0 + $0x20] sm:$0xff] }
0x1237   :  { %v4155_v18 = vpop.eup %4154 }
0x1238   :  { %2739 = vrot.lane.b32.xlu0 %v4155_v18, %s4223_s8 }
0x129a   :  { %v2732_v61 = vpop.permute.xlu0 %2731 }
0x129b   :  { %v2746_v11 = vmul.f32 %v2732_v61, %v2721_v4 }
0x129d   :  { %v5204_v50 = vadd.f32 %v2751_v13, %v2746_v11 }
0x129e   :  { %v2734_v49 = vpop.permute.xlu1 %2733 }
0x129f   :  { %v2747_v54 = vmul.f32 %v2734_v49, %v2722_v21  ;;  %2901 = vrot.lane.b32.xlu1 %v5204_v50, %s4223_s8  ;;  %v4213_v49 = vld [vmem:[%s5404_s0 + $0x118] sm:$0xff] }
0x12a1   :  { %v5209_v5 = vadd.f32 %v2752_v60, %v2747_v54 }
0x12a2   :  { %v2736_v62 = vpop.permute.xlu0 %2735 }
0x12a3   :  { %v2748_v51 = vmul.f32 %v2736_v62, %v2723_v17  ;;  %2903 = vrot.lane.b32.xlu0 %v5209_v5, %s4223_s8  ;;  %v4214_v62 = vld [vmem:[%s5404_s0 + $0x120] sm:$0xff] }
0x12a5   :  { %v5214_v14 = vadd.f32 %v2753_v43, %v2748_v51  ;;  %v4215_v51 = vld [vmem:[%s5404_s0 + $0x128] sm:$0xff] }
0x12a6   :  { %v2738_v32 = vpop.permute.xlu1 %2737 }
0x12a7   :  { %v2749_v8 = vmul.f32 %v2738_v32, %v2724_v0  ;;  %2905 = vrot.lane.b32.xlu1 %v5214_v14, %s4223_s8 }
0x12a9   :  { %v5219_v38 = vadd.f32 %v2754_v12, %v2749_v8  ;;  %v4216_v12 = vld [vmem:[%s5404_s0 + $0x130] sm:$0xff] }
0x12aa   :  { %v2740_v42 = vpop.permute.xlu0 %2739 }
0x12ab   :  { %v2750_v30 = vmul.f32 %v2740_v42, %v2725_v19  ;;  %2907 = vrot.lane.b32.xlu0 %v5219_v38, %s4223_s8  ;;  %v4217_v42 = vld [vmem:[%s5404_s0 + $0x138] sm:$0xff] }
0x12ad   :  { %v5224_v59 = vadd.f32 %v2755_v15, %v2750_v30 }
0x12af   :  { %2909 = vrot.lane.b32.xlu1 %v5224_v59, %s4223_s8  ;;  %2771 = vrot.lane.b32.xlu0 %v4208_v48, %s4221_s22 }
0x12b3   :  { %2773 = vrot.lane.b32.xlu1 %v4209_v57, %s4221_s22  ;;  %2775 = vrot.lane.b32.xlu0 %v4210_v7, %s4221_s22 }
0x12b7   :  { %2777 = vrot.lane.b32.xlu1 %v4211_v1, %s4221_s22  ;;  %2779 = vrot.lane.b32.xlu0 %v4212_v27, %s4221_s22 }
0x1311   :  { %v2902_v18 = vpop.permute.xlu1 %2901 }
0x1312   :  { %3830 = vmatmul.mubr.msk.f32.vlgmr.msra.gmra.mrb[70].mxu1 %vm73_vm2, %v2902_v18 }
0x1313   :  { %3832 = vmatprep.mubr.msk.f32.mxu1 %vm4219_vm0, %v4220_v3 }
0x1315   :  { %v2904_v4 = vpop.permute.xlu0 %2903 }
0x1316   :  { %3833 = vmatmul.mubr.msk.f32.gmra.mrb[72].mxu1 %vm73_vm2, %v2904_v4 }
0x1317   :  { %3835 = vmatprep.mubr.msk.f32.mxu1 %vm4219_vm0, %v4220_v3 }
0x1319   :  { %v2906_v61 = vpop.permute.xlu1 %2905 }
0x131a   :  { %3836 = vmatmul.mubr.msk.f32.gmra.mrb[74].mxu1 %vm73_vm2, %v2906_v61 }
0x131b   :  { %3838 = vmatprep.mubr.msk.f32.mxu1 %vm4219_vm0, %v4220_v3 }
0x131d   :  { %v2908_v13 = vpop.permute.xlu0 %2907 }
0x131e   :  { %3839 = vmatmul.mubr.msk.f32.gmra.mrb[76].mxu1 %vm73_vm2, %v2908_v13 }
0x131f   :  { %3841 = vmatprep.mubr.msk.f32.mxu1 %vm4219_vm0, %v4220_v3 }
0x1321   :  { %v2772_v11 = vpop.permute.xlu0 %2771  ;;  %v2910_v21 = vpop.permute.xlu1 %2909 }
0x1322   :  { %v2786_v60 = vsel %vm61_vm1, %v4213_v49, %v2772_v11  ;;  %3842 = vmatmul.mubr.msk.f32.gmra.mrb[78].mxu1 %vm73_vm2, %v2910_v21 }
0x1323   :  { %3807 = vmatmul.mubr.msk.f32.vlgmr.msra.gmra.mrb[70].mxu0 %vm73_vm2, %v2786_v60 }
0x1324   :  { %3809 = vmatprep.mubr.msk.f32.mxu0 %vm4219_vm0, %v4220_v3 }
0x1325   :  { %v2774_v54 = vpop.permute.xlu1 %2773  ;;  %v2776_v17 = vpop.permute.xlu0 %2775 }
0x1326   :  { %v2787_v43 = vsel %vm61_vm1, %v4214_v62, %v2774_v54  ;;  %v2788_v0 = vsel %vm61_vm1, %v4215_v51, %v2776_v17 }
0x1327   :  { %3810 = vmatmul.mubr.msk.f32.gmra.mrb[72].mxu0 %vm73_vm2, %v2787_v43 }
0x1328   :  { %3812 = vmatprep.mubr.msk.f32.mxu0 %vm4219_vm0, %v4220_v3 }
0x1329   :  { %v2778_v32 = vpop.permute.xlu1 %2777  ;;  %v2780_v19 = vpop.permute.xlu0 %2779 }
0x132a   :  { %v2789_v8 = vsel %vm61_vm1, %v4216_v12, %v2778_v32  ;;  %v2790_v15 = vsel %vm61_vm1, %v4217_v42, %v2780_v19 }
0x132b   :  { %3813 = vmatmul.mubr.msk.f32.gmra.mrb[74].mxu0 %vm73_vm2, %v2788_v0 }
0x132c   :  { %3815 = vmatprep.mubr.msk.f32.mxu0 %vm4219_vm0, %v4220_v3 }
0x132f   :  { %3816 = vmatmul.mubr.msk.f32.gmra.mrb[76].mxu0 %vm73_vm2, %v2789_v8 }
0x1330   :  { %3818 = vmatprep.mubr.msk.f32.mxu0 %vm4219_vm0, %v4220_v3 }
0x1333   :  { %3819 = vmatmul.mubr.msk.f32.gmra.mrb[78].mxu0 %vm73_vm2, %v2790_v15 }
0x13e5   :  { %v2987_v30 = vpop.f32.mrb[70].mxu1 }
0x13e6   :  { %v3046_v48 = vadd.f32 %v2987_v30, %v4382_v35  ;;  %v3831_v57 = vpop.f32.mrb[71].mxu1 }
0x13e8   :  { %3056 = vrot.lane.b32.xlu1 %v3046_v48, %s4222_s1 }
0x13e9   :  { %v2992_v7 = vpop.f32.mrb[72].mxu1 }
0x13ea   :  { %v3047_v1 = vadd.f32 %v2992_v7, %v4382_v35  ;;  %v3834_v27 = vpop.f32.mrb[73].mxu1 }
0x13ec   :  { %3058 = vrot.lane.b32.xlu0 %v3047_v1, %s4222_s1 }
0x13ed   :  { %v2997_v18 = vpop.f32.mrb[74].mxu1 }
0x13ee   :  { %v3048_v4 = vadd.f32 %v2997_v18, %v4382_v35  ;;  %v3837_v61 = vpop.f32.mrb[75].mxu1 }
0x13f0   :  { %3060 = vrot.lane.b32.xlu1 %v3048_v4, %s4222_s1 }
0x13f1   :  { %v3002_v3 = vpop.f32.mrb[76].mxu1 }
0x13f2   :  { %v3049_v13 = vadd.f32 %v3002_v3, %v4382_v35  ;;  %v3840_v11 = vpop.f32.mrb[77].mxu1 }
0x13f4   :  { %3062 = vrot.lane.b32.xlu0 %v3049_v13, %s4222_s1 }
0x13f5   :  { %v3007_v21 = vpop.f32.mrb[78].mxu1 }
0x13f6   :  { %v3050_v49 = vadd.f32 %v3007_v21, %v4382_v35  ;;  %v2872_v60 = vpop.f32.mrb[70].mxu0  ;;  %v3843_v54 = vpop.f32.mrb[79].mxu1 }
0x13f7   :  { %v3808_v17 = vpop.f32.mrb[71].mxu0  ;;  %v2873_v42 = vadd.f32 %v5186_v63, %v2872_v60 }
0x13f8   :  { %3064 = vrot.lane.b32.xlu1 %v3050_v49, %s4222_s1 }
0x13f9   :  { %v3011_v15 = vadd.f32 %v2987_v30, %v2873_v42 }
0x13fa   :  { %v2877_v62 = vpop.f32.mrb[72].mxu0 }
0x13fb   :  { %v3811_v43 = vpop.f32.mrb[73].mxu0  ;;  %v2878_v48 = vadd.f32 %v5186_v63, %v2877_v62  ;;  %v3327_v57 = vmul.f32 -1.442695, %v3011_v15 }
0x13fd   :  { %v3012_v35 = vadd.f32 %v2992_v7, %v2878_v48  ;;  %4156 = vpow2.f32 %v3327_v57 }
0x13fe   :  { %v2882_v51 = vpop.f32.mrb[74].mxu0 }
0x13ff   :  { %v3814_v0 = vpop.f32.mrb[75].mxu0  ;;  %v2883_v1 = vadd.f32 %v5186_v63, %v2882_v51  ;;  %v3328_v27 = vmul.f32 -1.442695, %v3012_v35 }
0x1401   :  { %v3013_v4 = vadd.f32 %v2997_v18, %v2883_v1  ;;  %4158 = vpow2.f32 %v3328_v27 }
0x1402   :  { %v2887_v32 = vpop.f32.mrb[76].mxu0 }
0x1403   :  { %v3817_v12 = vpop.f32.mrb[77].mxu0  ;;  %v2888_v61 = vadd.f32 %v5186_v63, %v2887_v32  ;;  %v3329_v13 = vmul.f32 -1.442695, %v3013_v4 }
0x1405   :  { %v3014_v11 = vadd.f32 %v3002_v3, %v2888_v61  ;;  %4160 = vpow2.f32 %v3329_v13 }
0x1406   :  { %v2892_v8 = vpop.f32.mrb[78].mxu0 }
0x1407   :  { %v3820_v19 = vpop.f32.mrb[79].mxu0  ;;  %v2893_v49 = vadd.f32 %v5186_v63, %v2892_v8  ;;  %v3330_v54 = vmul.f32 -1.442695, %v3014_v11  ;;  %v4157_v30 = vpop.eup %4156 }
0x1408   :  { %v3031_v62 = vadd.f32 1.0, %v4157_v30 }
0x1409   :  { %v3015_v60 = vadd.f32 %v3007_v21, %v2893_v49  ;;  %4162 = vpow2.f32 %v3330_v54 }
0x140b   :  { %v3331_v17 = vmul.f32 -1.442695, %v3015_v60  ;;  %v4159_v7 = vpop.eup %4158 }
0x140c   :  { %v3032_v43 = vadd.f32 1.0, %v4159_v7 }
0x140d   :  { %4164 = vpow2.f32 %v3331_v17 }
0x140e   :  { %4166 = vrcp.f32 %v3031_v62 }
0x140f   :  { %v4161_v51 = vpop.eup %4160  ;;  %4168 = vrcp.f32 %v3032_v43 }
0x1410   :  { %v3033_v18 = vadd.f32 1.0, %v4161_v51 }
0x1412   :  { %4170 = vrcp.f32 %v3033_v18 }
0x1413   :  { %v4163_v0 = vpop.eup %4162 }
0x1414   :  { %v3034_v32 = vadd.f32 1.0, %v4163_v0 }
0x1416   :  { %4172 = vrcp.f32 %v3034_v32 }
0x1417   :  { %v4165_v3 = vpop.eup %4164 }
0x1418   :  { %v4167_v12 = vpop.eup %4166  ;;  %v3035_v21 = vadd.f32 1.0, %v4165_v3 }
0x1419   :  { %v5310_v19 = vpop.eup %4168 }
0x141a   :  { %4174 = vrcp.f32 %v3035_v21 }
0x141c   :  { %v5314_v35 = vpop.eup %4170 }
0x1420   :  { %v5318_v13 = vpop.eup %4172 }
0x1424   :  { %v5322_v60 = vpop.eup %4174 }
0x145a   :  { %v3057_v63 = vpop.permute.xlu1 %3056 }
0x145b   :  { %v3071_v8 = vmul.f32 %v4167_v12, %v3057_v63 }
0x145d   :  { %3081 = vrot.lane.b32.xlu0 %v3071_v8, %s4222_s1 }
0x145e   :  { %v3059_v15 = vpop.permute.xlu0 %3058 }
0x145f   :  { %v3072_v57 = vmul.f32 %v5310_v19, %v3059_v15 }
0x1461   :  { %3083 = vrot.lane.b32.xlu1 %v3072_v57, %s4222_s1 }
0x1462   :  { %v3061_v27 = vpop.permute.xlu1 %3060 }
0x1463   :  { %v3073_v4 = vmul.f32 %v5314_v35, %v3061_v27 }
0x1465   :  { %3085 = vrot.lane.b32.xlu0 %v3073_v4, %s4222_s1 }
0x1466   :  { %v3063_v11 = vpop.permute.xlu0 %3062 }
0x1467   :  { %v3074_v54 = vmul.f32 %v5318_v13, %v3063_v11 }
0x1469   :  { %3087 = vrot.lane.b32.xlu1 %v3074_v54, %s4222_s1  ;;  %v3106_v54 = vsub.f32 1.0, %v4167_v12 }
0x146a   :  { %v3065_v30 = vpop.permute.xlu1 %3064 }
0x146b   :  { %v3075_v17 = vmul.f32 %v5322_v60, %v3065_v30  ;;  %v814_v30 = vadd.f32 %v4556_v46, %v4430_v16  ;;  %v815_v16 = vadd.f32 %v4561_v52, %v4434_v22  ;;  %v3108_v22 = vsub.f32 1.0, %v5314_v35 }
0x146c   :  { %v816_v52 = vadd.f32 %v4569_v53, %v4441_v28  ;;  %v3109_v28 = vsub.f32 1.0, %v5318_v13 }
0x146d   :  { %3089 = vrot.lane.b32.xlu0 %v3075_v17, %s4222_s1 }
0x14cf   :  { %v3082_v62 = vpop.permute.xlu0 %3081 }
0x14d0   :  { %v3096_v7 = vadd.f32 %v3082_v62, %v2873_v42 }
0x14d2   :  { %4176 = vtanh.f32 %v3096_v7 }
0x14d3   :  { %v3084_v43 = vpop.permute.xlu1 %3083 }
0x14d4   :  { %v3097_v51 = vadd.f32 %v3084_v43, %v2878_v48 }
0x14d6   :  { %4178 = vtanh.f32 %v3097_v51 }
0x14d7   :  { %v3086_v18 = vpop.permute.xlu0 %3085 }
0x14d8   :  { %v3098_v0 = vadd.f32 %v3086_v18, %v2883_v1 }
0x14da   :  { %4180 = vtanh.f32 %v3098_v0 }
0x14db   :  { %v3088_v32 = vpop.permute.xlu1 %3087 }
0x14dc   :  { %v4177_v3 = vpop.eup %4176  ;;  %v3099_v63 = vadd.f32 %v3088_v32, %v2888_v61  ;;  %v812_v61 = vadd.f32 %v4546_v36, %v4422_v2  ;;  %v3136_v36 = vmul.f32 %v4167_v12, %v5204_v50  ;;  %v3137_v12 = vmul.f32 %v5310_v19, %v5209_v5 }
0x14dd   :  { %3116 = vrot.lane.b32.xlu1 %v4177_v3, %s4223_s8 }
0x14de   :  { %4182 = vtanh.f32 %v3099_v63  ;;  %v1209_v57 = vadd.f32 %v4674_v20, %v812_v61 }
0x14df   :  { %v3090_v8 = vpop.permute.xlu0 %3089 }
0x14e0   :  { %v4179_v21 = vpop.eup %4178  ;;  %v3100_v15 = vadd.f32 %v3090_v8, %v2893_v49  ;;  %v813_v49 = vadd.f32 %v4551_v41, %v4426_v9  ;;  %v1606_v27 = vadd.f32 %v4837_v6, %v1209_v57  ;;  %v1211_v9 = vadd.f32 %v4684_v31, %v814_v30 }
0x14e1   :  { %3118 = vrot.lane.b32.xlu0 %v4179_v21, %s4223_s8  ;;  %v3110_v21 = vsub.f32 1.0, %v5322_v60 }
0x14e2   :  { %4184 = vtanh.f32 %v3100_v15  ;;  %v1210_v4 = vadd.f32 %v4679_v25, %v813_v49  ;;  %v1991_v11 = vadd.f32 %v4945_v58, %v1606_v27  ;;  %v3107_v58 = vsub.f32 1.0, %v5310_v19 }
0x14e3   :  { %v1608_v46 = vadd.f32 %v4847_v55, %v1211_v9 }
0x14e4   :  { %v4181_v42 = vpop.eup %4180  ;;  %v1607_v62 = vadd.f32 %v4842_v33, %v1210_v4  ;;  %v2376_v2 = vadd.f32 %v5073_v39, %v1991_v11 }
0x14e5   :  { %3120 = vrot.lane.b32.xlu1 %v4181_v42, %s4223_s8 }
0x14e6   :  { %v1992_v41 = vadd.f32 %v4950_v10, %v1607_v62  ;;  %v2761_v25 = vadd.f32 %v5204_v50, %v2376_v2  ;;  %v1212_v10 = vadd.f32 %v4689_v37, %v815_v16  ;;  %v1993_v50 = vadd.f32 %v4955_v40, %v1608_v46 }
0x14e7   :  { %v3138_v37 = vmul.f32 %v5314_v35, %v5214_v14  ;;  %v3139_v35 = vmul.f32 %v5318_v13, %v5219_v38 }
0x14e8   :  { %v4183_v48 = vpop.eup %4182  ;;  %v2377_v39 = vadd.f32 %v5078_v47, %v1992_v41  ;;  %v1609_v55 = vadd.f32 %v4852_v26, %v1212_v10  ;;  %v2378_v19 = vadd.f32 %v5083_v23, %v1993_v50 }
0x14e9   :  { %3122 = vrot.lane.b32.xlu0 %v4183_v48, %s4223_s8 }
0x14ea   :  { %v2762_v43 = vadd.f32 %v5209_v5, %v2377_v39  ;;  %v1213_v5 = vadd.f32 %v4699_v44, %v816_v52  ;;  %v1994_v0 = vadd.f32 %v4960_v45, %v1609_v55  ;;  %v2763_v32 = vadd.f32 %v5214_v14, %v2378_v19 }
0x14ec   :  { %v4185_v1 = vpop.eup %4184  ;;  %v1610_v53 = vadd.f32 %v4857_v56, %v1213_v5  ;;  %v2379_v23 = vadd.f32 %v5088_v29, %v1994_v0  ;;  %v3140_v29 = vmul.f32 %v5322_v60, %v5224_v59 }
0x14ed   :  { %3124 = vrot.lane.b32.xlu1 %v4185_v1, %s4223_s8 }
0x14ee   :  { %v1995_v44 = vadd.f32 %v4965_v24, %v1610_v53  ;;  %v2764_v45 = vadd.f32 %v5219_v38, %v2379_v23 }
0x14f0   :  { %v2380_v56 = vadd.f32 %v5093_v34, %v1995_v44 }
0x14f2   :  { %v2765_v13 = vadd.f32 %v5224_v59, %v2380_v56 }
0x154f   :  { %v3117_v17 = vpop.permute.xlu1 %3116 }
0x1550   :  { %v3131_v20 = vmul.f32 %v3117_v17, %v3106_v54 }
0x1552   :  { %v3141_v6 = vadd.f32 %v3136_v36, %v3131_v20 }
0x1553   :  { %v3119_v33 = vpop.permute.xlu0 %3118 }
0x1554   :  { %v3146_v7 = vadd.f32 %v3141_v6, %v2761_v25  ;;  %v3132_v31 = vmul.f32 %v3119_v33, %v3107_v58 }
0x1556   :  { %v3142_v51 = vadd.f32 %v3137_v12, %v3132_v31  ;;  %3156 = vrot.lane.b32.xlu0 %v3146_v7, %s4223_s8 }
0x1557   :  { %v3121_v47 = vpop.permute.xlu1 %3120 }
0x1558   :  { %v3147_v18 = vadd.f32 %v3142_v51, %v2762_v43  ;;  %v3133_v40 = vmul.f32 %v3121_v47, %v3108_v22 }
0x155a   :  { %v3143_v3 = vadd.f32 %v3138_v37, %v3133_v40  ;;  %3158 = vrot.lane.b32.xlu1 %v3147_v18, %s4223_s8 }
0x155b   :  { %v3123_v26 = vpop.permute.xlu0 %3122 }
0x155c   :  { %v3148_v63 = vadd.f32 %v3143_v3, %v2763_v32  ;;  %v3134_v8 = vmul.f32 %v3123_v26, %v3109_v28 }
0x155e   :  { %v3144_v14 = vadd.f32 %v3139_v35, %v3134_v8  ;;  %3160 = vrot.lane.b32.xlu0 %v3148_v63, %s4223_s8 }
0x155f   :  { %v3125_v15 = vpop.permute.xlu1 %3124 }
0x1560   :  { %v3149_v42 = vadd.f32 %v3144_v14, %v2764_v45  ;;  %v3135_v48 = vmul.f32 %v3125_v15, %v3110_v21 }
0x1562   :  { %v3145_v1 = vadd.f32 %v3140_v29, %v3135_v48  ;;  %3162 = vrot.lane.b32.xlu1 %v3149_v42, %s4223_s8 }
0x1564   :  { %v3150_v24 = vadd.f32 %v3145_v1, %v2765_v13 }
0x1566   :  { %3164 = vrot.lane.b32.xlu0 %v3150_v24, %s4223_s8 }
0x15c8   :  { %v3157_v38 = vpop.permute.xlu0 %3156 }
0x15c9   :  { %3171 = vst.msk [vmem:[%s5409_s5] sm:$0xff] %vm73_vm2, %v3157_v38 }
0x15cc   :  { %v3159_v34 = vpop.permute.xlu1 %3158 }
0x15cd   :  { %3172 = vst.msk [vmem:[%s5409_s5 + $0x8] sm:$0xff] %vm73_vm2, %v3159_v34 }
0x15d0   :  { %v3161_v60 = vpop.permute.xlu0 %3160 }
0x15d1   :  { %3173 = vst.msk [vmem:[%s5409_s5 + $0x10] sm:$0xff] %vm73_vm2, %v3161_v60 }
0x15d4   :  { %v3163_v59 = vpop.permute.xlu1 %3162 }
0x15d5   :  { %3174 = vst.msk [vmem:[%s5409_s5 + $0x18] sm:$0xff] %vm73_vm2, %v3163_v59 }
0x15d8   :  { %v3165_v61 = vpop.permute.xlu0 %3164 }
0x15d9   :  { %3175 = vst.msk [vmem:[%s5409_s5 + $0x20] sm:$0xff] %vm73_vm2, %v3165_v61 }

</bundles_post_ra>
